<compile_context>
chip_gen: v6e
topology: v6e:2x2x1
jax: 0.10.0
libtpu: 0.0.40
codegen_flags: <defaults>
</compile_context>

<pallas_src>
import functools
import math

import jax
import jax.numpy as jnp
from jax import lax
from jax.experimental import pallas as pl
from jax.experimental.pallas import tpu as pltpu


_VMEM = pl.BlockSpec(memory_space=pltpu.MemorySpace.VMEM)


# ----------------------------- in-kernel helpers -----------------------------

def _agg_max(a, bm, adj_f, deg_col):
    """EdgeConv 'max' aggregation.

    out[t] = a[t] + max_{s : adj[s,t] > 0} bm[s]; targets with no in-edges -> 0.
    deg_col is the hoisted per-target has-in-edge mask (independent of C).
    At N=16 the full [Ns,Nt,C] masked tensor is <= 32 KiB, so no source
    blocking is needed (the blocked running-max form only pays at large N).
    """
    neg = jnp.float32(-1e30)                       # finite sentinel, no -inf/NaN risk
    msk = adj_f[:, :, None] > 0.5                  # [Ns, Nt, 1]
    vals = bm[:, None, :]                          # [Ns, 1, C]
    m = jnp.max(jnp.where(msk, vals, neg), axis=0)  # [Nt, C]
    return jnp.where(deg_col > 0.5, a + m, 0.0)


def _conv_finish(a, bm, adj_f, deg_col, relu, active):
    out = _agg_max(a, bm, adj_f, deg_col)
    if relu:
        out = jnp.maximum(out, 0.0)
    if active is not None:
        out = out * active                         # zero nodes dropped by pooling
    return out


def _augment(adj_f, active, eye):
    """augment_adj: self-loop fixup + adjacency squaring (spspmm structure).

    Only binary connectivity is reproduced (edge weights are never consumed by
    EdgeConv / TopKPooling.filter_adj).  bf16 MXU matmul, f32 accumulation —
    exact for 0/1 entries and portable across v5e/v6e/v7x.
    """
    a = jnp.where(eye, active, adj_f)              # diag = active mask
    a_bf = a.astype(jnp.bfloat16)
    sq = jnp.dot(a_bf, a_bf, preferred_element_type=jnp.float32)
    return jnp.where(eye, 0.0, jnp.where(sq > 0.5, 1.0, 0.0))


def _topk_sel(score, active, k, n, eye):
    """Rank-based top-k over active nodes -> 0/1 column mask [N,1].

    rank_i = #{j : key_j > key_i  or (key_j == key_i and j < i)}; keep rank < k.
    One pairwise-compare matrix + one reduce instead of k serial argmax steps.
    Ties break toward the smaller index (torch.topk tie order is unspecified,
    so exactly-tied tanh scores may differ from PyG — benign).
    Inactive nodes get a -3e38 key, so they can never rank inside the top-k;
    the final mask also requires `active`, so even k > #active is safe.
    """
    f32 = jnp.float32
    key = jnp.where(active > 0.5, score, jnp.float32(-3e38))            # [N,1]
    # Row layout of key without a transpose: put key on the diagonal and
    # reduce over sublanes (guaranteed-supported lowering path).
    key_row = jnp.sum(jnp.where(eye, key, 0.0), axis=0, keepdims=True)  # [1,N]
    idx_col = lax.broadcasted_iota(jnp.int32, (n, 1), 0)
    idx_row = lax.broadcasted_iota(jnp.int32, (1, n), 1)
    beats = (key_row > key) | ((key_row == key) & (idx_row < idx_col))  # [N,N]
    rank = jnp.sum(beats.astype(f32), axis=1, keepdims=True)            # [N,1]
    keep = (rank < jnp.float32(k)) & (active > 0.5)
    return jnp.where(keep, 1.0, 0.0)


# ----------------------------- fused forward kernel --------------------------

def _edge_unet_kernel(x_ref, adj_ref, slab_ref, o_ref, *,
                      depth, counts, sum_res, layout):
    f32 = jnp.float32
    n = x_ref.shape[0]

    def w(name):                                   # static slab slice -> VMEM load
        off, r, c = layout[name]
        return slab_ref[off:off + r, 0:c]

    row = lax.broadcasted_iota(jnp.int32, (n, n), 0)
    col = lax.broadcasted_iota(jnp.int32, (n, n), 1)
    eye = row == col

    x = x_ref[...].astype(f32)
    adj = adj_ref[...].astype(f32)                 # 0/1 connectivity (src, dst)
    ones_col = jnp.ones((n, 1), f32)

    def deg_of(adj_f):                             # has-in-edge mask, once per adjacency
        return jnp.max(adj_f[:, :, None], axis=0)  # [N,1]

    def conv(xin, wname, bname, adj_f, deg_col, relu, active):
        # Fused EdgeConv matmul: xin @ [Wa | Wd]; bias zero-padded on the Wd half.
        wf = w(wname)
        cout = layout[wname][2] // 2
        c = jnp.dot(xin, wf, preferred_element_type=f32) + w(bname)
        return _conv_finish(c[:, :cout], c[:, cout:], adj_f, deg_col, relu, active)

    # ---- level-0 EdgeConv + ReLU ----
    deg = deg_of(adj)
    x = conv(x, "down0_w", "down0_b", adj, deg, relu=True, active=None)

    xs, adjs, degs, masks = [x], [adj], [deg], [ones_col]
    active = ones_col

    # ---- down path: augment -> TopK pool -> EdgeConv + ReLU ----
    for i in range(1, depth + 1):
        adj_aug = _augment(adj, active, eye)

        score = jnp.tanh(jnp.dot(x, w(f"pool{i-1}"), preferred_element_type=f32))
        sel = _topk_sel(score, active, counts[i], n, eye)

        x = x * sel * score                        # keep + scale selected nodes
        adj = adj_aug * sel                        # drop edges out of removed nodes
        active = sel
        deg = deg_of(adj)

        x = conv(x, f"down{i}_w", f"down{i}_b", adj, deg, relu=True, active=active)

        if i < depth:
            xs.append(x)
            adjs.append(adj)
            degs.append(deg)
            masks.append(active)

    # ---- up path: unpool (skip) -> EdgeConv ----
    for i in range(depth):
        j = depth - 1 - i
        res, adj_j, deg_j, act_j = xs[j], adjs[j], degs[j], masks[j]
        up = x                                     # deeper features, original positions
        relu = i < depth - 1
        act = act_j if j > 0 else None
        if sum_res:
            x = conv(res + up, f"up{i}_w", f"up{i}_b", adj_j, deg_j, relu, act)
        else:
            # cat([res, up]) folded into per-operand fused weight halves (no lane concat).
            wr = w(f"up{i}_wr")
            wu = w(f"up{i}_wu")
            cout = layout[f"up{i}_wr"][2] // 2
            c = (jnp.dot(res, wr, preferred_element_type=f32)
                 + jnp.dot(up, wu, preferred_element_type=f32) + w(f"up{i}_b"))
            x = _conv_finish(c[:, :cout], c[:, cout:], adj_j, deg_j, relu, act)

    # ---- decode head (output lane-padded to 128 channels -> dense store) ----
    o_ref[...] = jnp.dot(x, w("dec_w"), preferred_element_type=f32) + w("dec_b")


# ----------------------------- wrapper ---------------------------------------

def edge_unet_forward(x, adj, params, cfg):
    depth = len(cfg["hidden_channels"])
    n = x.shape[0]

    kernel = functools.partial(
        _edge_unet_kernel,
        depth=depth,
        counts=tuple(cfg["node_counts"]),
        sum_res=cfg["sum_res"],
        layout=params["layout"],
    )
    out_pad = pl.pallas_call(
        kernel,
        out_shape=jax.ShapeDtypeStruct((n, 128), jnp.float32),
        in_specs=[_VMEM, _VMEM, _VMEM],
        out_specs=_VMEM,
        compiler_params=pltpu.CompilerParams(vmem_limit_bytes=4 * 1024 * 1024),
        cost_estimate=pl.CostEstimate(flops=120_000, transcendentals=32,
                                      bytes_accessed=96_000),
    )(x.astype(jnp.float32), adj, params["slab"])
    return out_pad[:, :cfg["num_classes"]]


# ----------------------------- parameter init --------------------------------

def init_params(key, cfg):
    """Weights stored kernel-ready and packed into ONE [R, 128] f32 slab:
    pre-transposed, a/bm halves pre-concatenated ([Wa|Wd], zero-padded bias),
    pool vectors pre-normalized columns, decode lane-padded to 128, all row
    offsets 8-aligned.  Returns dict(slab=..., layout={name: (off, rows, cols)})."""
    in_c = cfg["in_channels"]
    hid = cfg["hidden_channels"]
    out_c = cfg["out_channels"]
    ncls = cfg["num_classes"]
    depth = len(hid)
    sum_res = cfg["sum_res"]
    keys = iter(jax.random.split(key, 64))

    def torch_linear(kin, kout):
        s = 1.0 / math.sqrt(kin)
        wgt = jax.random.uniform(next(keys), (kout, kin), jnp.float32, -s, s)
        b = jax.random.uniform(next(keys), (kout,), jnp.float32, -s, s)
        return wgt, b

    def edge_params(cin, cout):
        # EdgeConv message = Linear([x_i, x_j - x_i]) = x_i@(Wi-Wd)^T + x_j@Wd^T + b
        wgt, b = torch_linear(2 * cin, cout)
        w_i, w_d = wgt[:, :cin], wgt[:, cin:]
        wa = (w_i - w_d).T                                   # [cin, cout]
        wd = w_d.T                                           # [cin, cout]
        w_fused = jnp.concatenate([wa, wd], axis=1)          # [cin, 2*cout]
        b_pad = jnp.concatenate(
            [b.reshape(1, cout), jnp.zeros((1, cout), jnp.float32)], axis=1)
        return w_fused, b_pad

    entries = []  # (name, 2-D array)

    wf, bp = edge_params(in_c, hid[0])
    entries += [("down0_w", wf), ("down0_b", bp)]
    for i in range(depth):
        cout = hid[i] if i == depth - 1 else hid[i + 1]
        wf, bp = edge_params(hid[i], cout)
        entries += [(f"down{i+1}_w", wf), (f"down{i+1}_b", bp)]

    for i in range(depth):
        wv = jax.random.normal(next(keys), (hid[i],), jnp.float32)
        entries.append((f"pool{i}", (wv / jnp.linalg.norm(wv)).reshape(hid[i], 1)))

    for i in range(depth):
        c_res = hid[depth - i - 1]
        cout = hid[depth - i - 2] if i < depth - 1 else out_c
        if sum_res:
            wf, bp = edge_params(c_res, cout)
            entries += [(f"up{i}_w", wf), (f"up{i}_b", bp)]
        else:
            wf, bp = edge_params(2 * c_res, cout)            # cat(res, up) -> 2*c_res
            entries += [(f"up{i}_wr", wf[:c_res]), (f"up{i}_wu", wf[c_res:]),
                        (f"up{i}_b", bp)]

    dw, db = torch_linear(out_c, ncls)
    dec_w = jnp.zeros((out_c, 128), jnp.float32).at[:, :ncls].set(dw.T)
    dec_b = jnp.zeros((1, 128), jnp.float32).at[:, :ncls].set(db.reshape(1, ncls))
    entries += [("dec_w", dec_w), ("dec_b", dec_b)]

    # Pack into a single [R, 128] slab with 8-aligned row offsets -> one DMA.
    layout, blocks, off = {}, [], 0
    for name, arr in entries:
        r, c = arr.shape
        r_pad = -(-r // 8) * 8
        blk = jnp.zeros((r_pad, 128), jnp.float32).at[:r, :c].set(
            arr.astype(jnp.float32))
        layout[name] = (off, r, c)
        blocks.append(blk)
        off += r_pad
    slab = jnp.concatenate(blocks, axis=0)
    return dict(slab=slab, layout=layout)


# ---------------------------------- main --------------------------------------

if __name__ == "__main__":
    cfg = dict(
        in_channels=4,
        hidden_channels=[8, 16],     # depth = 2
        out_channels=8,
        num_classes=3,
        pool_ratios=[0.5, 0.5],
        sum_res=False,               # matches Linear(2*2*hidden, ...) in up_convs
    )
    N = 16
    counts = [N]
    for r in cfg["pool_ratios"]:
        counts.append(int(math.ceil(r * counts[-1])))
    cfg["node_counts"] = counts      # static per-level node counts: [16, 8, 4]

    key = jax.random.PRNGKey(0)
    kx, kp = jax.random.split(key)
    x = jax.random.normal(kx, (N, cfg["in_channels"]), jnp.float32)

    # Deterministic graph: bidirectional ring + a few cross chords.
    src, dst = [], []
    for i in range(N):
        src += [i, (i + 1) % N]
        dst += [(i + 1) % N, i]
    for i in range(0, N, 4):
        j = (i + N // 2) % N
        src += [i, j]
        dst += [j, i]
    adj = (jnp.zeros((N, N), jnp.float32)
           .at[jnp.array(src), jnp.array(dst)].set(1.0)).astype(jnp.bfloat16)

    params = init_params(kp, cfg)

    out = edge_unet_forward(x, adj, params, cfg)
    out = jax.block_until_ready(out)

    assert out.shape == (N, cfg["num_classes"]), out.shape
    assert bool(jnp.all(jnp.isfinite(out)))
    # TODO(synk): exact spspmm edge *weights* are not reproduced (only binary
    # connectivity); downstream ops (EdgeConv, TopKPooling.filter_adj) never
    # consume them, so forward semantics are unchanged.
    print("KERNEL_OK")
</pallas_src>

<mosaic_0001>
module attributes {stable_mosaic.version = 11 : i64} {
  func.func @_edge_unet_kernel(%arg0: memref<16x4xf32, #tpu.memory_space<vmem>>, %arg1: memref<16x16xbf16, #tpu.memory_space<vmem>>, %arg2: memref<160x128xf32, #tpu.memory_space<vmem>>, %arg3: memref<16x128xf32, #tpu.memory_space<vmem>>) attributes {dimension_semantics = [], scalar_prefetch = 0 : i64, scratch_operands = 0 : i64, tpu.core_type = #tpu.core_type<tc>} {
    %0 = tpu.iota {dimensions = array<i32: 0>} : vector<16x16xi32>
    %1 = tpu.iota {dimensions = array<i32: 1>} : vector<16x16xi32>
    %2 = arith.cmpi eq, %0, %1 : vector<16x16xi32>
    %c0 = arith.constant 0 : index
    %c0_0 = arith.constant 0 : index
    %3 = vector.load %arg0[%c0, %c0_0] : memref<16x4xf32, #tpu.memory_space<vmem>>, vector<16x4xf32>
    %c0_1 = arith.constant 0 : index
    %c0_2 = arith.constant 0 : index
    %4 = vector.load %arg1[%c0_1, %c0_2] : memref<16x16xbf16, #tpu.memory_space<vmem>>, vector<16x16xbf16>
    %5 = arith.extf %4 : vector<16x16xbf16> to vector<16x16xf32>
    %cst = arith.constant 1.000000e+00 : f32
    %6 = vector.broadcast %cst : f32 to vector<16x1xf32>
    %7 = vector.shape_cast %5 : vector<16x16xf32> to vector<16x16x1xf32>
    %cst_3 = arith.constant dense<0xFF800000> : vector<16x1xf32>
    %8 = vector.multi_reduction <maximumf>, %7, %cst_3 [0] : vector<16x16x1xf32> to vector<16x1xf32>
    %c0_4 = arith.constant 0 : index
    %c0_5 = arith.constant 0 : index
    %9 = vector.load %arg2[%c0_4, %c0_5] : memref<160x128xf32, #tpu.memory_space<vmem>>, vector<4x16xf32>
    %cst_6 = arith.constant dense<0.000000e+00> : vector<16x16xf32>
    %10 = tpu.matmul %3, %9, %cst_6 {dimension_numbers = #tpu.dot_dimension_numbers<[1], [0], [0], [1], [0, 0, 1, 1], [], []>} : vector<16x4xf32>, vector<4x16xf32>, vector<16x16xf32> -> vector<16x16xf32>
    %c8 = arith.constant 8 : index
    %c0_7 = arith.constant 0 : index
    %11 = vector.load %arg2[%c8, %c0_7] : memref<160x128xf32, #tpu.memory_space<vmem>>, vector<1x16xf32>
    %12 = vector.broadcast %11 : vector<1x16xf32> to vector<16x16xf32>
    %13 = arith.addf %10, %12 : vector<16x16xf32>
    %14 = vector.extract_strided_slice %13 {offsets = [0, 0], sizes = [16, 8], strides = [1, 1]} : vector<16x16xf32> to vector<16x8xf32>
    %15 = vector.extract_strided_slice %13 {offsets = [0, 8], sizes = [16, 8], strides = [1, 1]} : vector<16x16xf32> to vector<16x8xf32>
    %16 = vector.shape_cast %5 : vector<16x16xf32> to vector<16x16x1xf32>
    %cst_8 = arith.constant 5.000000e-01 : f32
    %17 = vector.broadcast %cst_8 : f32 to vector<16x16x1xf32>
    %18 = arith.cmpf ogt, %16, %17 : vector<16x16x1xf32>
    %19 = vector.shape_cast %15 : vector<16x8xf32> to vector<16x1x8xf32>
    %cst_9 = arith.constant -1.000000e+30 : f32
    %20 = vector.shape_cast %18 : vector<16x16x1xi1> to vector<16x16x1xi1>
    %21 = vector.broadcast %20 : vector<16x16x1xi1> to vector<16x16x8xi1>
    %22 = vector.shape_cast %19 : vector<16x1x8xf32> to vector<16x1x8xf32>
    %23 = vector.broadcast %22 : vector<16x1x8xf32> to vector<16x16x8xf32>
    %24 = vector.broadcast %cst_9 : f32 to vector<16x16x8xf32>
    %25 = arith.select %21, %23, %24 : vector<16x16x8xi1>, vector<16x16x8xf32>
    %cst_10 = arith.constant dense<0xFF800000> : vector<16x8xf32>
    %26 = vector.multi_reduction <maximumf>, %25, %cst_10 [0] : vector<16x16x8xf32> to vector<16x8xf32>
    %cst_11 = arith.constant 5.000000e-01 : f32
    %27 = vector.broadcast %cst_11 : f32 to vector<16x1xf32>
    %28 = arith.cmpf ogt, %8, %27 : vector<16x1xf32>
    %29 = arith.addf %14, %26 : vector<16x8xf32>
    %cst_12 = arith.constant 0.000000e+00 : f32
    %30 = vector.shape_cast %28 : vector<16x1xi1> to vector<16x1xi1>
    %31 = vector.broadcast %30 : vector<16x1xi1> to vector<16x8xi1>
    %32 = vector.broadcast %cst_12 : f32 to vector<16x8xf32>
    %33 = arith.select %31, %29, %32 : vector<16x8xi1>, vector<16x8xf32>
    %cst_13 = arith.constant 0.000000e+00 : f32
    %34 = vector.broadcast %cst_13 : f32 to vector<16x8xf32>
    %35 = arith.maximumf %33, %34 : vector<16x8xf32>
    %36 = vector.shape_cast %6 : vector<16x1xf32> to vector<16x1xf32>
    %37 = vector.broadcast %36 : vector<16x1xf32> to vector<16x16xf32>
    %38 = arith.select %2, %37, %5 : vector<16x16xi1>, vector<16x16xf32>
    %39 = arith.truncf %38 : vector<16x16xf32> to vector<16x16xbf16>
    %cst_14 = arith.constant dense<0.000000e+00> : vector<16x16xf32>
    %40 = tpu.matmul %39, %39, %cst_14 {dimension_numbers = #tpu.dot_dimension_numbers<[1], [0], [0], [1], [0, 0, 1, 1], [], []>} : vector<16x16xbf16>, vector<16x16xbf16>, vector<16x16xf32> -> vector<16x16xf32>
    %cst_15 = arith.constant 5.000000e-01 : f32
    %41 = vector.broadcast %cst_15 : f32 to vector<16x16xf32>
    %42 = arith.cmpf ogt, %40, %41 : vector<16x16xf32>
    %cst_16 = arith.constant 1.000000e+00 : f32
    %cst_17 = arith.constant 0.000000e+00 : f32
    %43 = vector.broadcast %cst_16 : f32 to vector<16x16xf32>
    %44 = vector.broadcast %cst_17 : f32 to vector<16x16xf32>
    %45 = arith.select %42, %43, %44 : vector<16x16xi1>, vector<16x16xf32>
    %cst_18 = arith.constant 0.000000e+00 : f32
    %46 = vector.broadcast %cst_18 : f32 to vector<16x16xf32>
    %47 = arith.select %2, %46, %45 : vector<16x16xi1>, vector<16x16xf32>
    %c56 = arith.constant 56 : index
    %c0_19 = arith.constant 0 : index
    %48 = vector.load %arg2[%c56, %c0_19] : memref<160x128xf32, #tpu.memory_space<vmem>>, vector<8x1xf32>
    %cst_20 = arith.constant dense<0.000000e+00> : vector<16x1xf32>
    %49 = tpu.matmul %35, %48, %cst_20 {dimension_numbers = #tpu.dot_dimension_numbers<[1], [0], [0], [1], [0, 0, 1, 1], [], []>} : vector<16x8xf32>, vector<8x1xf32>, vector<16x1xf32> -> vector<16x1xf32>
    %50 = math.tanh %49 : vector<16x1xf32>
    %cst_21 = arith.constant 5.000000e-01 : f32
    %51 = vector.broadcast %cst_21 : f32 to vector<16x1xf32>
    %52 = arith.cmpf ogt, %6, %51 : vector<16x1xf32>
    %cst_22 = arith.constant -3.000000e+38 : f32
    %53 = vector.broadcast %cst_22 : f32 to vector<16x1xf32>
    %54 = arith.select %52, %50, %53 : vector<16x1xi1>, vector<16x1xf32>
    %cst_23 = arith.constant 0.000000e+00 : f32
    %55 = vector.shape_cast %54 : vector<16x1xf32> to vector<16x1xf32>
    %56 = vector.broadcast %55 : vector<16x1xf32> to vector<16x16xf32>
    %57 = vector.broadcast %cst_23 : f32 to vector<16x16xf32>
    %58 = arith.select %2, %56, %57 : vector<16x16xi1>, vector<16x16xf32>
    %cst_24 = arith.constant dense<0.000000e+00> : vector<16xf32>
    %59 = vector.multi_reduction <add>, %58, %cst_24 [0] : vector<16x16xf32> to vector<16xf32>
    %60 = vector.shape_cast %59 : vector<16xf32> to vector<1x16xf32>
    %61 = tpu.iota {dimensions = array<i32: 0>} : vector<16x1xi32>
    %62 = tpu.iota {dimensions = array<i32: 1>} : vector<1x16xi32>
    %63 = vector.broadcast %60 : vector<1x16xf32> to vector<16x16xf32>
    %64 = vector.broadcast %54 : vector<16x1xf32> to vector<16x16xf32>
    %65 = arith.cmpf ogt, %63, %64 : vector<16x16xf32>
    %66 = vector.broadcast %60 : vector<1x16xf32> to vector<16x16xf32>
    %67 = vector.broadcast %54 : vector<16x1xf32> to vector<16x16xf32>
    %68 = arith.cmpf oeq, %66, %67 : vector<16x16xf32>
    %69 = vector.broadcast %62 : vector<1x16xi32> to vector<16x16xi32>
    %70 = vector.broadcast %61 : vector<16x1xi32> to vector<16x16xi32>
    %71 = arith.cmpi slt, %69, %70 : vector<16x16xi32>
    %72 = arith.andi %68, %71 : vector<16x16xi1>
    %73 = arith.ori %65, %72 : vector<16x16xi1>
    %74 = arith.extui %73 : vector<16x16xi1> to vector<16x16xi32>
    %75 = arith.sitofp %74 : vector<16x16xi32> to vector<16x16xf32>
    %cst_25 = arith.constant dense<0.000000e+00> : vector<16xf32>
    %76 = vector.multi_reduction <add>, %75, %cst_25 [1] : vector<16x16xf32> to vector<16xf32>
    %77 = vector.shape_cast %76 : vector<16xf32> to vector<16x1xf32>
    %cst_26 = arith.constant 8.000000e+00 : f32
    %78 = vector.broadcast %cst_26 : f32 to vector<16x1xf32>
    %79 = arith.cmpf olt, %77, %78 : vector<16x1xf32>
    %cst_27 = arith.constant 5.000000e-01 : f32
    %80 = vector.broadcast %cst_27 : f32 to vector<16x1xf32>
    %81 = arith.cmpf ogt, %6, %80 : vector<16x1xf32>
    %82 = arith.andi %79, %81 : vector<16x1xi1>
    %cst_28 = arith.constant 1.000000e+00 : f32
    %cst_29 = arith.constant 0.000000e+00 : f32
    %83 = vector.broadcast %cst_28 : f32 to vector<16x1xf32>
    %84 = vector.broadcast %cst_29 : f32 to vector<16x1xf32>
    %85 = arith.select %82, %83, %84 : vector<16x1xi1>, vector<16x1xf32>
    %86 = vector.broadcast %85 : vector<16x1xf32> to vector<16x8xf32>
    %87 = arith.mulf %35, %86 : vector<16x8xf32>
    %88 = vector.broadcast %50 : vector<16x1xf32> to vector<16x8xf32>
    %89 = arith.mulf %87, %88 : vector<16x8xf32>
    %90 = vector.broadcast %85 : vector<16x1xf32> to vector<16x16xf32>
    %91 = arith.mulf %47, %90 : vector<16x16xf32>
    %92 = vector.shape_cast %91 : vector<16x16xf32> to vector<16x16x1xf32>
    %cst_30 = arith.constant dense<0xFF800000> : vector<16x1xf32>
    %93 = vector.multi_reduction <maximumf>, %92, %cst_30 [0] : vector<16x16x1xf32> to vector<16x1xf32>
    %c16 = arith.constant 16 : index
    %c0_31 = arith.constant 0 : index
    %94 = vector.load %arg2[%c16, %c0_31] : memref<160x128xf32, #tpu.memory_space<vmem>>, vector<8x32xf32>
    %cst_32 = arith.constant dense<0.000000e+00> : vector<16x32xf32>
    %95 = tpu.matmul %89, %94, %cst_32 {dimension_numbers = #tpu.dot_dimension_numbers<[1], [0], [0], [1], [0, 0, 1, 1], [], []>} : vector<16x8xf32>, vector<8x32xf32>, vector<16x32xf32> -> vector<16x32xf32>
    %c24 = arith.constant 24 : index
    %c0_33 = arith.constant 0 : index
    %96 = vector.load %arg2[%c24, %c0_33] : memref<160x128xf32, #tpu.memory_space<vmem>>, vector<1x32xf32>
    %97 = vector.broadcast %96 : vector<1x32xf32> to vector<16x32xf32>
    %98 = arith.addf %95, %97 : vector<16x32xf32>
    %99 = vector.extract_strided_slice %98 {offsets = [0, 0], sizes = [16, 16], strides = [1, 1]} : vector<16x32xf32> to vector<16x16xf32>
    %100 = vector.extract_strided_slice %98 {offsets = [0, 16], sizes = [16, 16], strides = [1, 1]} : vector<16x32xf32> to vector<16x16xf32>
    %101 = vector.shape_cast %91 : vector<16x16xf32> to vector<16x16x1xf32>
    %cst_34 = arith.constant 5.000000e-01 : f32
    %102 = vector.broadcast %cst_34 : f32 to vector<16x16x1xf32>
    %103 = arith.cmpf ogt, %101, %102 : vector<16x16x1xf32>
    %104 = vector.shape_cast %100 : vector<16x16xf32> to vector<16x1x16xf32>
    %cst_35 = arith.constant -1.000000e+30 : f32
    %105 = vector.shape_cast %103 : vector<16x16x1xi1> to vector<16x16x1xi1>
    %106 = vector.broadcast %105 : vector<16x16x1xi1> to vector<16x16x16xi1>
    %107 = vector.shape_cast %104 : vector<16x1x16xf32> to vector<16x1x16xf32>
    %108 = vector.broadcast %107 : vector<16x1x16xf32> to vector<16x16x16xf32>
    %109 = vector.broadcast %cst_35 : f32 to vector<16x16x16xf32>
    %110 = arith.select %106, %108, %109 : vector<16x16x16xi1>, vector<16x16x16xf32>
    %cst_36 = arith.constant dense<0xFF800000> : vector<16x16xf32>
    %111 = vector.multi_reduction <maximumf>, %110, %cst_36 [0] : vector<16x16x16xf32> to vector<16x16xf32>
    %cst_37 = arith.constant 5.000000e-01 : f32
    %112 = vector.broadcast %cst_37 : f32 to vector<16x1xf32>
    %113 = arith.cmpf ogt, %93, %112 : vector<16x1xf32>
    %114 = arith.addf %99, %111 : vector<16x16xf32>
    %cst_38 = arith.constant 0.000000e+00 : f32
    %115 = vector.shape_cast %113 : vector<16x1xi1> to vector<16x1xi1>
    %116 = vector.broadcast %115 : vector<16x1xi1> to vector<16x16xi1>
    %117 = vector.broadcast %cst_38 : f32 to vector<16x16xf32>
    %118 = arith.select %116, %114, %117 : vector<16x16xi1>, vector<16x16xf32>
    %cst_39 = arith.constant 0.000000e+00 : f32
    %119 = vector.broadcast %cst_39 : f32 to vector<16x16xf32>
    %120 = arith.maximumf %118, %119 : vector<16x16xf32>
    %121 = vector.broadcast %85 : vector<16x1xf32> to vector<16x16xf32>
    %122 = arith.mulf %120, %121 : vector<16x16xf32>
    %123 = vector.shape_cast %85 : vector<16x1xf32> to vector<16x1xf32>
    %124 = vector.broadcast %123 : vector<16x1xf32> to vector<16x16xf32>
    %125 = arith.select %2, %124, %91 : vector<16x16xi1>, vector<16x16xf32>
    %126 = arith.truncf %125 : vector<16x16xf32> to vector<16x16xbf16>
    %cst_40 = arith.constant dense<0.000000e+00> : vector<16x16xf32>
    %127 = tpu.matmul %126, %126, %cst_40 {dimension_numbers = #tpu.dot_dimension_numbers<[1], [0], [0], [1], [0, 0, 1, 1], [], []>} : vector<16x16xbf16>, vector<16x16xbf16>, vector<16x16xf32> -> vector<16x16xf32>
    %cst_41 = arith.constant 5.000000e-01 : f32
    %128 = vector.broadcast %cst_41 : f32 to vector<16x16xf32>
    %129 = arith.cmpf ogt, %127, %128 : vector<16x16xf32>
    %cst_42 = arith.constant 1.000000e+00 : f32
    %cst_43 = arith.constant 0.000000e+00 : f32
    %130 = vector.broadcast %cst_42 : f32 to vector<16x16xf32>
    %131 = vector.broadcast %cst_43 : f32 to vector<16x16xf32>
    %132 = arith.select %129, %130, %131 : vector<16x16xi1>, vector<16x16xf32>
    %cst_44 = arith.constant 0.000000e+00 : f32
    %133 = vector.broadcast %cst_44 : f32 to vector<16x16xf32>
    %134 = arith.select %2, %133, %132 : vector<16x16xi1>, vector<16x16xf32>
    %c64 = arith.constant 64 : index
    %c0_45 = arith.constant 0 : index
    %135 = vector.load %arg2[%c64, %c0_45] : memref<160x128xf32, #tpu.memory_space<vmem>>, vector<16x1xf32>
    %cst_46 = arith.constant dense<0.000000e+00> : vector<16x1xf32>
    %136 = tpu.matmul %122, %135, %cst_46 {dimension_numbers = #tpu.dot_dimension_numbers<[1], [0], [0], [1], [0, 0, 1, 1], [], []>} : vector<16x16xf32>, vector<16x1xf32>, vector<16x1xf32> -> vector<16x1xf32>
    %137 = math.tanh %136 : vector<16x1xf32>
    %cst_47 = arith.constant 5.000000e-01 : f32
    %138 = vector.broadcast %cst_47 : f32 to vector<16x1xf32>
    %139 = arith.cmpf ogt, %85, %138 : vector<16x1xf32>
    %cst_48 = arith.constant -3.000000e+38 : f32
    %140 = vector.broadcast %cst_48 : f32 to vector<16x1xf32>
    %141 = arith.select %139, %137, %140 : vector<16x1xi1>, vector<16x1xf32>
    %cst_49 = arith.constant 0.000000e+00 : f32
    %142 = vector.shape_cast %141 : vector<16x1xf32> to vector<16x1xf32>
    %143 = vector.broadcast %142 : vector<16x1xf32> to vector<16x16xf32>
    %144 = vector.broadcast %cst_49 : f32 to vector<16x16xf32>
    %145 = arith.select %2, %143, %144 : vector<16x16xi1>, vector<16x16xf32>
    %cst_50 = arith.constant dense<0.000000e+00> : vector<16xf32>
    %146 = vector.multi_reduction <add>, %145, %cst_50 [0] : vector<16x16xf32> to vector<16xf32>
    %147 = vector.shape_cast %146 : vector<16xf32> to vector<1x16xf32>
    %148 = tpu.iota {dimensions = array<i32: 0>} : vector<16x1xi32>
    %149 = tpu.iota {dimensions = array<i32: 1>} : vector<1x16xi32>
    %150 = vector.broadcast %147 : vector<1x16xf32> to vector<16x16xf32>
    %151 = vector.broadcast %141 : vector<16x1xf32> to vector<16x16xf32>
    %152 = arith.cmpf ogt, %150, %151 : vector<16x16xf32>
    %153 = vector.broadcast %147 : vector<1x16xf32> to vector<16x16xf32>
    %154 = vector.broadcast %141 : vector<16x1xf32> to vector<16x16xf32>
    %155 = arith.cmpf oeq, %153, %154 : vector<16x16xf32>
    %156 = vector.broadcast %149 : vector<1x16xi32> to vector<16x16xi32>
    %157 = vector.broadcast %148 : vector<16x1xi32> to vector<16x16xi32>
    %158 = arith.cmpi slt, %156, %157 : vector<16x16xi32>
    %159 = arith.andi %155, %158 : vector<16x16xi1>
    %160 = arith.ori %152, %159 : vector<16x16xi1>
    %161 = arith.extui %160 : vector<16x16xi1> to vector<16x16xi32>
    %162 = arith.sitofp %161 : vector<16x16xi32> to vector<16x16xf32>
    %cst_51 = arith.constant dense<0.000000e+00> : vector<16xf32>
    %163 = vector.multi_reduction <add>, %162, %cst_51 [1] : vector<16x16xf32> to vector<16xf32>
    %164 = vector.shape_cast %163 : vector<16xf32> to vector<16x1xf32>
    %cst_52 = arith.constant 4.000000e+00 : f32
    %165 = vector.broadcast %cst_52 : f32 to vector<16x1xf32>
    %166 = arith.cmpf olt, %164, %165 : vector<16x1xf32>
    %cst_53 = arith.constant 5.000000e-01 : f32
    %167 = vector.broadcast %cst_53 : f32 to vector<16x1xf32>
    %168 = arith.cmpf ogt, %85, %167 : vector<16x1xf32>
    %169 = arith.andi %166, %168 : vector<16x1xi1>
    %cst_54 = arith.constant 1.000000e+00 : f32
    %cst_55 = arith.constant 0.000000e+00 : f32
    %170 = vector.broadcast %cst_54 : f32 to vector<16x1xf32>
    %171 = vector.broadcast %cst_55 : f32 to vector<16x1xf32>
    %172 = arith.select %169, %170, %171 : vector<16x1xi1>, vector<16x1xf32>
    %173 = vector.broadcast %172 : vector<16x1xf32> to vector<16x16xf32>
    %174 = arith.mulf %122, %173 : vector<16x16xf32>
    %175 = vector.broadcast %137 : vector<16x1xf32> to vector<16x16xf32>
    %176 = arith.mulf %174, %175 : vector<16x16xf32>
    %177 = vector.broadcast %172 : vector<16x1xf32> to vector<16x16xf32>
    %178 = arith.mulf %134, %177 : vector<16x16xf32>
    %179 = vector.shape_cast %178 : vector<16x16xf32> to vector<16x16x1xf32>
    %cst_56 = arith.constant dense<0xFF800000> : vector<16x1xf32>
    %180 = vector.multi_reduction <maximumf>, %179, %cst_56 [0] : vector<16x16x1xf32> to vector<16x1xf32>
    %c32 = arith.constant 32 : index
    %c0_57 = arith.constant 0 : index
    %181 = vector.load %arg2[%c32, %c0_57] : memref<160x128xf32, #tpu.memory_space<vmem>>, vector<16x32xf32>
    %cst_58 = arith.constant dense<0.000000e+00> : vector<16x32xf32>
    %182 = tpu.matmul %176, %181, %cst_58 {dimension_numbers = #tpu.dot_dimension_numbers<[1], [0], [0], [1], [0, 0, 1, 1], [], []>} : vector<16x16xf32>, vector<16x32xf32>, vector<16x32xf32> -> vector<16x32xf32>
    %c48 = arith.constant 48 : index
    %c0_59 = arith.constant 0 : index
    %183 = vector.load %arg2[%c48, %c0_59] : memref<160x128xf32, #tpu.memory_space<vmem>>, vector<1x32xf32>
    %184 = vector.broadcast %183 : vector<1x32xf32> to vector<16x32xf32>
    %185 = arith.addf %182, %184 : vector<16x32xf32>
    %186 = vector.extract_strided_slice %185 {offsets = [0, 0], sizes = [16, 16], strides = [1, 1]} : vector<16x32xf32> to vector<16x16xf32>
    %187 = vector.extract_strided_slice %185 {offsets = [0, 16], sizes = [16, 16], strides = [1, 1]} : vector<16x32xf32> to vector<16x16xf32>
    %188 = vector.shape_cast %178 : vector<16x16xf32> to vector<16x16x1xf32>
    %cst_60 = arith.constant 5.000000e-01 : f32
    %189 = vector.broadcast %cst_60 : f32 to vector<16x16x1xf32>
    %190 = arith.cmpf ogt, %188, %189 : vector<16x16x1xf32>
    %191 = vector.shape_cast %187 : vector<16x16xf32> to vector<16x1x16xf32>
    %cst_61 = arith.constant -1.000000e+30 : f32
    %192 = vector.shape_cast %190 : vector<16x16x1xi1> to vector<16x16x1xi1>
    %193 = vector.broadcast %192 : vector<16x16x1xi1> to vector<16x16x16xi1>
    %194 = vector.shape_cast %191 : vector<16x1x16xf32> to vector<16x1x16xf32>
    %195 = vector.broadcast %194 : vector<16x1x16xf32> to vector<16x16x16xf32>
    %196 = vector.broadcast %cst_61 : f32 to vector<16x16x16xf32>
    %197 = arith.select %193, %195, %196 : vector<16x16x16xi1>, vector<16x16x16xf32>
    %cst_62 = arith.constant dense<0xFF800000> : vector<16x16xf32>
    %198 = vector.multi_reduction <maximumf>, %197, %cst_62 [0] : vector<16x16x16xf32> to vector<16x16xf32>
    %cst_63 = arith.constant 5.000000e-01 : f32
    %199 = vector.broadcast %cst_63 : f32 to vector<16x1xf32>
    %200 = arith.cmpf ogt, %180, %199 : vector<16x1xf32>
    %201 = arith.addf %186, %198 : vector<16x16xf32>
    %cst_64 = arith.constant 0.000000e+00 : f32
    %202 = vector.shape_cast %200 : vector<16x1xi1> to vector<16x1xi1>
    %203 = vector.broadcast %202 : vector<16x1xi1> to vector<16x16xi1>
    %204 = vector.broadcast %cst_64 : f32 to vector<16x16xf32>
    %205 = arith.select %203, %201, %204 : vector<16x16xi1>, vector<16x16xf32>
    %cst_65 = arith.constant 0.000000e+00 : f32
    %206 = vector.broadcast %cst_65 : f32 to vector<16x16xf32>
    %207 = arith.maximumf %205, %206 : vector<16x16xf32>
    %208 = vector.broadcast %172 : vector<16x1xf32> to vector<16x16xf32>
    %209 = arith.mulf %207, %208 : vector<16x16xf32>
    %c80 = arith.constant 80 : index
    %c0_66 = arith.constant 0 : index
    %210 = vector.load %arg2[%c80, %c0_66] : memref<160x128xf32, #tpu.memory_space<vmem>>, vector<16x16xf32>
    %c96 = arith.constant 96 : index
    %c0_67 = arith.constant 0 : index
    %211 = vector.load %arg2[%c96, %c0_67] : memref<160x128xf32, #tpu.memory_space<vmem>>, vector<16x16xf32>
    %cst_68 = arith.constant dense<0.000000e+00> : vector<16x16xf32>
    %212 = tpu.matmul %122, %210, %cst_68 {dimension_numbers = #tpu.dot_dimension_numbers<[1], [0], [0], [1], [0, 0, 1, 1], [], []>} : vector<16x16xf32>, vector<16x16xf32>, vector<16x16xf32> -> vector<16x16xf32>
    %cst_69 = arith.constant dense<0.000000e+00> : vector<16x16xf32>
    %213 = tpu.matmul %209, %211, %cst_69 {dimension_numbers = #tpu.dot_dimension_numbers<[1], [0], [0], [1], [0, 0, 1, 1], [], []>} : vector<16x16xf32>, vector<16x16xf32>, vector<16x16xf32> -> vector<16x16xf32>
    %214 = arith.addf %212, %213 : vector<16x16xf32>
    %c112 = arith.constant 112 : index
    %c0_70 = arith.constant 0 : index
    %215 = vector.load %arg2[%c112, %c0_70] : memref<160x128xf32, #tpu.memory_space<vmem>>, vector<1x16xf32>
    %216 = vector.broadcast %215 : vector<1x16xf32> to vector<16x16xf32>
    %217 = arith.addf %214, %216 : vector<16x16xf32>
    %218 = vector.extract_strided_slice %217 {offsets = [0, 0], sizes = [16, 8], strides = [1, 1]} : vector<16x16xf32> to vector<16x8xf32>
    %219 = vector.extract_strided_slice %217 {offsets = [0, 8], sizes = [16, 8], strides = [1, 1]} : vector<16x16xf32> to vector<16x8xf32>
    %220 = vector.shape_cast %91 : vector<16x16xf32> to vector<16x16x1xf32>
    %cst_71 = arith.constant 5.000000e-01 : f32
    %221 = vector.broadcast %cst_71 : f32 to vector<16x16x1xf32>
    %222 = arith.cmpf ogt, %220, %221 : vector<16x16x1xf32>
    %223 = vector.shape_cast %219 : vector<16x8xf32> to vector<16x1x8xf32>
    %cst_72 = arith.constant -1.000000e+30 : f32
    %224 = vector.shape_cast %222 : vector<16x16x1xi1> to vector<16x16x1xi1>
    %225 = vector.broadcast %224 : vector<16x16x1xi1> to vector<16x16x8xi1>
    %226 = vector.shape_cast %223 : vector<16x1x8xf32> to vector<16x1x8xf32>
    %227 = vector.broadcast %226 : vector<16x1x8xf32> to vector<16x16x8xf32>
    %228 = vector.broadcast %cst_72 : f32 to vector<16x16x8xf32>
    %229 = arith.select %225, %227, %228 : vector<16x16x8xi1>, vector<16x16x8xf32>
    %cst_73 = arith.constant dense<0xFF800000> : vector<16x8xf32>
    %230 = vector.multi_reduction <maximumf>, %229, %cst_73 [0] : vector<16x16x8xf32> to vector<16x8xf32>
    %cst_74 = arith.constant 5.000000e-01 : f32
    %231 = vector.broadcast %cst_74 : f32 to vector<16x1xf32>
    %232 = arith.cmpf ogt, %93, %231 : vector<16x1xf32>
    %233 = arith.addf %218, %230 : vector<16x8xf32>
    %cst_75 = arith.constant 0.000000e+00 : f32
    %234 = vector.shape_cast %232 : vector<16x1xi1> to vector<16x1xi1>
    %235 = vector.broadcast %234 : vector<16x1xi1> to vector<16x8xi1>
    %236 = vector.broadcast %cst_75 : f32 to vector<16x8xf32>
    %237 = arith.select %235, %233, %236 : vector<16x8xi1>, vector<16x8xf32>
    %cst_76 = arith.constant 0.000000e+00 : f32
    %238 = vector.broadcast %cst_76 : f32 to vector<16x8xf32>
    %239 = arith.maximumf %237, %238 : vector<16x8xf32>
    %240 = vector.broadcast %85 : vector<16x1xf32> to vector<16x8xf32>
    %241 = arith.mulf %239, %240 : vector<16x8xf32>
    %c120 = arith.constant 120 : index
    %c0_77 = arith.constant 0 : index
    %242 = vector.load %arg2[%c120, %c0_77] : memref<160x128xf32, #tpu.memory_space<vmem>>, vector<8x16xf32>
    %c128 = arith.constant 128 : index
    %c0_78 = arith.constant 0 : index
    %243 = vector.load %arg2[%c128, %c0_78] : memref<160x128xf32, #tpu.memory_space<vmem>>, vector<8x16xf32>
    %cst_79 = arith.constant dense<0.000000e+00> : vector<16x16xf32>
    %244 = tpu.matmul %35, %242, %cst_79 {dimension_numbers = #tpu.dot_dimension_numbers<[1], [0], [0], [1], [0, 0, 1, 1], [], []>} : vector<16x8xf32>, vector<8x16xf32>, vector<16x16xf32> -> vector<16x16xf32>
    %cst_80 = arith.constant dense<0.000000e+00> : vector<16x16xf32>
    %245 = tpu.matmul %241, %243, %cst_80 {dimension_numbers = #tpu.dot_dimension_numbers<[1], [0], [0], [1], [0, 0, 1, 1], [], []>} : vector<16x8xf32>, vector<8x16xf32>, vector<16x16xf32> -> vector<16x16xf32>
    %246 = arith.addf %244, %245 : vector<16x16xf32>
    %c136 = arith.constant 136 : index
    %c0_81 = arith.constant 0 : index
    %247 = vector.load %arg2[%c136, %c0_81] : memref<160x128xf32, #tpu.memory_space<vmem>>, vector<1x16xf32>
    %248 = vector.broadcast %247 : vector<1x16xf32> to vector<16x16xf32>
    %249 = arith.addf %246, %248 : vector<16x16xf32>
    %250 = vector.extract_strided_slice %249 {offsets = [0, 0], sizes = [16, 8], strides = [1, 1]} : vector<16x16xf32> to vector<16x8xf32>
    %251 = vector.extract_strided_slice %249 {offsets = [0, 8], sizes = [16, 8], strides = [1, 1]} : vector<16x16xf32> to vector<16x8xf32>
    %252 = vector.shape_cast %5 : vector<16x16xf32> to vector<16x16x1xf32>
    %cst_82 = arith.constant 5.000000e-01 : f32
    %253 = vector.broadcast %cst_82 : f32 to vector<16x16x1xf32>
    %254 = arith.cmpf ogt, %252, %253 : vector<16x16x1xf32>
    %255 = vector.shape_cast %251 : vector<16x8xf32> to vector<16x1x8xf32>
    %cst_83 = arith.constant -1.000000e+30 : f32
    %256 = vector.shape_cast %254 : vector<16x16x1xi1> to vector<16x16x1xi1>
    %257 = vector.broadcast %256 : vector<16x16x1xi1> to vector<16x16x8xi1>
    %258 = vector.shape_cast %255 : vector<16x1x8xf32> to vector<16x1x8xf32>
    %259 = vector.broadcast %258 : vector<16x1x8xf32> to vector<16x16x8xf32>
    %260 = vector.broadcast %cst_83 : f32 to vector<16x16x8xf32>
    %261 = arith.select %257, %259, %260 : vector<16x16x8xi1>, vector<16x16x8xf32>
    %cst_84 = arith.constant dense<0xFF800000> : vector<16x8xf32>
    %262 = vector.multi_reduction <maximumf>, %261, %cst_84 [0] : vector<16x16x8xf32> to vector<16x8xf32>
    %cst_85 = arith.constant 5.000000e-01 : f32
    %263 = vector.broadcast %cst_85 : f32 to vector<16x1xf32>
    %264 = arith.cmpf ogt, %8, %263 : vector<16x1xf32>
    %265 = arith.addf %250, %262 : vector<16x8xf32>
    %cst_86 = arith.constant 0.000000e+00 : f32
    %266 = vector.shape_cast %264 : vector<16x1xi1> to vector<16x1xi1>
    %267 = vector.broadcast %266 : vector<16x1xi1> to vector<16x8xi1>
    %268 = vector.broadcast %cst_86 : f32 to vector<16x8xf32>
    %269 = arith.select %267, %265, %268 : vector<16x8xi1>, vector<16x8xf32>
    %c144 = arith.constant 144 : index
    %c0_87 = arith.constant 0 : index
    %270 = vector.load %arg2[%c144, %c0_87] : memref<160x128xf32, #tpu.memory_space<vmem>>, vector<8x128xf32>
    %cst_88 = arith.constant dense<0.000000e+00> : vector<16x128xf32>
    %271 = tpu.matmul %269, %270, %cst_88 {dimension_numbers = #tpu.dot_dimension_numbers<[1], [0], [0], [1], [0, 0, 1, 1], [], []>} : vector<16x8xf32>, vector<8x128xf32>, vector<16x128xf32> -> vector<16x128xf32>
    %c152 = arith.constant 152 : index
    %c0_89 = arith.constant 0 : index
    %272 = vector.load %arg2[%c152, %c0_89] : memref<160x128xf32, #tpu.memory_space<vmem>>, vector<1x128xf32>
    %273 = vector.broadcast %272 : vector<1x128xf32> to vector<16x128xf32>
    %274 = arith.addf %271, %273 : vector<16x128xf32>
    %c0_90 = arith.constant 0 : index
    %c0_91 = arith.constant 0 : index
    %275 = vector.load %arg3[%c0_90, %c0_91] : memref<16x128xf32, #tpu.memory_space<vmem>>, vector<16x128xf32>
    tpu.vector_store %arg3[%c0_90, %c0_91], %274 {strides = array<i32>} : memref<16x128xf32, #tpu.memory_space<vmem>>, vector<16x128xf32>,
    return
  }
}

</mosaic_0001>

<bundles_post_ra>
// kernel: tpu_custom_call.1
= control target key start
LH: loop header
LB: loop body
LE: loop exit
PB: predicated region body
PF: predicated region fallthrough
CT: control target
= control target key end

     0   :  { %8 = vsyncpa [#allocation3], 0  ;;  %s5321_s0 = inlined_call_operand.vmem [shape: f32[16,4], index: 0, kind: input, shape index: {}]   ;;  %s5322_s1 = inlined_call_operand.vmem [shape: bf16[16,16], index: 1, kind: input, shape index: {}]   ;;  %s5323_s2 = inlined_call_operand.hbm [shape: f32[160,128], index: 2, kind: input, shape index: {}]   ;;  %s5324_s3 = inlined_call_operand.hbm [shape: f32[16,128], index: 3, kind: output, shape index: {}]  }
   0x1   :  { %9 = vsyncpa [#allocation4], 0  ;;  %s3735_s12 = smov [#allocation2]  }
   0x2   :  { %s19_s13 = sshll.u32 %s3735_s12, 4  ;;  %s20_s13 = int_to_ptr.vmem [resolvable:$true] %s19_s13 }
   0x3   :  { %s3699_s14 = scalar_lea.vmem %s20_s13, 2560  ;;  %p3704_p1 = scmp.lt.s32.totalorder %s20_s13, %s20_s13 }
   0x4   :  { %p3700_p0 = scmp.ne.s32.totalorder %s20_s13, %s3699_s14  ;;  %p3705_p2 = scmp.lt.s32.totalorder %s3699_s14, %s3699_s14 }
   0x6   :  { %p3706_p3 = por %p3705_p2, %p3704_p1 }
   0x8   :  { %p3707_p4 = pnand %p3706_p3, %p3700_p0 }
   0xa   :  { %3710 = shalt.err (!%p3707_p4)
}
   0xb   :  { %s3736_s15 = smov 128   ;;  %s3737_s16 = smov 8  }
   0xc   :  { %25 = dma.hbm_to_vmem [thread:$0]  %s5323_s2, 2560, %s20_s13, [#allocation3], %s3736_s15, %s3736_s15, %s3737_s16  }
   0xd   :  { %3731 = dma.done.wait [#allocation3], 2560  }
   0xe   :  { %3732 = vsyncadd [#allocation3], 4294964736  ;;  %v5325_v0 = vlaneseq  ;;  %vm262_vm0 = vcmask 1043456   ;;  %vm255_vm1 = vcmask 31744   ;;  %v249_v2 = vld [vmem:[#allocation2] sm:$0xf] }
   0xf   :  { %v37_v3 = vld [vmem:[%s5321_s0] sm:$0xff]  ;;  %v38_v4 = vld [vmem:[%s5321_s0 + $0x8] sm:$0xff]  ;;  %3601 = vmatprep.subr.msk.mxu0 %vm262_vm0, %v249_v2  ;;  %vm5404_vm2 = vcmask 130112   ;;  %s3739_s0 = smov 120   ;;  %s3744_s24 = smov [#allocation5]  }
  0x10   :  { %v3772_v1 = vshrl.u32 %v5325_v0, 7  ;;  %3603 = vmatprep.mubr.msk.f32.mxu0 %vm255_vm1, %v37_v3  ;;  %v3560_v7 = vld [vmem:[%s5322_s1] sm:$0xff]   ;;  %3602 = vmatpush3.msk.msra.mxu0 %vm262_vm0, %v249_v2  ;;  %s3743_s1 = smov 112   ;;  %s3514_s25 = sshll.u32 %s3744_s24, 4  ;;  %s3515_s25 = int_to_ptr.vmem [resolvable:$true] %s3514_s25 }
  0x11   :  { %v3789_v8 = vunpack.c.l.bf16 %v3560_v7  ;;  %3604 = vmatmul.mubr.msk.f32.vlgmr.msra.gmra.mxu0 %vm255_vm1, %v38_v4  ;;  %v3825_v23 = vunpack.c.h.bf16 %v3560_v7  ;;  %s3711_s26 = scalar_lea.vmem %s3515_s25, 256  ;;  %p3716_p6 = scmp.lt.s32.totalorder %s3515_s25, %s3515_s25 }
  0x12   :  { %5479 = vst [vmem:[#allocation8_spill] sm:$0xff] %v3772_v1  ;;  %v3781_v5 = vsub.s32 0, %v3772_v1  ;;  %v3784_v6 = vsub.s32 2, %v3772_v1  ;;  %v3792_v9 = vsub.s32 3, %v3772_v1  ;;  %v3795_v10 = vsub.s32 1, %v3772_v1  ;;  %p3712_p5 = scmp.ne.s32.totalorder %s3515_s25, %s3711_s26  ;;  %p3717_p7 = scmp.lt.s32.totalorder %s3711_s26, %s3711_s26 }
  0x13   :  { %v3806_v15 = vsub.s32 5, %v3772_v1  ;;  %v3809_v16 = vsub.s32 4, %v3772_v1  ;;  %v3816_v19 = vsub.s32 7, %v3772_v1  ;;  %v3819_v20 = vsub.s32 6, %v3772_v1 }
  0x14   :  { %5480 = vst [vmem:[#allocation9_spill] sm:$0xff] %v3784_v6  ;;  %5481 = vst [vmem:[#allocation10_spill] sm:$0xff] %v3792_v9  ;;  %v68_v11 = vrot.slane %v3789_v8, %v3784_v6  ;;  %v46_v12 = vrot.slane %v3789_v8, %v3781_v5  ;;  %v79_v13 = vrot.slane %v3789_v8, %v3792_v9  ;;  %p3718_p8 = por %p3717_p7, %p3716_p6 }
  0x15   :  { %5482 = vst [vmem:[#allocation11_spill] sm:$0xff] %v3795_v10  ;;  %v57_v14 = vrot.slane %v3789_v8, %v3795_v10  ;;  %5483 = vst [vmem:[#allocation12_spill] sm:$0xff] %v3806_v15  ;;  %v101_v17 = vrot.slane %v3789_v8, %v3806_v15  ;;  %v90_v18 = vrot.slane %v3789_v8, %v3809_v16 }
  0x16   :  { %70 = vbcast.lane.b32.xlu1 %v68_v11, 256  ;;  %48 = vbcast.lane.b32.xlu0 %v46_v12, 256  ;;  %5484 = vst [vmem:[#allocation13_spill] sm:$0xff] %v3809_v16  ;;  %5485 = vst [vmem:[#allocation14_spill] sm:$0xff] %v3816_v19  ;;  %v123_v21 = vrot.slane %v3789_v8, %v3816_v19  ;;  %v112_v22 = vrot.slane %v3789_v8, %v3819_v20  ;;  %p3719_p9 = pnand %p3718_p8, %p3712_p5 }
  0x17   :  { %5486 = vst [vmem:[#allocation15_spill] sm:$0xff] %v3819_v20  ;;  %v145_v24 = vrot.slane %v3825_v23, %v3795_v10  ;;  %v134_v25 = vrot.slane %v3825_v23, %v3781_v5  ;;  %v167_v26 = vrot.slane %v3825_v23, %v3792_v9  ;;  %v156_v27 = vrot.slane %v3825_v23, %v3784_v6 }
  0x18   :  { %v189_v28 = vrot.slane %v3825_v23, %v3806_v15  ;;  %v178_v29 = vrot.slane %v3825_v23, %v3809_v16  ;;  %v211_v30 = vrot.slane %v3825_v23, %v3816_v19  ;;  %v200_v31 = vrot.slane %v3825_v23, %v3819_v20 }
  0x1a   :  { %81 = vbcast.lane.b32.xlu1 %v79_v13, 256  ;;  %59 = vbcast.lane.b32.xlu0 %v57_v14, 256 }
  0x1e   :  { %63 = vbcast.lane.b32.xlu1 %v57_v14, 264  ;;  %52 = vbcast.lane.b32.xlu0 %v46_v12, 264 }
  0x22   :  { %85 = vbcast.lane.b32.xlu1 %v79_v13, 264  ;;  %74 = vbcast.lane.b32.xlu0 %v68_v11, 264 }
  0x26   :  { %103 = vbcast.lane.b32.xlu1 %v101_v17, 256  ;;  %92 = vbcast.lane.b32.xlu0 %v90_v18, 256 }
  0x2a   :  { %107 = vbcast.lane.b32.xlu1 %v101_v17, 264  ;;  %96 = vbcast.lane.b32.xlu0 %v90_v18, 264 }
  0x2e   :  { %125 = vbcast.lane.b32.xlu1 %v123_v21, 256  ;;  %114 = vbcast.lane.b32.xlu0 %v112_v22, 256 }
  0x32   :  { %129 = vbcast.lane.b32.xlu1 %v123_v21, 264  ;;  %118 = vbcast.lane.b32.xlu0 %v112_v22, 264 }
  0x36   :  { %147 = vbcast.lane.b32.xlu1 %v145_v24, 256  ;;  %136 = vbcast.lane.b32.xlu0 %v134_v25, 256 }
  0x3a   :  { %151 = vbcast.lane.b32.xlu1 %v145_v24, 264  ;;  %140 = vbcast.lane.b32.xlu0 %v134_v25, 264 }
  0x3e   :  { %169 = vbcast.lane.b32.xlu1 %v167_v26, 256  ;;  %158 = vbcast.lane.b32.xlu0 %v156_v27, 256 }
  0x42   :  { %173 = vbcast.lane.b32.xlu1 %v167_v26, 264  ;;  %162 = vbcast.lane.b32.xlu0 %v156_v27, 264 }
  0x46   :  { %191 = vbcast.lane.b32.xlu1 %v189_v28, 256  ;;  %180 = vbcast.lane.b32.xlu0 %v178_v29, 256 }
  0x4a   :  { %195 = vbcast.lane.b32.xlu1 %v189_v28, 264  ;;  %184 = vbcast.lane.b32.xlu0 %v178_v29, 264 }
  0x4e   :  { %213 = vbcast.lane.b32.xlu1 %v211_v30, 256  ;;  %202 = vbcast.lane.b32.xlu0 %v200_v31, 256 }
  0x52   :  { %217 = vbcast.lane.b32.xlu1 %v211_v30, 264  ;;  %206 = vbcast.lane.b32.xlu0 %v200_v31, 264 }
  0x88   :  { %v3843_v32 = vpop.permute.xlu1 %70  ;;  %v3845_v33 = vpop.permute.xlu0 %48 }
  0x89   :  { %5487 = vst [vmem:[#allocation16_spill] sm:$0xff] %v3843_v32  ;;  %5488 = vst [vmem:[#allocation17_spill] sm:$0xff] %v3845_v33  ;;  %v219_v48 = vmax.f32 %v3845_v33, %v3843_v32  ;;  %vm5343_vm3 = vcmp.gt.f32.partialorder %v3845_v33, 0.5  ;;  %vm5358_vm4 = vcmp.gt.f32.partialorder %v3843_v32, 0.5 }
  0x8c   :  { %v3847_v34 = vpop.permute.xlu1 %81  ;;  %v3849_v35 = vpop.permute.xlu0 %59 }
  0x8d   :  { %5489 = vst [vmem:[#allocation18_spill] sm:$0xff] %v3847_v34  ;;  %5490 = vst [vmem:[#allocation19_spill] sm:$0xff] %v3849_v35  ;;  %v220_v49 = vmax.f32 %v3849_v35, %v3847_v34  ;;  %vm5350_vm5 = vcmp.gt.f32.partialorder %v3847_v34, 0.5  ;;  %vm5346_vm6 = vcmp.gt.f32.partialorder %v3849_v35, 0.5 }
  0x90   :  { %v3851_v36 = vpop.permute.xlu1 %63  ;;  %v3853_v37 = vpop.permute.xlu0 %52 }
  0x91   :  { %5491 = vst [vmem:[#allocation20_spill] sm:$0xff] %v3851_v36  ;;  %5492 = vst [vmem:[#allocation21_spill] sm:$0xff] %v3853_v37  ;;  %vm5344_vm7 = vcmp.gt.f32.partialorder %v3853_v37, 0.5  ;;  %vm5373_vm11 = vcmp.gt.f32.partialorder %v3851_v36, 0.5 }
  0x94   :  { %v3855_v38 = vpop.permute.xlu1 %85  ;;  %v3857_v39 = vpop.permute.xlu0 %74 }
  0x95   :  { %5493 = vst [vmem:[#allocation22_spill] sm:$0xff] %v3855_v38  ;;  %5494 = vst [vmem:[#allocation23_spill] sm:$0xff] %v3857_v39  ;;  %v235_v52 = vmax.f32 %v3851_v36, %v3855_v38  ;;  %v234_v53 = vmax.f32 %v3853_v37, %v3857_v39  ;;  %vm5351_vm13 = vcmp.gt.f32.partialorder %v3857_v39, 0.5 }
  0x98   :  { %v3859_v40 = vpop.permute.xlu1 %103  ;;  %v3861_v41 = vpop.permute.xlu0 %92 }
  0x99   :  { %5495 = vst [vmem:[#allocation24_spill] sm:$0xff] %v3859_v40  ;;  %5496 = vst [vmem:[#allocation25_spill] sm:$0xff] %v3861_v41  ;;  %v222_v54 = vmax.f32 %v220_v49, %v3859_v40  ;;  %v221_v55 = vmax.f32 %v219_v48, %v3861_v41  ;;  %vm5357_vm0 = vcmp.gt.f32.partialorder %v3861_v41, 0.5 }
  0x9c   :  { %v3863_v42 = vpop.permute.xlu1 %107  ;;  %v3865_v43 = vpop.permute.xlu0 %96 }
  0x9d   :  { %5497 = vst [vmem:[#allocation26_spill] sm:$0xff] %v3863_v42  ;;  %5498 = vst [vmem:[#allocation27_spill] sm:$0xff] %v3865_v43  ;;  %v237_v58 = vmax.f32 %v235_v52, %v3863_v42  ;;  %v236_v59 = vmax.f32 %v234_v53, %v3865_v43  ;;  %vm5356_vm1 = vcmp.gt.f32.partialorder %v3865_v43, 0.5 }
  0xa0   :  { %v3867_v44 = vpop.permute.xlu1 %125  ;;  %v3869_v45 = vpop.permute.xlu0 %114 }
  0xa1   :  { %5499 = vst [vmem:[#allocation28_spill] sm:$0xff] %v3867_v44  ;;  %5500 = vst [vmem:[#allocation29_spill] sm:$0xff] %v3869_v45  ;;  %v224_v60 = vmax.f32 %v222_v54, %v3867_v44  ;;  %v223_v61 = vmax.f32 %v221_v55, %v3869_v45 }
  0xa4   :  { %v3871_v46 = vpop.permute.xlu1 %129  ;;  %v3873_v47 = vpop.permute.xlu0 %118 }
  0xa5   :  { %5501 = vst [vmem:[#allocation30_spill] sm:$0xff] %v3871_v46  ;;  %5502 = vst [vmem:[#allocation31_spill] sm:$0xff] %v3873_v47  ;;  %v239_v2 = vmax.f32 %v237_v58, %v3871_v46  ;;  %v238_v3 = vmax.f32 %v236_v59, %v3873_v47 }
  0xa8   :  { %v3879_v50 = vpop.permute.xlu1 %147  ;;  %v3881_v51 = vpop.permute.xlu0 %136 }
  0xa9   :  { %5503 = vst [vmem:[#allocation32_spill] sm:$0xff] %v3879_v50  ;;  %5504 = vst [vmem:[#allocation33_spill] sm:$0xff] %v3881_v51  ;;  %v226_v4 = vmax.f32 %v224_v60, %v3879_v50  ;;  %v225_v7 = vmax.f32 %v223_v61, %v3881_v51  ;;  %vm5339_vm8 = vcmp.gt.f32.partialorder %v3879_v50, 0.5  ;;  %vm5335_vm9 = vcmp.gt.f32.partialorder %v3881_v51, 0.5 }
  0xac   :  { %v3889_v56 = vpop.permute.xlu1 %151  ;;  %v3891_v57 = vpop.permute.xlu0 %140 }
  0xad   :  { %5505 = vst [vmem:[#allocation34_spill] sm:$0xff] %v3889_v56  ;;  %5506 = vst [vmem:[#allocation35_spill] sm:$0xff] %v3891_v57  ;;  %v241_v13 = vmax.f32 %v239_v2, %v3889_v56  ;;  %v240_v14 = vmax.f32 %v238_v3, %v3891_v57  ;;  %v3738_v2 = vmov 1966171168   ;;  %vm5338_vm10 = vcmp.gt.f32.partialorder %v3889_v56, 0.5 }
  0xae   :  { %v377_v3 = vunpack.c.l.s4 %v3738_v2  ;;  %vm5336_vm14 = vcmp.gt.f32.partialorder %v3891_v57, 0.5 }
  0xb0   :  { %v3897_v62 = vpop.permute.xlu1 %169  ;;  %v3899_v63 = vpop.permute.xlu0 %158 }
  0xb1   :  { %5507 = vst [vmem:[#allocation36_spill] sm:$0xff] %v3897_v62  ;;  %5508 = vst [vmem:[#allocation37_spill] sm:$0xff] %v3899_v63  ;;  %v228_v17 = vmax.f32 %v226_v4, %v3897_v62  ;;  %v227_v18 = vmax.f32 %v225_v7, %v3899_v63  ;;  %v378_v4 = vunpack.c.0.s8 %v377_v3  ;;  %v3526_v7 = vld [vmem:[#allocation2 + $0x8] ss:$0 sm:$0xff] }
  0xb4   :  { %v3905_v11 = vpop.permute.xlu1 %173  ;;  %v3907_v12 = vpop.permute.xlu0 %162 }
  0xb5   :  { %5509 = vst [vmem:[#allocation38_spill] sm:$0xff] %v3905_v11  ;;  %5510 = vst [vmem:[#allocation39_spill] sm:$0xff] %v3907_v12  ;;  %v243_v24 = vmax.f32 %v241_v13, %v3905_v11  ;;  %v242_v25 = vmax.f32 %v240_v14, %v3907_v12  ;;  %v3944_v13 = vsub.s32 %v378_v4, %v3772_v1  ;;  %vm5374_vm15 = vcmp.gt.f32.partialorder %v3907_v12, 0.5 }
  0xb7   :  { %5521 = vst [vmem:[#allocation50_spill] sm:$0xff] %v3944_v13 }
  0xb8   :  { %v3913_v21 = vpop.permute.xlu1 %191  ;;  %v3915_v22 = vpop.permute.xlu0 %180 }
  0xb9   :  { %5511 = vst [vmem:[#allocation40_spill] sm:$0xff] %v3913_v21  ;;  %5512 = vst [vmem:[#allocation41_spill] sm:$0xff] %v3915_v22  ;;  %v230_v26 = vmax.f32 %v228_v17, %v3913_v21  ;;  %v229_v27 = vmax.f32 %v227_v18, %v3915_v22 }
  0xbc   :  { %v3921_v28 = vpop.permute.xlu1 %195  ;;  %v3923_v29 = vpop.permute.xlu0 %184 }
  0xbd   :  { %5513 = vst [vmem:[#allocation42_spill] sm:$0xff] %v3921_v28  ;;  %5514 = vst [vmem:[#allocation43_spill] sm:$0xff] %v3923_v29  ;;  %v245_v30 = vmax.f32 %v243_v24, %v3921_v28  ;;  %v244_v31 = vmax.f32 %v242_v25, %v3923_v29 }
  0xc0   :  { %v3927_v48 = vpop.permute.xlu1 %213  ;;  %v3929_v49 = vpop.permute.xlu0 %202 }
  0xc1   :  { %5515 = vst [vmem:[#allocation44_spill] sm:$0xff] %v3927_v48  ;;  %5516 = vst [vmem:[#allocation45_spill] sm:$0xff] %v3929_v49  ;;  %v232_v52 = vmax.f32 %v230_v26, %v3927_v48  ;;  %v231_v53 = vmax.f32 %v229_v27, %v3929_v49 }
  0xc3   :  { %v3933_v54 = vmax.f32 %v231_v53, %v232_v52 }
  0xc4   :  { %v3935_v55 = vpop.permute.xlu1 %217  ;;  %v3937_v58 = vpop.permute.xlu0 %206 }
  0xc5   :  { %5517 = vst [vmem:[#allocation46_spill] sm:$0xff] %v3933_v54  ;;  %5518 = vst [vmem:[#allocation47_spill] sm:$0xff] %v3935_v55  ;;  %v247_v59 = vmax.f32 %v245_v30, %v3935_v55  ;;  %v246_v60 = vmax.f32 %v244_v31, %v3937_v58  ;;  %vm5368_vm12 = vcmp.gt.f32.partialorder %v3937_v58, 0.5 }
  0xc6   :  { %5519 = vst [vmem:[#allocation48_spill] sm:$0xff] %v3937_v58 }
  0xc7   :  { %v3941_v61 = vmax.f32 %v246_v60, %v247_v59 }
  0xc9   :  { %5520 = vst [vmem:[#allocation49_spill] sm:$0xff] %v3941_v61 }
  0xd1   :  { %v3605_v14 = vpop.f32.mrf.mxu0 }
  0xd2   :  { %v3946_v17 = vadd.f32 %v3605_v14, %v3526_v7 }
  0xd3   :  { %v332_v18 = vpop.f32.mrf.mxu0 }
  0xd4   :  { %v424_v24 = vcombine.high %v3946_v17, %v3946_v17  ;;  %v431_v25 = vrot.slane %v3946_v17, %v3944_v13  ;;  %v3952_v26 = vadd.f32 %v3526_v7, %v332_v18 }
  0xd6   :  { %v438_v27 = vrot.slane %v424_v24, %v3944_v13  ;;  %v439_v30 = vcombine.high %v431_v25, %v431_v25  ;;  %v447_v31 = vrot.slane %v431_v25, %v3944_v13  ;;  %v375_v52 = vcombine.high %v3952_v26, %v3952_v26 }
  0xd7   :  { %v382_v53 = vrot.slane %v3952_v26, %v3944_v13 }
  0xd8   :  { %v440_v59 = vcombine.high %v438_v27, %v438_v27  ;;  %v3961_v60 = vrot.slane %v438_v27, %v3944_v13  ;;  %v461_v2 = vrot.slane %v439_v30, %v3944_v13  ;;  %v389_v3 = vrot.slane %v375_v52, %v3944_v13 }
  0xd9   :  { %v390_v4 = vcombine.high %v382_v53, %v382_v53  ;;  %v469_v7 = vcombine.high %v447_v31, %v447_v31  ;;  %v572_v14 = vrot.slane %v447_v31, %v3781_v5  ;;  %v398_v18 = vrot.slane %v382_v53, %v3944_v13 }
  0xda   :  { %v468_v24 = vrot.slane %v440_v59, %v3944_v13  ;;  %v470_v25 = vcombine.high %v3961_v60, %v3961_v60  ;;  %v471_v27 = vcombine.high %v461_v2, %v461_v2  ;;  %v576_v30 = vrot.slane %v461_v2, %v3781_v5 }
  0xdb   :  { %v391_v31 = vcombine.high %v389_v3, %v389_v3  ;;  %v405_v52 = vrot.slane %v389_v3, %v3944_v13  ;;  %v412_v53 = vrot.slane %v390_v4, %v3944_v13  ;;  %v3990_v59 = vrot.slane %v469_v7, %v3781_v5 }
  0xdc   :  { %v3994_v0 = vrot.slane %v3961_v60, %v3781_v5  ;;  %v633_v20 = vsel %vm5335_vm9, %v572_v14, -1e+30  ;;  %v420_v19 = vcombine.high %v398_v18, %v398_v18  ;;  %v634_v2 = vsel %vm5336_vm14, %v572_v14, -1e+30 }
  0xdd   :  { %v419_v3 = vrot.slane %v391_v31, %v3944_v13  ;;  %v422_v16 = vcombine.high %v412_v53, %v412_v53  ;;  %v540_v4 = vrot.slane %v398_v18, %v3781_v5  ;;  %v4004_v7 = vrot.slane %v471_v27, %v3781_v5 }
  0xde   :  { %v421_v15 = vcombine.high %v405_v52, %v405_v52  ;;  %v544_v60 = vrot.slane %v412_v53, %v3781_v5  ;;  %v548_v51 = vrot.slane %v420_v19, %v3781_v5  ;;  %vm5359_vm9 = vcmp.gt.f32.partialorder %v3871_v46, 0.5 }
  0xdf   :  { %v4011_v14 = vsel %vm5339_vm8, %v576_v30, -1e+30  ;;  %v4015_v31 = vsel %vm5338_vm10, %v576_v30, -1e+30  ;;  %v4018_v18 = vsel %vm5404_vm2, %v633_v20, -inf  ;;  %v552_v27 = vrot.slane %v422_v16, %v3781_v5 }
  0xe0   :  { %vm5372_vm14 = vcmp.gt.f32.partialorder %v3869_v45, 0.5  ;;  %v4025_v19 = vsel %vm5404_vm2, %v634_v2, -inf  ;;  %v423_v53 = vcombine.high %v419_v3, %v419_v3  ;;  %v556_v50 = vrot.slane %v405_v52, %v3781_v5 }
  0xe1   :  { %v560_v30 = vrot.slane %v419_v3, %v3781_v5  ;;  %vm5369_vm10 = vcmp.gt.f32.partialorder %v3921_v28, 0.5  ;;  %vm5370_vm8 = vcmp.gt.f32.partialorder %v3923_v29, 0.5  ;;  %v617_v16 = vsel %vm5343_vm3, %v540_v4, -1e+30 }
  0xe2   :  { %v618_v20 = vsel %vm5344_vm7, %v540_v4, -1e+30  ;;  %v472_v56 = vcombine.high %v468_v24, %v468_v24  ;;  %v4036_v57 = vrot.slane %v468_v24, %v3781_v5  ;;  %v564_v52 = vrot.slane %v421_v15, %v3781_v5 }
  0xe3   :  { %v619_v2 = vsel %vm5346_vm6, %v544_v60, -1e+30  ;;  %v621_v3 = vsel %vm5358_vm4, %v548_v51, -1e+30  ;;  %v623_v33 = vsel %vm5350_vm5, %v552_v27, -1e+30  ;;  %v4054_v35 = vrot.slane %v470_v25, %v3781_v5 }
  0xe4   :  { %vm5367_vm3 = vcmp.gt.f32.partialorder %v3935_v55, 0.5  ;;  %v620_v4 = vsel %vm5373_vm11, %v544_v60, -1e+30  ;;  %v622_v24 = vsel %vm5351_vm13, %v548_v51, -1e+30  ;;  %vm5522_vm7 = vcmp.gt.f32.partialorder %v3855_v38, 0.5 }
  0xe5   :  { %v624_v15 = vsel %vm5522_vm7, %v552_v27, -1e+30  ;;  %vm5371_vm6 = vcmp.gt.f32.partialorder %v3867_v44, 0.5  ;;  %v568_v32 = vrot.slane %v423_v53, %v3781_v5  ;;  %v625_v34 = vsel %vm5357_vm0, %v556_v50, -1e+30 }
  0xe6   :  { %v626_v36 = vsel %vm5356_vm1, %v556_v50, -1e+30  ;;  %vm5523_vm5 = vcmp.gt.f32.partialorder %v3859_v40, 0.5  ;;  %vm5524_vm13 = vcmp.gt.f32.partialorder %v3863_v42, 0.5  ;;  %v652_v27 = vsel %vm5404_vm2, %v621_v3, -inf }
  0xe7   :  { %v627_v60 = vsel %vm5523_vm5, %v560_v30, -1e+30  ;;  %v628_v51 = vsel %vm5524_vm13, %v560_v30, -1e+30  ;;  %v654_v25 = vsel %vm5404_vm2, %v623_v33, -inf  ;;  %v4069_v38 = vrot.slane %v472_v56, %v3781_v5 }
  0xe8   :  { %v681_v53 = vsel %vm5404_vm2, %v618_v20, -inf  ;;  %v682_v41 = vsel %vm5404_vm2, %v620_v4, -inf  ;;  %v683_v43 = vsel %vm5404_vm2, %v622_v24, -inf  ;;  %v685_v50 = vsel %vm5404_vm2, %v624_v15, -inf }
  0xe9   :  { %vm5403_vm5 = vcmp.gt.f32.partialorder %v3899_v63, 0.5  ;;  %vm5525_vm7 = vcmp.gt.f32.partialorder %v3873_v47, 0.5  ;;  %v650_v3 = vsel %vm5404_vm2, %v617_v16, -inf  ;;  %v684_v42 = vmax.f32 %v681_v53, %v683_v43 }
  0xea   :  { %v630_v30 = vsel %vm5525_vm7, %v564_v52, -1e+30  ;;  %v686_v33 = vmax.f32 %v682_v41, %v685_v50  ;;  %vm5366_vm13 = vcmp.gt.f32.partialorder %v3897_v62, 0.5  ;;  %vm5364_vm1 = vcmp.gt.f32.partialorder %v3913_v21, 0.5 }
  0xeb   :  { %vm5365_vm0 = vcmp.gt.f32.partialorder %v3915_v22, 0.5  ;;  %v651_v56 = vsel %vm5404_vm2, %v619_v2, -inf  ;;  %v653_v20 = vmax.f32 %v650_v3, %v652_v27  ;;  %v687_v4 = vsel %vm5404_vm2, %v626_v36, -inf }
  0xec   :  { %v632_v24 = vsel %vm5359_vm9, %v568_v32, -1e+30  ;;  %v629_v15 = vsel %vm5372_vm14, %v564_v52, -1e+30  ;;  %v655_v16 = vmax.f32 %v651_v56, %v654_v25  ;;  %v688_v43 = vmax.f32 %v684_v42, %v687_v4 }
  0xed   :  { %v689_v41 = vsel %vm5404_vm2, %v628_v51, -inf  ;;  %vm5360_vm7 = vcmp.gt.f32.partialorder %v3927_v48, 0.5  ;;  %vm5361_vm4 = vcmp.gt.f32.partialorder %v3929_v49, 0.5  ;;  %v656_v53 = vsel %vm5404_vm2, %v625_v34, -inf }
  0xee   :  { %v658_v2 = vsel %vm5404_vm2, %v627_v60, -inf  ;;  %v690_v27 = vmax.f32 %v686_v33, %v689_v41  ;;  %v691_v36 = vsel %vm5404_vm2, %v630_v30, -inf  ;;  %v638_v50 = vsel %vm5374_vm15, %v3990_v59, -1e+30 }
  0xef   :  { %vm5526_vm9 = vcmp.gt.f32.partialorder %v3905_v11, 0.5  ;;  %v692_v52 = vmax.f32 %v688_v43, %v691_v36  ;;  %v693_v51 = vsel %vm5404_vm2, %v632_v24, -inf  ;;  %v657_v25 = vmax.f32 %v653_v20, %v656_v53 }
  0xf0   :  { %v640_v42 = vsel %vm5526_vm9, %v4004_v7, -1e+30  ;;  %v642_v34 = vsel %vm5370_vm8, %v3994_v0, -1e+30  ;;  %v644_v60 = vsel %vm5369_vm10, %v4036_v57, -1e+30  ;;  %v694_v30 = vmax.f32 %v690_v27, %v693_v51 }
  0xf1   :  { %v646_v3 = vsel %vm5368_vm12, %v4054_v35, -1e+30  ;;  %v696_v33 = vmax.f32 %v692_v52, %v4025_v19  ;;  %v697_v56 = vsel %vm5404_vm2, %v4015_v31, -inf  ;;  %v631_v20 = vsel %vm5371_vm6, %v568_v32, -1e+30 }
  0xf2   :  { %v648_v4 = vsel %vm5367_vm3, %v4069_v38, -1e+30  ;;  %v698_v24 = vmax.f32 %v694_v30, %v697_v56  ;;  %v699_v43 = vsel %vm5404_vm2, %v638_v50, -inf  ;;  %v701_v41 = vsel %vm5404_vm2, %v640_v42, -inf  ;;  %v786_v56 = vld [vmem:[#allocation2 + $0x38] sm:$0xff] }
  0xf3   :  { %v700_v53 = vmax.f32 %v696_v33, %v699_v43  ;;  %v703_v27 = vsel %vm5404_vm2, %v642_v34, -inf  ;;  %v705_v19 = vsel %vm5404_vm2, %v644_v60, -inf  ;;  %v659_v36 = vmax.f32 %v655_v16, %v658_v2  ;;  %3612 = vmatprep.subr.mxu0 %v786_v56 }
  0xf4   :  { %v702_v52 = vmax.f32 %v698_v24, %v701_v41  ;;  %v637_v32 = vsel %vm5403_vm5, %v3990_v59, -1e+30  ;;  %v660_v31 = vsel %vm5404_vm2, %v629_v15, -inf  ;;  %v662_v51 = vsel %vm5404_vm2, %v631_v20, -inf  ;;  %3613 = vmatpush3.msra.mxu0 %v786_v56 }
  0xf5   :  { %v704_v30 = vmax.f32 %v700_v53, %v703_v27  ;;  %v639_v50 = vsel %vm5366_vm13, %v4004_v7, -1e+30  ;;  %v661_v42 = vmax.f32 %v657_v25, %v660_v31  ;;  %v663_v33 = vmax.f32 %v659_v36, %v662_v51 }
  0xf6   :  { %v706_v34 = vmax.f32 %v702_v52, %v705_v19  ;;  %v707_v60 = vsel %vm5404_vm2, %v646_v3, -inf  ;;  %v709_v16 = vsel %vm5404_vm2, %v648_v4, -inf  ;;  %v666_v2 = vsel %vm5404_vm2, %v4011_v14, -inf }
  0xf7   :  { %v641_v59 = vsel %vm5365_vm0, %v3994_v0, -1e+30  ;;  %v643_v15 = vsel %vm5364_vm1, %v4036_v57, -1e+30  ;;  %v665_v7 = vmax.f32 %v661_v42, %v4018_v18  ;;  %v667_v25 = vmax.f32 %v663_v33, %v666_v2 }
  0xf8   :  { %v708_v20 = vmax.f32 %v704_v30, %v707_v60  ;;  %v710_v24 = vmax.f32 %v706_v34, %v709_v16  ;;  %v668_v3 = vsel %vm5404_vm2, %v637_v32, -inf  ;;  %v670_v4 = vsel %vm5404_vm2, %v639_v50, -inf }
  0xf9   :  { %v645_v14 = vsel %vm5361_vm4, %v4054_v35, -1e+30  ;;  %v647_v0 = vsel %vm5360_vm7, %v4069_v38, -1e+30  ;;  %v669_v57 = vmax.f32 %v665_v7, %v668_v3  ;;  %v671_v43 = vmax.f32 %v667_v25, %v670_v4 }
  0xfa   :  { %v711_v18 = vmax.f32 %v708_v20, %v710_v24  ;;  %v672_v41 = vsel %vm5404_vm2, %v641_v59, -inf  ;;  %v674_v53 = vsel %vm5404_vm2, %v643_v15, -inf  ;;  %v676_v36 = vsel %vm5404_vm2, %v645_v14, -inf }
  0xfb   :  { %v673_v27 = vmax.f32 %v669_v57, %v672_v41  ;;  %v675_v19 = vmax.f32 %v671_v43, %v674_v53  ;;  %v678_v35 = vsel %vm5404_vm2, %v647_v0, -inf  ;;  %vm5363_vm9 = vcmp.gt.f32.partialorder %v3941_v61, 0.5 }
  0xfc   :  { %718 = vrot.lane.b32.xlu1 %v711_v18, %s3739_s0  ;;  %vm5362_vm7 = vcmp.gt.f32.partialorder %v3933_v54, 0.5  ;;  %vm5405_vm4 = vcmask 64512   ;;  %v5529_v16 = vlaneseq  ;;  %v5375_v59 = vmov 0.0  }
  0xfd   :  { %v677_v52 = vmax.f32 %v673_v27, %v676_v36  ;;  %v679_v32 = vmax.f32 %v675_v19, %v678_v35  ;;  %3606 = vmatprep.subr.bf16.mxu1 %v5375_v59  ;;  %vm5408_vm0 = vcmask 130048  }
  0xfe   :  { %v4175_v2 = vand.u32 127, %v5529_v16 }
  0xff   :  { %v680_v38 = vmax.f32 %v677_v52, %v679_v32 }
 0x100   :  { %vm5406_vm10 = vcmp.lt.s32.totalorder %v4175_v2, %v3772_v1 }
 0x101   :  { %716 = vrot.lane.b32.xlu0 %v680_v38, %s3739_s0 }
 0x16e   :  { %v719_v31 = vpop.permute.xlu1 %718 }
 0x16f   :  { %v723_v51 = vadd.f32 %v719_v31, %v3946_v17  ;;  %v3740_v17 = vmov 0  }
 0x170   :  { %3682 = vset.pattern.permute.xlu1 %v3740_v17  ;;  %3681 = vset.pattern.permute.xlu0 %v3740_v17  ;;  %v1143_v17 = vld [vmem:[#allocation2 + $0x10] sm:$0xff] }
 0x171   :  { %v729_v30 = vsel %vm5363_vm9, %v723_v51, 0.0  ;;  %vm4181_vm9 = vcmp.eq.s32.totalorder %v3772_v1, %v4175_v2  ;;  %3617 = vmatprep.subr.mxu0 %v1143_v17 }
 0x172   :  { %v4161_v33 = vmax.f32 %v729_v30, 0.0  ;;  %v732_v25 = vsel %vm4181_vm9, 1.0, %v3789_v8 }
 0x173   :  { %v717_v50 = vpop.permute.xlu0 %716 }
 0x174   :  { %v722_v42 = vadd.f32 %v717_v50, %v3952_v26  ;;  %5527 = vst [vmem:[#allocation51_spill] sm:$0xff] %v4161_v33  ;;  %v4172_v26 = vadd.s32 8, %v3772_v1 }
 0x176   :  { %v728_v34 = vsel %vm5362_vm7, %v722_v42, 0.0  ;;  %vm3742_vm7 = vmmov 0   ;;  %vm4187_vm1 = vcmp.eq.s32.totalorder %v4172_v26, %v4175_v2 }
 0x177   :  { %v4165_v60 = vmax.f32 %v728_v34, 0.0  ;;  %3608 = vmatprep.mubr.msk.bf16.mxu1 %vm3742_vm7, %v5375_v59  ;;  %v733_v56 = vsel %vm4187_vm1, 1.0, %v3825_v23 }
 0x178   :  { %v734_v20 = vpack.c.bf16 %v733_v56, %v732_v25 }
 0x179   :  { %5528 = vst [vmem:[#allocation52_spill] sm:$0xff] %v4165_v60  ;;  %3614 = vmatprep.mubr.msk.f32.mxu0 %vm5405_vm4, %v4165_v60 }
 0x17a   :  { %3615 = vmatmul.mubr.msk.f32.vlgmr.msra.gmra.mxu0 %vm5405_vm4, %v4161_v33  ;;  %3607 = vmatpush3.bf16.msra.mxu1 %v734_v20 }
 0x17b   :  { %3622 = vmatprep.subr.bf16.mxu1 %v5375_v59  ;;  %3618 = vmatpush3.msra.mxu0 %v1143_v17  ;;  %v5539_v17 = vld [vmem:[#allocation15_spill] sm:$0xff] }
 0x17d   :  { %3609 = vmatmul.mubr.msk.bf16.vlgmr.msra.gmra.mxu1 %vm5408_vm0, %v734_v20 }
 0x17e   :  { %3624 = vmatprep.mubr.msk.bf16.mxu1 %vm3742_vm7, %v5375_v59  ;;  %vm5407_vm7 = vcmp.lt.s32.totalorder %v4175_v2, %v4172_v26 }
 0x23a   :  { %v3616_v24 = vpop.f32.mrf.mxu0 }
 0x23b   :  { %3683 = vtanh.f32 %v3616_v24 }
 0x23c   :  { %v860_v3 = vpop.f32.mrf.mxu0 }
 0x23d   :  { %3685 = vtanh.f32 %v860_v3  ;;  %v773_v14 = vpop.f32.mrf.mxu1 }
 0x23f   :  { %v3610_v0 = vpop.f32.mrf.mxu1 }
 0x241   :  { %v776_v23 = vpop.f32.mrf.mxu1 }
 0x243   :  { %v3611_v57 = vpop.f32.mrf.mxu1 }
 0x248   :  { %v3684_v4 = vpop.eup %3683 }
 0x249   :  { %881 = vperm.xlu1 %3682, %v3684_v4  }
 0x24a   :  { %v3686_v8 = vpop.eup %3685 }
 0x24b   :  { %876 = vperm.xlu0 %3681, %v3686_v8  }
 0x2c4   :  { %v882_v43 = vpop.permute.xlu1 %881 }
 0x2c5   :  { %v885_v18 = vsel %vm4187_vm1, %v882_v43, 0.0 }
 0x2c6   :  { %v877_v41 = vpop.permute.xlu0 %876  ;;  %v887_v27 = vsel %vm5408_vm0, %v885_v18, 0.0 }
 0x2c7   :  { %v884_v53 = vsel %vm4181_vm9, %v877_v41, 0.0 }
 0x2c8   :  { %v886_v19 = vsel %vm5408_vm0, %v884_v53, 0.0 }
 0x2c9   :  { %v888_v36 = vadd.f32 %v887_v27, %v886_v19 }
 0x2cb   :  { %v889_v35 = vrot.slane %v888_v36, 4 }
 0x2cd   :  { %v890_v52 = vadd.f32 %v889_v35, %v888_v36 }
 0x2cf   :  { %v891_v32 = vrot.slane %v890_v52, 2 }
 0x2d1   :  { %v892_v38 = vadd.f32 %v891_v32, %v890_v52 }
 0x2d3   :  { %v893_v31 = vrot.slane %v892_v38, 1 }
 0x2d5   :  { %v894_v51 = vadd.f32 %v893_v31, %v892_v38  ;;  %v5536_v31 = vld [vmem:[#allocation12_spill] sm:$0xff] }
 0x2d7   :  { %vm897_vm13 = vcmp.eq.f32.partialorder %v894_v51, %v877_v41  ;;  %vm896_vm3 = vcmp.gt.f32.partialorder %v894_v51, %v882_v43  ;;  %vm898_vm12 = vcmp.eq.f32.partialorder %v894_v51, %v882_v43  ;;  %vm895_vm6 = vcmp.gt.f32.partialorder %v894_v51, %v877_v41 }
 0x2d8   :  { %vm902_vm8 = vmand %vm898_vm12, %vm5407_vm7  ;;  %vm5460_vm12 = vcmask 261248  }
 0x2d9   :  { %vm904_vm14 = vmor %vm896_vm3, %vm902_vm8  ;;  %vm781_vm3 = vcmp.gt.f32.partialorder %v776_v23, 0.5  ;;  %vm780_vm8 = vcmp.gt.f32.partialorder %v773_v14, 0.5 }
 0x2da   :  { %v3534_v30 = vsel %vm904_vm14, 1.0, %v5375_v59  ;;  %vm901_vm11 = vmand %vm897_vm13, %vm5406_vm10  ;;  %v783_v16 = vsel %vm781_vm3, 1.0, %v5375_v59  ;;  %v782_v25 = vsel %vm780_vm8, 1.0, %v5375_v59 }
 0x2db   :  { %v912_v50 = vsel %vm5408_vm0, %v3534_v30, 0.0  ;;  %vm903_vm15 = vmor %vm895_vm6, %vm901_vm11  ;;  %v785_v56 = vsel %vm4187_vm1, 0.0, %v783_v16  ;;  %v784_v24 = vsel %vm4181_vm9, 0.0, %v782_v25  ;;  %v5537_v30 = vld [vmem:[#allocation13_spill] sm:$0xff] }
 0x2dc   :  { %913 = vadd.xlane.f32.xlu0 %v912_v50  ;;  %v3533_v42 = vsel %vm903_vm15, 1.0, %v5375_v59 }
 0x2dd   :  { %v909_v34 = vsel %vm5408_vm0, %v3533_v42, 0.0  ;;  %v5538_v42 = vld [vmem:[#allocation14_spill] sm:$0xff] }
 0x2de   :  { %910 = vadd.xlane.f32.xlu1 %v909_v34 }
 0x2ef   :  { %930 = vperm.xlu1 %3682, %v3684_v4  }
 0x2f2   :  { %925 = vperm.xlu0 %3681, %v3686_v8  }
 0x365   :  { %v914_v20 = vpop.xlane.xlu0 %913 }
 0x366   :  { %vm916_vm6 = vcmp.lt.f32.partialorder %v914_v20, 8.0 }
 0x367   :  { %v4227_v3 = vsel %vm916_vm6, 1.0, %v5375_v59  ;;  %v911_v0 = vpop.xlane.xlu1 %910 }
 0x368   :  { %5534 = vst [vmem:[#allocation53_spill] sm:$0xff] %v4227_v3  ;;  %v936_v4 = vmul.f32 %v4227_v3, %v785_v56  ;;  %vm915_vm11 = vcmp.lt.f32.partialorder %v911_v0, 8.0  ;;  %v922_v57 = vmul.f32 %v4227_v3, %v4161_v33 }
 0x369   :  { %v4231_v8 = vsel %vm915_vm11, 1.0, %v5375_v59 }
 0x36a   :  { %5535 = vst [vmem:[#allocation54_spill] sm:$0xff] %v4231_v8  ;;  %v935_v14 = vmul.f32 %v4231_v8, %v784_v24  ;;  %v1624_v23 = vsel %vm4187_vm1, %v4227_v3, %v936_v4  ;;  %v921_v53 = vmul.f32 %v4231_v8, %v4165_v60  ;;  %v1039_v25 = vrot.slane %v936_v4, %v3795_v10 }
 0x36b   :  { %v931_v43 = vpop.permute.xlu1 %930  ;;  %v1028_v56 = vrot.slane %v936_v4, %v3781_v5  ;;  %v1061_v20 = vrot.slane %v936_v4, %v3792_v9  ;;  %v1050_v24 = vrot.slane %v936_v4, %v3784_v6  ;;  %v1083_v0 = vrot.slane %v936_v4, %v5536_v31 }
 0x36c   :  { %v951_v18 = vrot.slane %v935_v14, %v3795_v10  ;;  %v940_v41 = vrot.slane %v935_v14, %v3781_v5  ;;  %v1623_v27 = vsel %vm4181_vm9, %v4231_v8, %v935_v14  ;;  %v934_v52 = vmul.f32 %v931_v43, %v922_v57 }
 0x36d   :  { %v926_v19 = vpop.permute.xlu0 %925  ;;  %v1625_v36 = vpack.c.bf16 %v1624_v23, %v1623_v27  ;;  %v973_v32 = vrot.slane %v935_v14, %v3792_v9  ;;  %v962_v38 = vrot.slane %v935_v14, %v3784_v6  ;;  %v995_v51 = vrot.slane %v935_v14, %v5536_v31 }
 0x36e   :  { %953 = vbcast.lane.b32.xlu0 %v951_v18, 256  ;;  %942 = vbcast.lane.b32.xlu1 %v940_v41, 256  ;;  %v933_v35 = vmul.f32 %v926_v19, %v921_v53  ;;  %v984_v50 = vrot.slane %v935_v14, %v5537_v30  ;;  %v1017_v34 = vrot.slane %v935_v14, %v5538_v42 }
 0x36f   :  { %3623 = vmatpush3.bf16.msra.mxu1 %v1625_v36  ;;  %v1006_v16 = vrot.slane %v935_v14, %v5539_v17  ;;  %v1072_v14 = vrot.slane %v936_v4, %v5537_v30  ;;  %v1105_v23 = vrot.slane %v936_v4, %v5538_v42  ;;  %v1094_v57 = vrot.slane %v936_v4, %v5539_v17 }
 0x370   :  { %3619 = vmatprep.mubr.msk.f32.mxu0 %vm5405_vm4, %v933_v35 }
 0x371   :  { %3620 = vmatmul.mubr.msk.f32.vlgmr.msra.gmra.mxu0 %vm5405_vm4, %v934_v52 }
 0x372   :  { %3625 = vmatmul.mubr.msk.bf16.vlgmr.msra.gmra.mxu1 %vm5408_vm0, %v1625_v36  ;;  %975 = vbcast.lane.b32.xlu0 %v973_v32, 256 }
 0x373   :  { %964 = vbcast.lane.b32.xlu1 %v962_v38, 256 }
 0x376   :  { %957 = vbcast.lane.b32.xlu0 %v951_v18, 264 }
 0x377   :  { %946 = vbcast.lane.b32.xlu1 %v940_v41, 264 }
 0x37a   :  { %979 = vbcast.lane.b32.xlu0 %v973_v32, 264 }
 0x37b   :  { %968 = vbcast.lane.b32.xlu1 %v962_v38, 264 }
 0x37e   :  { %997 = vbcast.lane.b32.xlu0 %v995_v51, 256 }
 0x37f   :  { %986 = vbcast.lane.b32.xlu1 %v984_v50, 256 }
 0x382   :  { %1001 = vbcast.lane.b32.xlu0 %v995_v51, 264 }
 0x383   :  { %990 = vbcast.lane.b32.xlu1 %v984_v50, 264 }
 0x386   :  { %1019 = vbcast.lane.b32.xlu0 %v1017_v34, 256 }
 0x387   :  { %1008 = vbcast.lane.b32.xlu1 %v1006_v16, 256 }
 0x38a   :  { %1023 = vbcast.lane.b32.xlu0 %v1017_v34, 264 }
 0x38b   :  { %1012 = vbcast.lane.b32.xlu1 %v1006_v16, 264 }
 0x38e   :  { %1041 = vbcast.lane.b32.xlu0 %v1039_v25, 256 }
 0x38f   :  { %1030 = vbcast.lane.b32.xlu1 %v1028_v56, 256 }
 0x392   :  { %1045 = vbcast.lane.b32.xlu0 %v1039_v25, 264 }
 0x393   :  { %1034 = vbcast.lane.b32.xlu1 %v1028_v56, 264 }
 0x396   :  { %1063 = vbcast.lane.b32.xlu0 %v1061_v20, 256 }
 0x397   :  { %1052 = vbcast.lane.b32.xlu1 %v1050_v24, 256 }
 0x39a   :  { %1067 = vbcast.lane.b32.xlu0 %v1061_v20, 264 }
 0x39b   :  { %1056 = vbcast.lane.b32.xlu1 %v1050_v24, 264 }
 0x39e   :  { %1085 = vbcast.lane.b32.xlu0 %v1083_v0, 256 }
 0x39f   :  { %1074 = vbcast.lane.b32.xlu1 %v1072_v14, 256 }
 0x3a2   :  { %1089 = vbcast.lane.b32.xlu0 %v1083_v0, 264 }
 0x3a3   :  { %1078 = vbcast.lane.b32.xlu1 %v1072_v14, 264 }
 0x3a6   :  { %1107 = vbcast.lane.b32.xlu0 %v1105_v23, 256 }
 0x3a7   :  { %1096 = vbcast.lane.b32.xlu1 %v1094_v57, 256 }
 0x3aa   :  { %1111 = vbcast.lane.b32.xlu0 %v1105_v23, 264 }
 0x3ab   :  { %1100 = vbcast.lane.b32.xlu1 %v1094_v57, 264 }
 0x3e0   :  { %v4263_v43 = vpop.permute.xlu0 %953  ;;  %v4265_v18 = vpop.permute.xlu1 %942 }
 0x3e1   :  { %5540 = vst [vmem:[#allocation55_spill] sm:$0xff] %v4263_v43  ;;  %5541 = vst [vmem:[#allocation56_spill] sm:$0xff] %v4265_v18  ;;  %vm5427_vm14 = vcmp.gt.f32.partialorder %v4265_v18, 0.5  ;;  %vm5433_vm13 = vcmp.gt.f32.partialorder %v4263_v43, 0.5 }
 0x3e4   :  { %v4267_v41 = vpop.permute.xlu0 %975 }
 0x3e5   :  { %5542 = vst [vmem:[#allocation57_spill] sm:$0xff] %v4267_v41  ;;  %v1114_v53 = vmax.f32 %v4263_v43, %v4267_v41  ;;  %v4271_v27 = vpop.permute.xlu1 %964  ;;  %vm5428_vm15 = vcmp.gt.f32.partialorder %v4267_v41, 0.5 }
 0x3e6   :  { %5543 = vst [vmem:[#allocation58_spill] sm:$0xff] %v4271_v27  ;;  %v1113_v19 = vmax.f32 %v4265_v18, %v4271_v27  ;;  %vm5426_vm3 = vcmp.gt.f32.partialorder %v4271_v27, 0.5 }
 0x3e8   :  { %v4275_v36 = vpop.permute.xlu0 %957 }
 0x3e9   :  { %v4277_v4 = vpop.permute.xlu1 %946  ;;  %vm5436_vm5 = vcmp.gt.f32.partialorder %v4275_v36, 0.5 }
 0x3ea   :  { %5544 = vst [vmem:[#allocation59_spill] sm:$0xff] %v4277_v4  ;;  %vm5432_vm8 = vcmp.gt.f32.partialorder %v4277_v4, 0.5 }
 0x3ec   :  { %v4279_v35 = vpop.permute.xlu0 %979 }
 0x3ed   :  { %5545 = vst [vmem:[#allocation60_spill] sm:$0xff] %v4279_v35  ;;  %v1129_v52 = vmax.f32 %v4275_v36, %v4279_v35  ;;  %v4283_v32 = vpop.permute.xlu1 %968 }
 0x3ee   :  { %5546 = vst [vmem:[#allocation61_spill] sm:$0xff] %v4283_v32  ;;  %v1128_v38 = vmax.f32 %v4277_v4, %v4283_v32 }
 0x3f0   :  { %v4287_v51 = vpop.permute.xlu0 %997 }
 0x3f1   :  { %v1116_v50 = vmax.f32 %v1114_v53, %v4287_v51  ;;  %v4290_v34 = vpop.permute.xlu1 %986  ;;  %vm5458_vm2 = vcmp.gt.f32.partialorder %v4287_v51, 0.5 }
 0x3f2   :  { %5547 = vst [vmem:[#allocation62_spill] sm:$0xff] %v4290_v34  ;;  %v1115_v16 = vmax.f32 %v1113_v19, %v4290_v34 }
 0x3f4   :  { %v4293_v25 = vpop.permute.xlu0 %1001 }
 0x3f5   :  { %5548 = vst [vmem:[#allocation63_spill] sm:$0xff] %v4293_v25  ;;  %v1131_v56 = vmax.f32 %v1129_v52, %v4293_v25  ;;  %v4296_v20 = vpop.permute.xlu1 %990  ;;  %vm5444_vm4 = vcmp.gt.f32.partialorder %v4293_v25, 0.5 }
 0x3f6   :  { %5549 = vst [vmem:[#allocation64_spill] sm:$0xff] %v4296_v20  ;;  %v1130_v24 = vmax.f32 %v1128_v38, %v4296_v20 }
 0x3f8   :  { %v4299_v0 = vpop.permute.xlu0 %1019 }
 0x3f9   :  { %5550 = vst [vmem:[#allocation65_spill] sm:$0xff] %v4299_v0  ;;  %v1118_v14 = vmax.f32 %v1116_v50, %v4299_v0  ;;  %v4302_v23 = vpop.permute.xlu1 %1008 }
 0x3fa   :  { %5551 = vst [vmem:[#allocation66_spill] sm:$0xff] %v4302_v23  ;;  %v1117_v57 = vmax.f32 %v1115_v16, %v4302_v23  ;;  %vm5443_vm0 = vcmp.gt.f32.partialorder %v4302_v23, 0.5 }
 0x3fc   :  { %v4305_v53 = vpop.permute.xlu0 %1023 }
 0x3fd   :  { %5552 = vst [vmem:[#allocation67_spill] sm:$0xff] %v4305_v53  ;;  %v1133_v19 = vmax.f32 %v1131_v56, %v4305_v53  ;;  %v4308_v59 = vpop.permute.xlu1 %1012 }
 0x3fe   :  { %5553 = vst [vmem:[#allocation68_spill] sm:$0xff] %v4308_v59  ;;  %v1132_v52 = vmax.f32 %v1130_v24, %v4308_v59 }
 0x400   :  { %v4311_v54 = vpop.permute.xlu0 %1041 }
 0x401   :  { %v1120_v38 = vmax.f32 %v1118_v14, %v4311_v54  ;;  %v4314_v61 = vpop.permute.xlu1 %1030  ;;  %vm5431_vm6 = vcmp.gt.f32.partialorder %v4311_v54, 0.5 }
 0x402   :  { %5554 = vst [vmem:[#allocation69_spill] sm:$0xff] %v4314_v61  ;;  %v1119_v50 = vmax.f32 %v1117_v57, %v4314_v61  ;;  %vm5418_vm11 = vcmp.gt.f32.partialorder %v4314_v61, 0.5 }
 0x404   :  { %v4317_v48 = vpop.permute.xlu0 %1045 }
 0x405   :  { %5555 = vst [vmem:[#allocation70_spill] sm:$0xff] %v4317_v48  ;;  %v1135_v16 = vmax.f32 %v1133_v19, %v4317_v48  ;;  %v4320_v49 = vpop.permute.xlu1 %1034  ;;  %vm5424_vm10 = vcmp.gt.f32.partialorder %v4317_v48, 0.5 }
 0x406   :  { %5556 = vst [vmem:[#allocation71_spill] sm:$0xff] %v4320_v49  ;;  %v1134_v56 = vmax.f32 %v1132_v52, %v4320_v49  ;;  %vm5417_vm7 = vcmp.gt.f32.partialorder %v4320_v49, 0.5 }
 0x408   :  { %v4323_v21 = vpop.permute.xlu0 %1063 }
 0x409   :  { %5557 = vst [vmem:[#allocation72_spill] sm:$0xff] %v4323_v21  ;;  %v1122_v24 = vmax.f32 %v1120_v38, %v4323_v21  ;;  %v4326_v22 = vpop.permute.xlu1 %1052 }
 0x40a   :  { %v1121_v14 = vmax.f32 %v1119_v50, %v4326_v22 }
 0x40c   :  { %v4329_v62 = vpop.permute.xlu0 %1067 }
 0x40d   :  { %5558 = vst [vmem:[#allocation73_spill] sm:$0xff] %v4329_v62  ;;  %v1137_v57 = vmax.f32 %v1135_v16, %v4329_v62  ;;  %v4332_v55 = vpop.permute.xlu1 %1056 }
 0x40e   :  { %v1136_v19 = vmax.f32 %v1134_v56, %v4332_v55 }
 0x410   :  { %v4335_v58 = vpop.permute.xlu0 %1085 }
 0x411   :  { %5559 = vst [vmem:[#allocation74_spill] sm:$0xff] %v4335_v58  ;;  %v1124_v52 = vmax.f32 %v1122_v24, %v4335_v58  ;;  %v4338_v28 = vpop.permute.xlu1 %1074 }
 0x412   :  { %5560 = vst [vmem:[#allocation75_spill] sm:$0xff] %v4338_v28  ;;  %v1123_v38 = vmax.f32 %v1121_v14, %v4338_v28 }
 0x414   :  { %v4341_v29 = vpop.permute.xlu0 %1089 }
 0x415   :  { %5561 = vst [vmem:[#allocation76_spill] sm:$0xff] %v4341_v29  ;;  %v1139_v50 = vmax.f32 %v1137_v57, %v4341_v29  ;;  %v4344_v44 = vpop.permute.xlu1 %1078 }
 0x416   :  { %5562 = vst [vmem:[#allocation77_spill] sm:$0xff] %v4344_v44  ;;  %v1138_v16 = vmax.f32 %v1136_v19, %v4344_v44  ;;  %v3535_v19 = vld [vmem:[#allocation2 + $0x18] ss:$0 sm:$0xff] }
 0x418   :  { %v4347_v11 = vpop.permute.xlu0 %1107 }
 0x419   :  { %5563 = vst [vmem:[#allocation78_spill] sm:$0xff] %v4347_v11  ;;  %v1126_v56 = vmax.f32 %v1124_v52, %v4347_v11  ;;  %v4350_v46 = vpop.permute.xlu1 %1096 }
 0x41a   :  { %5564 = vst [vmem:[#allocation79_spill] sm:$0xff] %v4350_v46  ;;  %v1125_v24 = vmax.f32 %v1123_v38, %v4350_v46 }
 0x41c   :  { %v4353_v47 = vmax.f32 %v1125_v24, %v1126_v56  ;;  %v4355_v45 = vpop.permute.xlu0 %1111 }
 0x41d   :  { %5566 = vst [vmem:[#allocation81_spill] sm:$0xff] %v4355_v45  ;;  %v1141_v14 = vmax.f32 %v1139_v50, %v4355_v45  ;;  %v4358_v40 = vpop.permute.xlu1 %1100 }
 0x41e   :  { %5565 = vst [vmem:[#allocation80_spill] sm:$0xff] %v4353_v47  ;;  %5567 = vst [vmem:[#allocation82_spill] sm:$0xff] %v4358_v40  ;;  %v1140_v57 = vmax.f32 %v1138_v16, %v4358_v40 }
 0x420   :  { %v4361_v39 = vmax.f32 %v1140_v57, %v1141_v14 }
 0x422   :  { %5568 = vst [vmem:[#allocation83_spill] sm:$0xff] %v4361_v39 }
 0x431   :  { %v3621_v37 = vpop.f32.mrf.mxu0 }
 0x432   :  { %v4363_v12 = vpop.f32.mrf.mxu1  ;;  %v4365_v52 = vadd.f32 %v3621_v37, %v3535_v19 }
 0x433   :  { %5569 = vst [vmem:[#allocation84_spill] sm:$0xff] %v4363_v12  ;;  %v1221_v63 = vpop.f32.mrf.mxu0 }
 0x434   :  { %v1313_v38 = vcombine.high %v4365_v52, %v4365_v52  ;;  %v1320_v56 = vrot.slane %v4365_v52, %v3944_v13  ;;  %v3626_v50 = vpop.f32.mrf.mxu1  ;;  %v4371_v24 = vadd.f32 %v3535_v19, %v1221_v63 }
 0x436   :  { %v1327_v16 = vrot.slane %v1313_v38, %v3944_v13  ;;  %v1328_v14 = vcombine.high %v1320_v56, %v1320_v56  ;;  %v1336_v57 = vrot.slane %v1320_v56, %v3944_v13  ;;  %v1264_v17 = vcombine.high %v4371_v24, %v4371_v24  ;;  %v4377_v37 = vpop.f32.mrf.mxu1 }
 0x437   :  { %5570 = vst [vmem:[#allocation85_spill] sm:$0xff] %v4377_v37  ;;  %v1271_v42 = vrot.slane %v4371_v24, %v3944_v13 }
 0x438   :  { %v1329_v30 = vcombine.high %v1327_v16, %v1327_v16  ;;  %v4382_v31 = vrot.slane %v1327_v16, %v3944_v13  ;;  %v3627_v50 = vpop.f32.mrf.mxu1  ;;  %v1350_v63 = vrot.slane %v1328_v14, %v3944_v13  ;;  %v1278_v19 = vrot.slane %v1264_v17, %v3944_v13 }
 0x439   :  { %v1279_v38 = vcombine.high %v1271_v42, %v1271_v42  ;;  %v1358_v56 = vcombine.high %v1336_v57, %v1336_v57  ;;  %v1461_v37 = vrot.slane %v1336_v57, %v3781_v5  ;;  %v1287_v33 = vrot.slane %v1271_v42, %v3944_v13 }
 0x43a   :  { %v4401_v42 = vrot.slane %v1329_v30, %v3944_v13  ;;  %v1360_v16 = vcombine.high %v1350_v63, %v1350_v63  ;;  %v1280_v14 = vcombine.high %v1278_v19, %v1278_v19  ;;  %v1294_v57 = vrot.slane %v1278_v19, %v3944_v13 }
 0x43b   :  { %v1301_v50 = vrot.slane %v1279_v38, %v3944_v13  ;;  %v1465_v60 = vrot.slane %v1350_v63, %v3781_v5  ;;  %v4411_v6 = vrot.slane %v1358_v56, %v3781_v5  ;;  %v1522_v30 = vsel %vm5418_vm11, %v1461_v37, -1e+30 }
 0x43c   :  { %v1309_v9 = vcombine.high %v1287_v33, %v1287_v33  ;;  %v1523_v17 = vsel %vm5417_vm7, %v1461_v37, -1e+30  ;;  %v1308_v19 = vrot.slane %v1280_v14, %v3944_v13  ;;  %v1429_v38 = vrot.slane %v1287_v33, %v3781_v5 }
 0x43d   :  { %v1311_v10 = vcombine.high %v1301_v50, %v1301_v50  ;;  %v4424_v63 = vrot.slane %v4382_v31, %v3781_v5  ;;  %v1310_v56 = vcombine.high %v1294_v57, %v1294_v57  ;;  %v1433_v61 = vrot.slane %v1301_v50, %v3781_v5 }
 0x43e   :  { %v1437_v12 = vrot.slane %v1309_v9, %v3781_v5  ;;  %vm5442_vm7 = vcmp.gt.f32.partialorder %v4299_v0, 0.5  ;;  %vm5441_vm11 = vcmp.gt.f32.partialorder %v4308_v59, 0.5  ;;  %v4431_v37 = vrot.slane %v1360_v16, %v3781_v5 }
 0x43f   :  { %v1312_v33 = vcombine.high %v1308_v19, %v1308_v19  ;;  %v1441_v14 = vrot.slane %v1311_v10, %v3781_v5  ;;  %v1445_v49 = vrot.slane %v1294_v57, %v3781_v5  ;;  %v4437_v13 = vsel %vm5431_vm6, %v1465_v60, -1e+30 }
 0x440   :  { %v4441_v50 = vsel %vm5424_vm10, %v1465_v60, -1e+30  ;;  %v4444_v9 = vsel %vm5460_vm12, %v1522_v30, -inf  ;;  %v4447_v1 = vsel %vm5460_vm12, %v1523_v17, -inf  ;;  %v1506_v16 = vsel %vm5427_vm14, %v1429_v38, -1e+30 }
 0x441   :  { %v1510_v10 = vsel %vm5426_vm3, %v1437_v12, -1e+30  ;;  %v1512_v57 = vsel %vm5428_vm15, %v1441_v14, -1e+30  ;;  %v1361_v48 = vcombine.high %v4401_v42, %v4401_v42  ;;  %v1449_v60 = vrot.slane %v1308_v19, %v3781_v5 }
 0x442   :  { %v1453_v30 = vrot.slane %v1310_v56, %v3781_v5  ;;  %v1507_v17 = vsel %vm5432_vm8, %v1429_v38, -1e+30  ;;  %v1508_v18 = vsel %vm5433_vm13, %v1433_v61, -1e+30  ;;  %vm5451_vm3 = vcmp.gt.f32.partialorder %v4323_v21, 0.5 }
 0x443   :  { %vm5449_vm15 = vcmp.gt.f32.partialorder %v4338_v28, 0.5  ;;  %v1457_v41 = vrot.slane %v1312_v33, %v3781_v5  ;;  %v1509_v27 = vsel %vm5436_vm5, %v1433_v61, -1e+30  ;;  %vm5571_vm6 = vcmp.gt.f32.partialorder %v4283_v32, 0.5 }
 0x444   :  { %v1511_v19 = vsel %vm5571_vm6, %v1437_v12, -1e+30  ;;  %vm5572_vm10 = vcmp.gt.f32.partialorder %v4290_v34, 0.5  ;;  %vm5447_vm8 = vcmp.gt.f32.partialorder %v4350_v46, 0.5  ;;  %vm5573_vm13 = vcmp.gt.f32.partialorder %v4279_v35, 0.5 }
 0x445   :  { %v1514_v38 = vsel %vm5572_vm10, %v1445_v49, -1e+30  ;;  %v1513_v56 = vsel %vm5573_vm13, %v1441_v14, -1e+30  ;;  %v1539_v43 = vsel %vm5460_vm12, %v1506_v16, -inf  ;;  %v1541_v4 = vsel %vm5460_vm12, %v1510_v10, -inf }
 0x446   :  { %v1543_v33 = vsel %vm5460_vm12, %v1512_v57, -inf  ;;  %vm5457_vm14 = vcmp.gt.f32.partialorder %v4305_v53, 0.5  ;;  %vm5446_vm5 = vcmp.gt.f32.partialorder %v4347_v11, 0.5  ;;  %vm5574_vm6 = vcmp.gt.f32.partialorder %v4296_v20, 0.5 }
 0x447   :  { %v1515_v12 = vsel %vm5574_vm6, %v1445_v49, -1e+30  ;;  %v1540_v61 = vsel %vm5460_vm12, %v1508_v18, -inf  ;;  %v1542_v34 = vmax.f32 %v1539_v43, %v1541_v4  ;;  %v1481_v35 = vrot.slane %v4401_v42, %v3781_v5 }
 0x448   :  { %v1516_v14 = vsel %vm5458_vm2, %v1449_v60, -1e+30  ;;  %v1544_v16 = vmax.f32 %v1540_v61, %v1543_v33  ;;  %v1545_v10 = vsel %vm5460_vm12, %v1514_v38, -inf  ;;  %v1572_v57 = vsel %vm5460_vm12, %v1511_v19, -inf }
 0x449   :  { %v1517_v32 = vsel %vm5444_vm4, %v1449_v60, -1e+30  ;;  %v1518_v49 = vsel %vm5443_vm0, %v1453_v30, -1e+30  ;;  %v1546_v20 = vmax.f32 %v1542_v34, %v1545_v10  ;;  %v1574_v43 = vsel %vm5460_vm12, %v1513_v56, -inf }
 0x44a   :  { %vm5459_vm10 = vcmp.gt.f32.partialorder %v4332_v55, 0.5  ;;  %v1519_v18 = vsel %vm5441_vm11, %v1453_v30, -1e+30  ;;  %v1570_v4 = vsel %vm5460_vm12, %v1507_v17, -inf  ;;  %v5575_v42 = vcombine.high %v4382_v31, %v4382_v31 }
 0x44b   :  { %v1520_v60 = vsel %vm5442_vm7, %v1457_v41, -1e+30  ;;  %vm5456_vm13 = vcmp.gt.f32.partialorder %v4329_v62, 0.5  ;;  %v1547_v34 = vsel %vm5460_vm12, %v1516_v14, -inf  ;;  %v1571_v38 = vsel %vm5460_vm12, %v1509_v27, -inf }
 0x44c   :  { %v1485_v19 = vrot.slane %v5575_v42, %v3781_v5  ;;  %v1573_v56 = vmax.f32 %v1570_v4, %v1572_v57  ;;  %v1489_v33 = vrot.slane %v1361_v48, %v3781_v5  ;;  %vm5454_vm6 = vcmp.gt.f32.partialorder %v4341_v29, 0.5 }
 0x44d   :  { %vm5455_vm11 = vcmp.gt.f32.partialorder %v4344_v44, 0.5  ;;  %v1575_v30 = vmax.f32 %v1571_v38, %v1574_v43  ;;  %v1576_v31 = vsel %vm5460_vm12, %v1515_v12, -inf  ;;  %v1548_v17 = vmax.f32 %v1544_v16, %v1547_v34 }
 0x44e   :  { %v1549_v61 = vsel %vm5460_vm12, %v1518_v49, -inf  ;;  %v1578_v10 = vsel %vm5460_vm12, %v1517_v32, -inf  ;;  %vm5576_vm7 = vcmp.gt.f32.partialorder %v4326_v22, 0.5  ;;  %v1551_v57 = vsel %vm5460_vm12, %v1520_v60, -inf }
 0x44f   :  { %v1526_v14 = vsel %vm5576_vm7, %v4411_v6, -1e+30  ;;  %v1550_v27 = vmax.f32 %v1546_v20, %v1549_v61  ;;  %vm5453_vm0 = vcmp.gt.f32.partialorder %v4358_v40, 0.5  ;;  %v1528_v48 = vsel %vm5451_vm3, %v4431_v37, -1e+30 }
 0x450   :  { %v1530_v12 = vsel %vm5449_vm15, %v4424_v63, -1e+30  ;;  %vm5577_vm4 = vcmp.gt.f32.partialorder %v4335_v58, 0.5  ;;  %v1552_v16 = vmax.f32 %v1548_v17, %v1551_v57  ;;  %v1577_v49 = vmax.f32 %v1573_v56, %v1576_v31 }
 0x451   :  { %v1532_v32 = vsel %vm5577_vm4, %v1481_v35, -1e+30  ;;  %v1534_v20 = vsel %vm5447_vm8, %v1485_v19, -1e+30  ;;  %v1554_v43 = vmax.f32 %v1550_v27, %v4444_v9  ;;  %v1555_v4 = vsel %vm5460_vm12, %v4437_v13, -inf }
 0x452   :  { %v1536_v42 = vsel %vm5446_vm5, %v1489_v33, -1e+30  ;;  %v1556_v60 = vmax.f32 %v1552_v16, %v1555_v4  ;;  %v1557_v34 = vsel %vm5460_vm12, %v1526_v14, -inf  ;;  %v1521_v38 = vsel %vm5457_vm14, %v1457_v41, -1e+30 }
 0x453   :  { %v1558_v61 = vmax.f32 %v1554_v43, %v1557_v34  ;;  %v1559_v56 = vsel %vm5460_vm12, %v1528_v48, -inf  ;;  %v1561_v31 = vsel %vm5460_vm12, %v1530_v12, -inf  ;;  %v1563_v17 = vsel %vm5460_vm12, %v1532_v32, -inf }
 0x454   :  { %v1560_v9 = vmax.f32 %v1556_v60, %v1559_v56  ;;  %v1565_v27 = vsel %vm5460_vm12, %v1534_v20, -inf  ;;  %v1579_v13 = vmax.f32 %v1575_v30, %v1578_v10  ;;  %v1580_v57 = vsel %vm5460_vm12, %v1519_v18, -inf }
 0x455   :  { %v1562_v11 = vmax.f32 %v1558_v61, %v1561_v31  ;;  %v1527_v14 = vsel %vm5459_vm10, %v4411_v6, -1e+30  ;;  %v1581_v16 = vmax.f32 %v1577_v49, %v1580_v57  ;;  %v1582_v41 = vsel %vm5460_vm12, %v1521_v38, -inf  ;;  %v1676_v38 = vld [vmem:[#allocation2 + $0x40] sm:$0xff] }
 0x456   :  { %v1564_v43 = vmax.f32 %v1560_v9, %v1563_v17  ;;  %v1567_v48 = vsel %vm5460_vm12, %v1536_v42, -inf  ;;  %v1529_v12 = vsel %vm5456_vm13, %v4431_v37, -1e+30  ;;  %v1583_v32 = vmax.f32 %v1579_v13, %v1582_v41 }
 0x457   :  { %v1531_v18 = vsel %vm5455_vm11, %v4424_v63, -1e+30  ;;  %v1533_v30 = vsel %vm5454_vm6, %v1481_v35, -1e+30  ;;  %v1585_v6 = vmax.f32 %v1581_v16, %v4447_v1  ;;  %v1586_v10 = vsel %vm5460_vm12, %v4441_v50, -inf }
 0x458   :  { %v1566_v49 = vmax.f32 %v1562_v11, %v1565_v27  ;;  %v1568_v20 = vmax.f32 %v1564_v43, %v1567_v48  ;;  %v1587_v4 = vmax.f32 %v1583_v32, %v1586_v10  ;;  %v1588_v42 = vsel %vm5460_vm12, %v1527_v14, -inf  ;;  %v1677_v11 = vld [vmem:[#allocation2 + $0x48] sm:$0xff] }
 0x459   :  { %vm5452_vm4 = vcmp.gt.f32.partialorder %v4355_v45, 0.5  ;;  %v1535_v37 = vsel %vm5453_vm0, %v1485_v19, -1e+30  ;;  %v1589_v60 = vmax.f32 %v1585_v6, %v1588_v42  ;;  %v1590_v63 = vsel %vm5460_vm12, %v1529_v12, -inf  ;;  %3628 = vmatprep.subr.mxu0 %v1677_v11 }
 0x45a   :  { %v1569_v34 = vmax.f32 %v1566_v49, %v1568_v20  ;;  %v1537_v1 = vsel %vm5452_vm4, %v1489_v33, -1e+30  ;;  %v1591_v35 = vmax.f32 %v1587_v4, %v1590_v63  ;;  %v1592_v50 = vsel %vm5460_vm12, %v1531_v18, -inf  ;;  %3629 = vmatpush3.msra.mxu0 %v1677_v11 }
 0x45b   :  { %v1593_v61 = vmax.f32 %v1589_v60, %v1592_v50  ;;  %v1594_v56 = vsel %vm5460_vm12, %v1533_v30, -inf  ;;  %v1596_v31 = vsel %vm5460_vm12, %v1535_v37, -inf  ;;  %v1598_v17 = vsel %vm5460_vm12, %v1537_v1, -inf  ;;  %3630 = vmatprep.subr.mxu0 %v1676_v38 }
 0x45c   :  { %1605 = vrot.lane.b32.xlu1 %v1569_v34, %s3743_s1  ;;  %v1595_v19 = vmax.f32 %v1591_v35, %v1594_v56  ;;  %3631 = vmatpush3.msra.mxu0 %v1676_v38  ;;  %vm5448_vm7 = vcmp.gt.f32.partialorder %v4353_v47, 0.5  ;;  %vm5450_vm5 = vcmp.gt.f32.partialorder %v4361_v39, 0.5  ;;  %vm5578_vm8 = vcmask 130048  }
 0x45d   :  { %v1597_v33 = vmax.f32 %v1593_v61, %v1596_v31  ;;  %vm1762_vm15 = vcmp.gt.f32.partialorder %v4227_v3, 0.5  ;;  %vm5581_vm6 = vcmp.lt.s32.totalorder %v4175_v2, %v4172_v26  ;;  %v5582_v56 = vmov 0.0   ;;  %v5583_v31 = vld [vmem:[#allocation8_spill] sm:$0xff]  ;;  %v2032_v26 = vld [vmem:[#allocation2 + $0x20] sm:$0xff] }
 0x45e   :  { %v1599_v9 = vmax.f32 %v1595_v19, %v1598_v17  ;;  %vm5585_vm2 = vcmask 130048  }
 0x45f   :  { %vm5586_vm12 = vmmov %vm5585_vm2 }
 0x460   :  { %v1600_v27 = vmax.f32 %v1597_v33, %v1599_v9 }
 0x462   :  { %1607 = vrot.lane.b32.xlu0 %v1600_v27, %s3743_s1  ;;  %v2033_v27 = vld [vmem:[#allocation2 + $0x28] sm:$0xff] }
 0x463   :  { %3635 = vmatprep.subr.mxu0 %v2033_v27 }
 0x4ce   :  { %v1606_v13 = vpop.permute.xlu1 %1605 }
 0x4cf   :  { %v1611_v57 = vadd.f32 %v1606_v13, %v4371_v24  ;;  %v2513_v13 = vld [vmem:[#allocation2 + $0x58] sm:$0xff] }
 0x4d1   :  { %v1617_v14 = vsel %vm5448_vm7, %v1611_v57, 0.0  ;;  %vm5579_vm7 = vmmov %vm5578_vm8 }
 0x4d2   :  { %v1619_v16 = vmax.f32 %v1617_v14, 0.0 }
 0x4d4   :  { %v1608_v41 = vpop.permute.xlu0 %1607  ;;  %v4577_v43 = vmul.f32 %v1619_v16, %v4231_v8 }
 0x4d5   :  { %v1612_v48 = vadd.f32 %v1608_v41, %v4365_v52 }
 0x4d6   :  { %3632 = vmatprep.mubr.msk.f32.mxu0 %vm5578_vm8, %v4577_v43  ;;  %vm1761_vm8 = vcmp.gt.f32.partialorder %v4231_v8, 0.5 }
 0x4d7   :  { %v1618_v24 = vsel %vm5450_vm5, %v1612_v48, 0.0  ;;  %vm5580_vm5 = vmmov %vm5579_vm7 }
 0x4d8   :  { %v1620_v12 = vmax.f32 %v1618_v24, 0.0 }
 0x4da   :  { %v4586_v32 = vmul.f32 %v1620_v12, %v4227_v3 }
 0x4dc   :  { %3633 = vmatmul.mubr.msk.f32.vlgmr.msra.gmra.mxu0 %vm5579_vm7, %v4586_v32 }
 0x4dd   :  { %3636 = vmatpush3.msra.mxu0 %v2033_v27 }
 0x4de   :  { %3637 = vmatprep.subr.mxu0 %v2032_v26 }
 0x4df   :  { %3638 = vmatpush3.msra.mxu0 %v2032_v26 }
 0x4e0   :  { %3649 = vmatprep.subr.mxu0 %v2513_v13 }
 0x59c   :  { %v3634_v18 = vpop.f32.mrf.mxu0 }
 0x59d   :  { %3687 = vtanh.f32 %v3634_v18 }
 0x59e   :  { %v1750_v30 = vpop.f32.mrf.mxu0 }
 0x59f   :  { %3689 = vtanh.f32 %v1750_v30 }
 0x5aa   :  { %v3688_v52 = vpop.eup %3687 }
 0x5ab   :  { %v1764_v6 = vsel %vm1762_vm15, %v3688_v52, -3e+38 }
 0x5ac   :  { %v3690_v10 = vpop.eup %3689  ;;  %1772 = vperm.xlu0 %3681, %v1764_v6  }
 0x5ad   :  { %v1763_v49 = vsel %vm1761_vm8, %v3690_v10, -3e+38 }
 0x5ae   :  { %1767 = vperm.xlu1 %3682, %v1763_v49  }
 0x627   :  { %v1773_v20 = vpop.permute.xlu0 %1772 }
 0x628   :  { %v1776_v4 = vsel %vm4187_vm1, %v1773_v20, 0.0 }
 0x629   :  { %v1768_v42 = vpop.permute.xlu1 %1767  ;;  %v1778_v60 = vsel %vm5579_vm7, %v1776_v4, 0.0 }
 0x62a   :  { %v1775_v37 = vsel %vm4181_vm9, %v1768_v42, 0.0 }
 0x62b   :  { %v1777_v63 = vsel %vm5580_vm5, %v1775_v37, 0.0  ;;  %vm5584_vm5 = vcmp.lt.s32.totalorder %v4175_v2, %v5583_v31  ;;  %v5587_v2 = vld [vmem:[#allocation84_spill] sm:$0xff]  ;;  %v5602_v31 = vld [vmem:[#allocation14_spill] sm:$0xff] }
 0x62c   :  { %v1779_v34 = vadd.f32 %v1778_v60, %v1777_v63  ;;  %v5591_v60 = vld [vmem:[#allocation9_spill] sm:$0xff] }
 0x62e   :  { %v1780_v1 = vrot.slane %v1779_v34, 4 }
 0x630   :  { %v1781_v35 = vadd.f32 %v1780_v1, %v1779_v34  ;;  %v2512_v34 = vld [vmem:[#allocation2 + $0x50] sm:$0xff]  ;;  %v2969_v1 = vld [vmem:[#allocation2 + $0x78] sm:$0xff] }
 0x632   :  { %v1782_v50 = vrot.slane %v1781_v35, 2 }
 0x634   :  { %v1783_v11 = vadd.f32 %v1782_v50, %v1781_v35  ;;  %v5595_v35 = vld [vmem:[#allocation52_spill] sm:$0xff]  ;;  %v5597_v50 = vld [vmem:[#allocation51_spill] sm:$0xff] }
 0x636   :  { %v1784_v38 = vrot.slane %v1783_v11, 1 }
 0x638   :  { %v1785_v61 = vadd.f32 %v1784_v38, %v1783_v11  ;;  %v5600_v38 = vld [vmem:[#allocation13_spill] sm:$0xff] }
 0x63a   :  { %vm1788_vm3 = vcmp.eq.f32.partialorder %v1785_v61, %v1768_v42  ;;  %vm1787_vm4 = vcmp.gt.f32.partialorder %v1785_v61, %v1773_v20  ;;  %vm1789_vm0 = vcmp.eq.f32.partialorder %v1785_v61, %v1773_v20  ;;  %vm1786_vm13 = vcmp.gt.f32.partialorder %v1785_v61, %v1768_v42  ;;  %v5590_v42 = vld [vmem:[#allocation10_spill] sm:$0xff] }
 0x63b   :  { %vm1791_vm11 = vmand %vm1789_vm0, %vm5581_vm6  ;;  %vm1670_vm0 = vcmp.gt.f32.partialorder %v5587_v2, 0.5 }
 0x63c   :  { %vm1793_vm14 = vmor %vm1787_vm4, %vm1791_vm11  ;;  %v1672_v14 = vsel %vm1670_vm0, 1.0, %v5582_v56 }
 0x63d   :  { %v3542_v19 = vsel %vm1793_vm14, 1.0, %v5582_v56  ;;  %vm1790_vm7 = vmand %vm1788_vm3, %vm5584_vm5  ;;  %v1674_v48 = vsel %vm4181_vm9, 0.0, %v1672_v14  ;;  %vm5589_vm9 = vcmask 130048  }
 0x63e   :  { %v1801_v17 = vsel %vm5585_vm2, %v3542_v19, 0.0  ;;  %vm1792_vm10 = vmor %vm1786_vm13, %vm1790_vm7  ;;  %vm5596_vm13 = vcmask 64512   ;;  %v5601_v19 = vld [vmem:[#allocation85_spill] sm:$0xff] }
 0x63f   :  { %1802 = vadd.xlane.f32.xlu0 %v1801_v17  ;;  %v3541_v33 = vsel %vm1792_vm10, 1.0, %v5582_v56  ;;  %vm5593_vm11 = vmmov %vm5589_vm9  ;;  %vm1671_vm4 = vcmp.gt.f32.partialorder %v5601_v19, 0.5 }
 0x640   :  { %v1798_v9 = vsel %vm5586_vm12, %v3541_v33, 0.0  ;;  %vm5594_vm10 = vmmov %vm5589_vm9  ;;  %v5603_v33 = vld [vmem:[#allocation15_spill] sm:$0xff] }
 0x641   :  { %1799 = vadd.xlane.f32.xlu1 %v1798_v9  ;;  %vm5598_vm6 = vmmov %vm5596_vm13 }
 0x652   :  { %1819 = vperm.xlu1 %3682, %v3688_v52  }
 0x655   :  { %1814 = vperm.xlu0 %3681, %v3690_v10   ;;  %v5588_v10 = vld [vmem:[#allocation11_spill] sm:$0xff] }
 0x6c8   :  { %v1803_v57 = vpop.xlane.xlu0 %1802 }
 0x6c9   :  { %vm1805_vm2 = vcmp.lt.f32.partialorder %v1803_v57, 4.0 }
 0x6ca   :  { %vm1807_vm12 = vmand %vm1805_vm2, %vm1762_vm15  ;;  %v1800_v16 = vpop.xlane.xlu1 %1799 }
 0x6cb   :  { %v4617_v41 = vsel %vm1807_vm12, 1.0, %v5582_v56  ;;  %vm1804_vm14 = vcmp.lt.f32.partialorder %v1800_v16, 4.0  ;;  %vm5592_vm15 = vmmov %vm5589_vm9 }
 0x6cc   :  { %vm1806_vm3 = vmand %vm1804_vm14, %vm1761_vm8  ;;  %v1811_v18 = vmul.f32 %v4617_v41, %v4586_v32 }
 0x6cd   :  { %v4624_v24 = vsel %vm1806_vm3, 1.0, %v5582_v56 }
 0x6ce   :  { %v1824_v12 = vmul.f32 %v4624_v24, %v1674_v48  ;;  %v1820_v30 = vpop.permute.xlu1 %1819  ;;  %v1810_v52 = vmul.f32 %v4624_v24, %v4577_v43 }
 0x6cf   :  { %v1823_v15 = vmul.f32 %v1820_v30, %v1811_v18 }
 0x6d0   :  { %v1815_v6 = vpop.permute.xlu0 %1814  ;;  %v1840_v49 = vrot.slane %v1824_v12, %v5588_v10  ;;  %v1829_v20 = vrot.slane %v1824_v12, %v3781_v5  ;;  %v1862_v37 = vrot.slane %v1824_v12, %v5590_v42  ;;  %v1851_v63 = vrot.slane %v1824_v12, %v5591_v60 }
 0x6d1   :  { %v1822_v4 = vmul.f32 %v1815_v6, %v1810_v52  ;;  %v1873_v61 = vrot.slane %v1824_v12, %v5600_v38  ;;  %v1906_v17 = vrot.slane %v1824_v12, %v5602_v31  ;;  %v1895_v9 = vrot.slane %v1824_v12, %v5603_v33 }
 0x6d2   :  { %1842 = vbcast.lane.b32.xlu0 %v1840_v49, 256  ;;  %1831 = vbcast.lane.b32.xlu1 %v1829_v20, 256 }
 0x6d3   :  { %3639 = vmatprep.mubr.msk.f32.mxu0 %vm5589_vm9, %v1822_v4 }
 0x6d4   :  { %3640 = vmatmul.mubr.msk.f32.vlgmr.msra.gmra.mxu0 %vm5592_vm15, %v1823_v15 }
 0x6d5   :  { %3650 = vmatpush3.msra.mxu0 %v2513_v13  ;;  %3653 = vmatprep.mubr.msk.f32.mxu0 %vm5593_vm11, %v4577_v43  ;;  %v5599_v43 = vld [vmem:[#allocation12_spill] sm:$0xff] }
 0x6d6   :  { %1864 = vbcast.lane.b32.xlu0 %v1862_v37, 256  ;;  %1853 = vbcast.lane.b32.xlu1 %v1851_v63, 256  ;;  %v1884_v11 = vrot.slane %v1824_v12, %v5599_v43  ;;  %v2515_v12 = vld [vmem:[#allocation2 + $0x68] sm:$0xff] }
 0x6d7   :  { %3651 = vmatprep.subr.mxu0 %v2512_v34  ;;  %3642 = vmatprep.subr.mxu1 %v2515_v12 }
 0x6d8   :  { %3652 = vmatpush3.msra.mxu0 %v2512_v34  ;;  %3643 = vmatpush3.msra.mxu1 %v2515_v12 }
 0x6d9   :  { %3654 = vmatmul.mubr.msk.f32.vlgmr.msra.gmra.mxu0 %vm5594_vm10, %v4586_v32  ;;  %3661 = vmatprep.subr.mxu0 %v2969_v1  ;;  %v1673_v32 = vsel %vm1671_vm4, 1.0, %v5582_v56 }
 0x6da   :  { %1846 = vbcast.lane.b32.xlu0 %v1840_v49, 264  ;;  %1835 = vbcast.lane.b32.xlu1 %v1829_v20, 264  ;;  %v1675_v27 = vsel %vm4187_vm1, 0.0, %v1673_v32 }
 0x6db   :  { %3663 = vmatprep.mubr.msk.f32.mxu0 %vm5596_vm13, %v5595_v35  ;;  %3662 = vmatpush3.msra.mxu0 %v2969_v1  ;;  %v1825_v26 = vmul.f32 %v4617_v41, %v1675_v27 }
 0x6dd   :  { %3664 = vmatmul.mubr.msk.f32.vlgmr.msra.gmra.mxu0 %vm5598_vm6, %v5597_v50  ;;  %v1928_v13 = vrot.slane %v1825_v26, %v5588_v10  ;;  %v1917_v2 = vrot.slane %v1825_v26, %v3781_v5  ;;  %v1950_v56 = vrot.slane %v1825_v26, %v5590_v42  ;;  %v1939_v57 = vrot.slane %v1825_v26, %v5591_v60 }
 0x6de   :  { %1868 = vbcast.lane.b32.xlu0 %v1862_v37, 264  ;;  %1857 = vbcast.lane.b32.xlu1 %v1851_v63, 264  ;;  %v1972_v7 = vrot.slane %v1825_v26, %v5599_v43  ;;  %v1961_v14 = vrot.slane %v1825_v26, %v5600_v38  ;;  %v1994_v16 = vrot.slane %v1825_v26, %v5602_v31 }
 0x6df   :  { %v1983_v48 = vrot.slane %v1825_v26, %v5603_v33 }
 0x6e2   :  { %1886 = vbcast.lane.b32.xlu0 %v1884_v11, 256  ;;  %1875 = vbcast.lane.b32.xlu1 %v1873_v61, 256 }
 0x6e6   :  { %1890 = vbcast.lane.b32.xlu0 %v1884_v11, 264  ;;  %1879 = vbcast.lane.b32.xlu1 %v1873_v61, 264 }
 0x6ea   :  { %1908 = vbcast.lane.b32.xlu0 %v1906_v17, 256  ;;  %1897 = vbcast.lane.b32.xlu1 %v1895_v9, 256 }
 0x6ee   :  { %1912 = vbcast.lane.b32.xlu0 %v1906_v17, 264  ;;  %1901 = vbcast.lane.b32.xlu1 %v1895_v9, 264 }
 0x6f2   :  { %1930 = vbcast.lane.b32.xlu0 %v1928_v13, 256  ;;  %1919 = vbcast.lane.b32.xlu1 %v1917_v2, 256 }
 0x6f6   :  { %1934 = vbcast.lane.b32.xlu0 %v1928_v13, 264  ;;  %1923 = vbcast.lane.b32.xlu1 %v1917_v2, 264 }
 0x6fa   :  { %1952 = vbcast.lane.b32.xlu0 %v1950_v56, 256  ;;  %1941 = vbcast.lane.b32.xlu1 %v1939_v57, 256 }
 0x6fe   :  { %1956 = vbcast.lane.b32.xlu0 %v1950_v56, 264  ;;  %1945 = vbcast.lane.b32.xlu1 %v1939_v57, 264 }
 0x702   :  { %1974 = vbcast.lane.b32.xlu0 %v1972_v7, 256  ;;  %1963 = vbcast.lane.b32.xlu1 %v1961_v14, 256 }
 0x706   :  { %1978 = vbcast.lane.b32.xlu0 %v1972_v7, 264  ;;  %1967 = vbcast.lane.b32.xlu1 %v1961_v14, 264 }
 0x70a   :  { %1996 = vbcast.lane.b32.xlu0 %v1994_v16, 256  ;;  %1985 = vbcast.lane.b32.xlu1 %v1983_v48, 256 }
 0x70e   :  { %2000 = vbcast.lane.b32.xlu0 %v1994_v16, 264  ;;  %1989 = vbcast.lane.b32.xlu1 %v1983_v48, 264 }
 0x744   :  { %v4662_v18 = vpop.permute.xlu0 %1842  ;;  %v4664_v30 = vpop.permute.xlu1 %1831 }
 0x745   :  { %vm2120_vm15 = vcmp.gt.f32.partialorder %v4664_v30, 0.5 }
 0x748   :  { %v4666_v52 = vpop.permute.xlu0 %1864  ;;  %v4668_v6 = vpop.permute.xlu1 %1853 }
 0x749   :  { %v2003_v10 = vmax.f32 %v4662_v18, %v4666_v52  ;;  %v2002_v49 = vmax.f32 %v4664_v30, %v4668_v6 }
 0x74c   :  { %v4674_v20 = vpop.permute.xlu0 %1846  ;;  %v4676_v4 = vpop.permute.xlu1 %1835 }
 0x74d   :  { %vm2123_vm6 = vcmp.gt.f32.partialorder %v4674_v20, 0.5 }
 0x750   :  { %v4678_v15 = vpop.permute.xlu0 %1868  ;;  %v4680_v42 = vpop.permute.xlu1 %1857 }
 0x751   :  { %v2018_v37 = vmax.f32 %v4674_v20, %v4678_v15  ;;  %v2017_v60 = vmax.f32 %v4676_v4, %v4680_v42 }
 0x754   :  { %v4686_v63 = vpop.permute.xlu0 %1886  ;;  %v4688_v34 = vpop.permute.xlu1 %1875 }
 0x755   :  { %v2005_v1 = vmax.f32 %v2003_v10, %v4686_v63  ;;  %v2004_v35 = vmax.f32 %v2002_v49, %v4688_v34  ;;  %vm2128_vm10 = vcmp.gt.f32.partialorder %v4688_v34, 0.5  ;;  %vm2130_vm13 = vcmp.gt.f32.partialorder %v4686_v63, 0.5 }
 0x758   :  { %v4692_v50 = vpop.permute.xlu0 %1890  ;;  %v4694_v43 = vpop.permute.xlu1 %1879 }
 0x759   :  { %v2020_v11 = vmax.f32 %v2018_v37, %v4692_v50  ;;  %v2019_v38 = vmax.f32 %v2017_v60, %v4694_v43  ;;  %vm2131_vm9 = vcmp.gt.f32.partialorder %v4692_v50, 0.5  ;;  %vm2129_vm11 = vcmp.gt.f32.partialorder %v4694_v43, 0.5 }
 0x75c   :  { %v4698_v61 = vpop.permute.xlu0 %1908  ;;  %v4700_v19 = vpop.permute.xlu1 %1897 }
 0x75d   :  { %v2007_v32 = vmax.f32 %v2005_v1, %v4698_v61  ;;  %v2006_v31 = vmax.f32 %v2004_v35, %v4700_v19 }
 0x760   :  { %v4704_v17 = vpop.permute.xlu0 %1912  ;;  %v4706_v33 = vpop.permute.xlu1 %1901 }
 0x761   :  { %v2022_v9 = vmax.f32 %v2020_v11, %v4704_v17  ;;  %v2021_v27 = vmax.f32 %v2019_v38, %v4706_v33 }
 0x764   :  { %v4710_v26 = vpop.permute.xlu0 %1930  ;;  %v4712_v13 = vpop.permute.xlu1 %1919 }
 0x765   :  { %v2009_v2 = vmax.f32 %v2007_v32, %v4710_v26  ;;  %v2008_v56 = vmax.f32 %v2006_v31, %v4712_v13  ;;  %vm2138_vm1 = vcmp.gt.f32.partialorder %v4710_v26, 0.5  ;;  %vm2136_vm8 = vcmp.gt.f32.partialorder %v4712_v13, 0.5 }
 0x768   :  { %v4716_v57 = vpop.permute.xlu0 %1934  ;;  %v4718_v7 = vpop.permute.xlu1 %1923 }
 0x769   :  { %v2024_v14 = vmax.f32 %v2022_v9, %v4716_v57  ;;  %v2023_v16 = vmax.f32 %v2021_v27, %v4718_v7  ;;  %vm2139_vm5 = vcmp.gt.f32.partialorder %v4716_v57, 0.5  ;;  %vm2137_vm7 = vcmp.gt.f32.partialorder %v4718_v7, 0.5 }
 0x76c   :  { %v4722_v48 = vpop.permute.xlu0 %1952  ;;  %v4724_v12 = vpop.permute.xlu1 %1941 }
 0x76d   :  { %v2011_v10 = vmax.f32 %v2009_v2, %v4722_v48  ;;  %v2010_v49 = vmax.f32 %v2008_v56, %v4724_v12  ;;  %vm2142_vm0 = vcmp.gt.f32.partialorder %v4722_v48, 0.5  ;;  %vm2140_vm2 = vcmp.gt.f32.partialorder %v4724_v12, 0.5 }
 0x770   :  { %v4728_v37 = vpop.permute.xlu0 %1956  ;;  %v4730_v60 = vpop.permute.xlu1 %1945 }
 0x771   :  { %v2026_v1 = vmax.f32 %v2024_v14, %v4728_v37  ;;  %v2025_v35 = vmax.f32 %v2023_v16, %v4730_v60  ;;  %vm2143_vm12 = vcmp.gt.f32.partialorder %v4728_v37, 0.5  ;;  %vm2141_vm14 = vcmp.gt.f32.partialorder %v4730_v60, 0.5 }
 0x774   :  { %v4734_v11 = vpop.permute.xlu0 %1974  ;;  %v4736_v38 = vpop.permute.xlu1 %1963 }
 0x775   :  { %v2013_v32 = vmax.f32 %v2011_v10, %v4734_v11  ;;  %v2012_v31 = vmax.f32 %v2010_v49, %v4736_v38  ;;  %vm2144_vm3 = vcmp.gt.f32.partialorder %v4736_v38, 0.5 }
 0x778   :  { %v4740_v9 = vpop.permute.xlu0 %1978  ;;  %v4742_v27 = vpop.permute.xlu1 %1967 }
 0x779   :  { %v2028_v2 = vmax.f32 %v2026_v1, %v4740_v9  ;;  %v2027_v56 = vmax.f32 %v2025_v35, %v4742_v27  ;;  %v3543_v35 = vld [vmem:[#allocation2 + $0x30] ss:$0 sm:$0xff]  ;;  %vm2145_vm4 = vcmp.gt.f32.partialorder %v4742_v27, 0.5 }
 0x77c   :  { %v4746_v8 = vpop.permute.xlu0 %1996  ;;  %v4748_v14 = vpop.permute.xlu1 %1985 }
 0x77d   :  { %v2015_v16 = vmax.f32 %v2013_v32, %v4746_v8  ;;  %v2014_v3 = vmax.f32 %v2012_v31, %v4748_v14 }
 0x77f   :  { %v4752_v47 = vmax.f32 %v2014_v3, %v2015_v16  ;;  %v5604_v3 = vld [vmem:[#allocation50_spill] sm:$0xff] }
 0x780   :  { %v4754_v10 = vpop.permute.xlu0 %2000  ;;  %v4756_v49 = vpop.permute.xlu1 %1989 }
 0x781   :  { %v2030_v39 = vmax.f32 %v2028_v2, %v4754_v10  ;;  %v2029_v1 = vmax.f32 %v2027_v56, %v4756_v49 }
 0x783   :  { %v4760_v46 = vmax.f32 %v2029_v1, %v2030_v39 }
 0x794   :  { %v3641_v58 = vpop.f32.mrf.mxu0 }
 0x795   :  { %v4762_v28 = vadd.f32 %v3641_v58, %v3543_v35 }
 0x796   :  { %v2111_v21 = vpop.f32.mrf.mxu0 }
 0x797   :  { %v2203_v32 = vcombine.high %v4762_v28, %v4762_v28  ;;  %v2210_v31 = vrot.slane %v4762_v28, %v5604_v3  ;;  %v4768_v16 = vadd.f32 %v3543_v35, %v2111_v21 }
 0x799   :  { %v2217_v45 = vrot.slane %v2203_v32, %v5604_v3  ;;  %v2218_v2 = vcombine.high %v2210_v31, %v2210_v31  ;;  %v2226_v56 = vrot.slane %v2210_v31, %v5604_v3  ;;  %v2154_v39 = vcombine.high %v4768_v16, %v4768_v16 }
 0x79a   :  { %v2161_v21 = vrot.slane %v4768_v16, %v5604_v3 }
 0x79b   :  { %v2219_v58 = vcombine.high %v2217_v45, %v2217_v45  ;;  %v2240_v1 = vrot.slane %v2218_v2, %v5604_v3  ;;  %v2248_v40 = vcombine.high %v2226_v56, %v2226_v56  ;;  %v2168_v35 = vrot.slane %v2154_v39, %v5604_v3 }
 0x79c   :  { %v4784_v32 = vrot.slane %v2217_v45, %v5604_v3  ;;  %v2351_v29 = vrot.slane %v2226_v56, %v3781_v5 }
 0x79d   :  { %v2250_v31 = vcombine.high %v2240_v1, %v2240_v1  ;;  %v4788_v2 = vrot.slane %v2219_v58, %v5604_v3  ;;  %v2355_v44 = vrot.slane %v2240_v1, %v3781_v5  ;;  %v2359_v39 = vrot.slane %v2248_v40, %v3781_v5 }
 0x79e   :  { %v2169_v58 = vcombine.high %v2161_v21, %v2161_v21  ;;  %v2170_v56 = vcombine.high %v2168_v35, %v2168_v35  ;;  %v2177_v1 = vrot.slane %v2161_v21, %v5604_v3  ;;  %v2249_v40 = vcombine.high %v4784_v32, %v4784_v32 }
 0x79f   :  { %v2363_v45 = vrot.slane %v2250_v31, %v3781_v5  ;;  %v2367_v0 = vrot.slane %v4784_v32, %v3781_v5  ;;  %v2184_v31 = vrot.slane %v2168_v35, %v5604_v3  ;;  %v2251_v21 = vcombine.high %v4788_v2, %v4788_v2 }
 0x7a0   :  { %v2412_v62 = vsel %vm2136_vm8, %v2351_v29, -1e+30  ;;  %v2413_v53 = vsel %vm2137_vm7, %v2351_v29, -1e+30  ;;  %v2414_v32 = vsel %vm2138_vm1, %v2355_v44, -1e+30  ;;  %v4826_v35 = vrot.slane %v4788_v2, %v3781_v5 }
 0x7a1   :  { %v4830_v13 = vsel %vm2139_vm5, %v2355_v44, -1e+30  ;;  %v2416_v29 = vsel %vm2140_vm2, %v2359_v39, -1e+30  ;;  %v4836_v26 = vsel %vm2141_vm14, %v2359_v39, -1e+30  ;;  %v2191_v59 = vrot.slane %v2169_v58, %v5604_v3 }
 0x7a2   :  { %v4840_v7 = vsel %vm2142_vm0, %v2363_v45, -1e+30  ;;  %v2198_v2 = vrot.slane %v2170_v56, %v5604_v3  ;;  %v2199_v23 = vcombine.high %v2177_v1, %v2177_v1  ;;  %vm2134_vm1 = vcmp.gt.f32.partialorder %v4698_v61, 0.5 }
 0x7a3   :  { %vm2132_vm8 = vcmp.gt.f32.partialorder %v4700_v19, 0.5  ;;  %v4848_v44 = vsel %vm2143_vm12, %v2363_v45, -1e+30  ;;  %v4852_v57 = vsel %vm2144_vm3, %v2367_v0, -1e+30  ;;  %v2200_v48 = vcombine.high %v2184_v31, %v2184_v31 }
 0x7a4   :  { %v2319_v12 = vrot.slane %v2177_v1, %v3781_v5  ;;  %v2201_v60 = vcombine.high %v2191_v59, %v2191_v59  ;;  %v2202_v39 = vcombine.high %v2198_v2, %v2198_v2  ;;  %v2323_v58 = vrot.slane %v2191_v59, %v3781_v5 }
 0x7a5   :  { %v2327_v56 = vrot.slane %v2199_v23, %v3781_v5  ;;  %v4859_v25 = vsel %vm2145_vm4, %v2367_v0, -1e+30  ;;  %vm5605_vm5 = vcmask 261248   ;;  %v2335_v38 = vrot.slane %v2184_v31, %v3781_v5 }
 0x7a6   :  { %v2442_v37 = vsel %vm5605_vm5, %v2412_v62, -inf  ;;  %vm5606_vm7 = vmmov %vm5605_vm5  ;;  %vm2133_vm0 = vcmp.gt.f32.partialorder %v4706_v33, 0.5  ;;  %v2331_v23 = vrot.slane %v2201_v60, %v3781_v5  ;;  %v2339_v0 = vrot.slane %v2198_v2, %v3781_v5 }
 0x7a7   :  { %v4863_v45 = vsel %vm5606_vm7, %v2414_v32, -inf  ;;  %vm5607_vm2 = vmmov %vm5605_vm5  ;;  %v2343_v27 = vrot.slane %v2200_v48, %v3781_v5  ;;  %v2396_v62 = vsel %vm2120_vm15, %v2319_v12, -1e+30  ;;  %vm5609_vm14 = vcmp.gt.f32.partialorder %v4676_v4, 0.5 }
 0x7a8   :  { %v4868_v1 = vsel %vm5607_vm2, %v2416_v29, -inf  ;;  %vm5608_vm12 = vmmov %vm5607_vm2  ;;  %v2397_v31 = vsel %vm5609_vm14, %v2319_v12, -1e+30  ;;  %vm5610_vm3 = vcmp.gt.f32.partialorder %v4662_v18, 0.5  ;;  %vm2135_vm4 = vcmp.gt.f32.partialorder %v4704_v17, 0.5 }
 0x7a9   :  { %v4871_v59 = vsel %vm5608_vm12, %v2413_v53, -inf  ;;  %v2398_v32 = vsel %vm5610_vm3, %v2323_v58, -1e+30  ;;  %v2347_v53 = vrot.slane %v2202_v39, %v3781_v5  ;;  %v2399_v29 = vsel %vm2123_vm6, %v2323_v58, -1e+30 }
 0x7aa   :  { %vm5611_vm5 = vcmp.gt.f32.partialorder %v4668_v6, 0.5  ;;  %vm5612_vm7 = vcmp.gt.f32.partialorder %v4666_v52, 0.5  ;;  %vm2146_vm15 = vcmp.gt.f32.partialorder %v4734_v11, 0.5  ;;  %v4892_v4 = vrot.slane %v2249_v40, %v3781_v5 }
 0x7ab   :  { %v2400_v2 = vsel %vm5611_vm5, %v2327_v56, -1e+30  ;;  %v2402_v30 = vsel %vm5612_vm7, %v2331_v23, -1e+30  ;;  %vm5613_vm2 = vcmp.gt.f32.partialorder %v4680_v42, 0.5  ;;  %vm5614_vm12 = vcmp.gt.f32.partialorder %v4678_v15, 0.5 }
 0x7ac   :  { %v2401_v18 = vsel %vm5613_vm2, %v2327_v56, -1e+30  ;;  %v2403_v48 = vsel %vm5614_vm12, %v2331_v23, -1e+30  ;;  %v2404_v20 = vsel %vm2128_vm10, %v2335_v38, -1e+30  ;;  %v2379_v40 = vrot.slane %v2251_v21, %v3781_v5 }
 0x7ad   :  { %vm2150_vm6 = vcmp.gt.f32.partialorder %v4746_v8, 0.5  ;;  %vm2148_vm14 = vcmp.gt.f32.partialorder %v4748_v14, 0.5  ;;  %v2405_v52 = vsel %vm2129_vm11, %v2335_v38, -1e+30  ;;  %v2406_v6 = vsel %vm2130_vm13, %v2339_v0, -1e+30 }
 0x7ae   :  { %v2407_v42 = vsel %vm2131_vm9, %v2339_v0, -1e+30  ;;  %vm5615_vm3 = vcmask 261248   ;;  %v2408_v43 = vsel %vm2132_vm8, %v2343_v27, -1e+30  ;;  %vm2147_vm12 = vcmp.gt.f32.partialorder %v4740_v9, 0.5 }
 0x7af   :  { %v2428_v15 = vsel %vm5615_vm3, %v2396_v62, -inf  ;;  %vm5616_vm5 = vmmov %vm5615_vm3  ;;  %v2410_v63 = vsel %vm2134_vm1, %v2347_v53, -1e+30  ;;  %vm2151_vm1 = vcmp.gt.f32.partialorder %v4754_v10, 0.5  ;;  %v2409_v61 = vsel %vm2133_vm0, %v2343_v27, -1e+30 }
 0x7b0   :  { %v2429_v34 = vsel %vm5616_vm5, %v2398_v32, -inf  ;;  %vm5617_vm10 = vmmov %vm5615_vm3  ;;  %vm2149_vm5 = vcmp.gt.f32.partialorder %v4756_v49, 0.5  ;;  %v2426_v17 = vsel %vm2150_vm6, %v2379_v40, -1e+30 }
 0x7b1   :  { %v2430_v12 = vsel %vm5617_vm10, %v2400_v2, -inf  ;;  %vm5618_vm7 = vmmov %vm5615_vm3 }
 0x7b2   :  { %v2432_v60 = vsel %vm5618_vm7, %v2402_v30, -inf  ;;  %v2431_v39 = vmax.f32 %v2428_v15, %v2430_v12  ;;  %vm5619_vm11 = vmmov %vm5615_vm3  ;;  %v2422_v12 = vsel %vm2146_vm15, %v4826_v35, -1e+30 }
 0x7b3   :  { %v2433_v58 = vmax.f32 %v2429_v34, %v2432_v60  ;;  %v2434_v50 = vsel %vm5619_vm11, %v2404_v20, -inf  ;;  %vm5620_vm9 = vmmov %vm5615_vm3 }
 0x7b4   :  { %v2436_v21 = vsel %vm5620_vm9, %v2406_v6, -inf  ;;  %vm5621_vm13 = vmmov %vm5615_vm3  ;;  %v2435_v23 = vmax.f32 %v2431_v39, %v2434_v50 }
 0x7b5   :  { %v2459_v56 = vsel %vm5621_vm13, %v2397_v31, -inf  ;;  %vm5622_vm2 = vmmov %vm5615_vm3  ;;  %v2437_v0 = vmax.f32 %v2433_v58, %v2436_v21 }
 0x7b6   :  { %v2460_v38 = vsel %vm5622_vm2, %v2399_v29, -inf  ;;  %vm5623_vm3 = vmmov %vm5622_vm2 }
 0x7b7   :  { %v2461_v19 = vsel %vm5623_vm3, %v2401_v18, -inf  ;;  %vm5624_vm8 = vmmov %vm5622_vm2 }
 0x7b8   :  { %v2463_v62 = vsel %vm5624_vm8, %v2403_v48, -inf  ;;  %vm5625_vm10 = vmmov %vm5622_vm2  ;;  %v2462_v31 = vmax.f32 %v2459_v56, %v2461_v19  ;;  %v2411_v48 = vsel %vm2135_vm4, %v2347_v53, -1e+30 }
 0x7b9   :  { %v2438_v32 = vsel %vm5625_vm10, %v2408_v43, -inf  ;;  %v2464_v2 = vmax.f32 %v2460_v38, %v2463_v62  ;;  %vm5626_vm7 = vmmov %vm5622_vm2 }
 0x7ba   :  { %v2439_v29 = vmax.f32 %v2435_v23, %v2438_v32  ;;  %v2440_v30 = vsel %vm5626_vm7, %v2410_v63, -inf  ;;  %vm5627_vm11 = vmmov %vm5622_vm2 }
 0x7bb   :  { %v2465_v20 = vsel %vm5627_vm11, %v2405_v52, -inf  ;;  %vm5628_vm9 = vmmov %vm5622_vm2  ;;  %v2441_v34 = vmax.f32 %v2437_v0, %v2440_v30  ;;  %v2424_v52 = vsel %vm2148_vm14, %v4892_v4, -1e+30  ;;  %vm2490_vm11 = vcmp.gt.f32.partialorder %v4752_v47, 0.5  ;;  %v3550_v47 = vld [vmem:[#allocation2 + $0x70] ss:$0 sm:$0xff] }
 0x7bc   :  { %v2467_v18 = vsel %vm5628_vm9, %v2407_v42, -inf  ;;  %v2466_v6 = vmax.f32 %v2462_v31, %v2465_v20  ;;  %vm5629_vm13 = vmmov %vm5622_vm2  ;;  %v2443_v60 = vmax.f32 %v2439_v29, %v2442_v37  ;;  %vm2491_vm9 = vcmp.gt.f32.partialorder %v4760_v46, 0.5 }
 0x7bd   :  { %v2468_v15 = vmax.f32 %v2464_v2, %v2467_v18  ;;  %v2475_v33 = vsel %vm5629_vm13, %v4830_v13, -inf  ;;  %vm5630_vm0 = vmmov %vm5622_vm2  ;;  %v2445_v53 = vmax.f32 %v2441_v34, %v4863_v45  ;;  %vm5643_vm13 = vcmask 130048  }
 0x7be   :  { %v2469_v27 = vsel %vm5630_vm0, %v2409_v61, -inf  ;;  %vm5631_vm4 = vmmov %vm5630_vm0  ;;  %v2447_v63 = vmax.f32 %v2443_v60, %v4868_v1  ;;  %v2423_v1 = vsel %vm2147_vm12, %v4826_v35, -1e+30  ;;  %v2514_v35 = vld [vmem:[#allocation2 + $0x60] sm:$0xff] }
 0x7bf   :  { %v2470_v43 = vmax.f32 %v2466_v6, %v2469_v27  ;;  %v2477_v13 = vsel %vm5631_vm4, %v4836_v26, -inf  ;;  %vm5632_vm2 = vmmov %vm5630_vm0  ;;  %3644 = vmatprep.subr.mxu1 %v2514_v35 }
 0x7c0   :  { %v2471_v42 = vsel %vm5632_vm2, %v2411_v48, -inf  ;;  %vm5633_vm15 = vmmov %vm5630_vm0  ;;  %3645 = vmatpush3.msra.mxu1 %v2514_v35 }
 0x7c1   :  { %v2448_v11 = vsel %vm5633_vm15, %v4840_v7, -inf  ;;  %vm5634_vm3 = vmmov %vm5630_vm0  ;;  %v2472_v39 = vmax.f32 %v2468_v15, %v2471_v42  ;;  %v2474_v8 = vmax.f32 %v2470_v43, %v4871_v59  ;;  %v2427_v59 = vsel %vm2151_vm1, %v2379_v40, -1e+30 }
 0x7c2   :  { %v2449_v37 = vmax.f32 %v2445_v53, %v2448_v11  ;;  %v2450_v14 = vsel %vm5634_vm3, %v4852_v57, -inf  ;;  %vm5635_vm6 = vmmov %vm5630_vm0  ;;  %v2425_v57 = vsel %vm2149_vm5, %v4892_v4, -1e+30  ;;  %vm5649_vm15 = vcmp.gt.f32.partialorder %v4311_v54, 0.5 }
 0x7c3   :  { %v2451_v58 = vmax.f32 %v2447_v63, %v2450_v14  ;;  %v2452_v45 = vsel %vm5635_vm6, %v2422_v12, -inf  ;;  %vm5636_vm14 = vmmov %vm5630_vm0  ;;  %v2476_v7 = vmax.f32 %v2472_v39, %v2475_v33  ;;  %v2478_v56 = vmax.f32 %v2474_v8, %v2477_v13 }
 0x7c4   :  { %v2454_v50 = vsel %vm5636_vm14, %v2424_v52, -inf  ;;  %vm5637_vm8 = vmmov %vm5630_vm0  ;;  %v2453_v21 = vmax.f32 %v2449_v37, %v2452_v45  ;;  %vm5652_vm6 = vcmp.gt.f32.partialorder %v4326_v22, 0.5  ;;  %vm5653_vm14 = vcmp.gt.f32.partialorder %v4332_v55, 0.5  ;;  %v5658_v55 = vld [vmem:[#allocation56_spill] sm:$0xff] }
 0x7c5   :  { %v2456_v26 = vsel %vm5637_vm8, %v2426_v17, -inf  ;;  %vm5638_vm10 = vmmov %vm5630_vm0  ;;  %v2455_v0 = vmax.f32 %v2451_v58, %v2454_v50  ;;  %vm5654_vm8 = vcmask 130112  }
 0x7c6   :  { %v2479_v38 = vsel %vm5638_vm10, %v4848_v44, -inf  ;;  %vm5639_vm7 = vmmov %vm5630_vm0  ;;  %v2457_v19 = vmax.f32 %v2453_v21, %v2456_v26 }
 0x7c7   :  { %v2481_v23 = vsel %vm5639_vm7, %v4859_v25, -inf  ;;  %v2480_v62 = vmax.f32 %v2476_v7, %v2479_v38  ;;  %vm5640_vm12 = vmmov %vm5630_vm0 }
 0x7c8   :  { %v2482_v9 = vmax.f32 %v2478_v56, %v2481_v23  ;;  %v2483_v61 = vsel %vm5640_vm12, %v2423_v1, -inf  ;;  %v2458_v32 = vmax.f32 %v2455_v0, %v2457_v19  ;;  %vm5641_vm5 = vmmov %vm5630_vm0  ;;  %v5647_v23 = vld [vmem:[#allocation71_spill] sm:$0xff] }
 0x7c9   :  { %v2484_v49 = vmax.f32 %v2480_v62, %v2483_v61  ;;  %v2485_v10 = vsel %vm5641_vm5, %v2425_v57, -inf  ;;  %vm5642_vm1 = vmmov %vm5630_vm0  ;;  %vm5648_vm2 = vcmp.gt.f32.partialorder %v5647_v23, 0.5  ;;  %vm5659_vm5 = vcmp.gt.f32.partialorder %v5658_v55, 0.5  ;;  %v5684_v23 = vld [vmem:[#allocation68_spill] sm:$0xff] }
 0x7ca   :  { %v2487_v4 = vsel %vm5642_vm1, %v2427_v59, -inf  ;;  %2494 = vrot.lane.b32.xlu1 %v2458_v32, %s3743_s1  ;;  %v2486_v44 = vmax.f32 %v2482_v9, %v2485_v10  ;;  %vm5644_vm0 = vmmov %vm5643_vm13  ;;  %v5645_v59 = vld [vmem:[#allocation69_spill] sm:$0xff]  ;;  %v5650_v10 = vld [vmem:[#allocation70_spill] sm:$0xff] }
 0x7cb   :  { %v2488_v40 = vmax.f32 %v2484_v49, %v2487_v4  ;;  %vm5646_vm4 = vcmp.gt.f32.partialorder %v5645_v59, 0.5  ;;  %vm5651_vm3 = vcmp.gt.f32.partialorder %v5650_v10, 0.5  ;;  %vm5655_vm10 = vmmov %vm5654_vm8 }
 0x7cc   :  { %vm5656_vm7 = vmmov %vm5654_vm8 }
 0x7cd   :  { %v2489_v25 = vmax.f32 %v2486_v44, %v2488_v40  ;;  %vm5657_vm12 = vmmov %vm5656_vm7 }
 0x7cf   :  { %2496 = vrot.lane.b32.xlu0 %v2489_v25, %s3743_s1 }
 0x83c   :  { %v2495_v31 = vpop.permute.xlu1 %2494 }
 0x83d   :  { %v2500_v2 = vadd.f32 %v2495_v31, %v4768_v16  ;;  %v3655_v16 = vpop.f32.mrf.mxu0 }
 0x83f   :  { %v2506_v29 = vsel %vm2490_vm11, %v2500_v2, 0.0  ;;  %v2663_v12 = vpop.f32.mrf.mxu0 }
 0x840   :  { %v2508_v20 = vmax.f32 %v2506_v29, 0.0 }
 0x841   :  { %v2497_v30 = vpop.permute.xlu0 %2496 }
 0x842   :  { %v2501_v18 = vadd.f32 %v2497_v30, %v4762_v28  ;;  %v2510_v48 = vmul.f32 %v2508_v20, %v4624_v24 }
 0x844   :  { %v2507_v6 = vsel %vm2491_vm9, %v2501_v18, 0.0  ;;  %3646 = vmatprep.mubr.msk.f32.mxu1 %vm5643_vm13, %v2510_v48  ;;  %vm5664_vm9 = vcmp.gt.f32.partialorder %v4275_v36, 0.5 }
 0x845   :  { %v2509_v15 = vmax.f32 %v2507_v6, 0.0 }
 0x847   :  { %v2511_v34 = vmul.f32 %v2509_v15, %v4617_v41 }
 0x849   :  { %3647 = vmatmul.mubr.msk.f32.vlgmr.msra.gmra.mxu1 %vm5644_vm0, %v2511_v34 }
 0x909   :  { %v3648_v33 = vpop.f32.mrf.mxu1 }
 0x90a   :  { %v2669_v27 = vadd.f32 %v3655_v16, %v3648_v33 }
 0x90b   :  { %v2588_v60 = vpop.f32.mrf.mxu1 }
 0x90c   :  { %v4983_v43 = vadd.f32 %v3550_v47, %v2669_v27  ;;  %v2664_v28 = vadd.f32 %v2663_v12, %v2588_v60  ;;  %v5660_v27 = vld [vmem:[#allocation59_spill] sm:$0xff] }
 0x90d   :  { %vm5661_vm1 = vcmp.gt.f32.partialorder %v5660_v27, 0.5  ;;  %v5662_v60 = vld [vmem:[#allocation55_spill] sm:$0xff] }
 0x90e   :  { %v2730_v46 = vcombine.high %v4983_v43, %v4983_v43  ;;  %v2737_v24 = vrot.slane %v4983_v43, %v5604_v3  ;;  %v4989_v52 = vadd.f32 %v3550_v47, %v2664_v28  ;;  %vm5663_vm11 = vcmp.gt.f32.partialorder %v5662_v60, 0.5 }
 0x910   :  { %v2744_v41 = vrot.slane %v2730_v46, %v5604_v3  ;;  %v2745_v17 = vcombine.high %v2737_v24, %v2737_v24  ;;  %v2753_v53 = vrot.slane %v2737_v24, %v5604_v3  ;;  %v2681_v13 = vcombine.high %v4989_v52, %v4989_v52 }
 0x911   :  { %v2688_v42 = vrot.slane %v4989_v52, %v5604_v3 }
 0x912   :  { %v2746_v63 = vcombine.high %v2744_v41, %v2744_v41  ;;  %v2767_v11 = vrot.slane %v2745_v17, %v5604_v3  ;;  %v2760_v37 = vrot.slane %v2744_v41, %v5604_v3  ;;  %v2695_v14 = vrot.slane %v2681_v13, %v5604_v3  ;;  %v5665_v41 = vld [vmem:[#allocation58_spill] sm:$0xff] }
 0x913   :  { %v2775_v39 = vcombine.high %v2753_v53, %v2753_v53  ;;  %v2814_v8 = vrot.slane %v2753_v53, %v3781_v5  ;;  %v2696_v58 = vcombine.high %v2688_v42, %v2688_v42  ;;  %v2704_v45 = vrot.slane %v2688_v42, %v5604_v3  ;;  %v5667_v53 = vld [vmem:[#allocation57_spill] sm:$0xff] }
 0x914   :  { %v2774_v50 = vrot.slane %v2746_v63, %v5604_v3  ;;  %v2777_v26 = vcombine.high %v2767_v11, %v2767_v11  ;;  %v2818_v21 = vrot.slane %v2767_v11, %v3781_v5  ;;  %v2776_v1 = vcombine.high %v2760_v37, %v2760_v37  ;;  %v5669_v42 = vld [vmem:[#allocation61_spill] sm:$0xff]  ;;  %v5671_v11 = vld [vmem:[#allocation60_spill] sm:$0xff] }
 0x915   :  { %v2697_v7 = vcombine.high %v2695_v14, %v2695_v14  ;;  %v2822_v56 = vrot.slane %v2775_v39, %v3781_v5  ;;  %v5006_v57 = vrot.slane %v2760_v37, %v3781_v5  ;;  %v2875_v38 = vsel %vm5646_vm4, %v2814_v8, -1e+30 }
 0x916   :  { %v2876_v0 = vsel %vm5648_vm2, %v2814_v8, -1e+30  ;;  %v2711_v19 = vrot.slane %v2695_v14, %v5604_v3  ;;  %v2718_v62 = vrot.slane %v2696_v58, %v5604_v3  ;;  %v2726_v35 = vcombine.high %v2704_v45, %v2704_v45  ;;  %v5673_v14 = vld [vmem:[#allocation62_spill] sm:$0xff]  ;;  %v5675_v58 = vld [vmem:[#allocation64_spill] sm:$0xff] }
 0x917   :  { %v2725_v9 = vrot.slane %v2697_v7, %v5604_v3  ;;  %v2778_v61 = vcombine.high %v2774_v50, %v2774_v50  ;;  %v5016_v32 = vrot.slane %v2777_v26, %v3781_v5  ;;  %v2877_v49 = vsel %vm5649_vm15, %v2818_v21, -1e+30  ;;  %v5680_v7 = vld [vmem:[#allocation66_spill] sm:$0xff] }
 0x918   :  { %v2878_v4 = vsel %vm5651_vm3, %v2818_v21, -1e+30  ;;  %v2727_v44 = vcombine.high %v2711_v19, %v2711_v19  ;;  %v2728_v40 = vcombine.high %v2718_v62, %v2718_v62  ;;  %v2782_v25 = vrot.slane %v2704_v45, %v3781_v5 }
 0x919   :  { %v2786_v31 = vrot.slane %v2718_v62, %v3781_v5  ;;  %v5025_v2 = vrot.slane %v2774_v50, %v3781_v5  ;;  %v5029_v29 = vsel %vm5652_vm6, %v2822_v56, -1e+30  ;;  %v2729_v30 = vcombine.high %v2725_v9, %v2725_v9  ;;  %v5678_v50 = vld [vmem:[#allocation63_spill] sm:$0xff] }
 0x91a   :  { %v2790_v54 = vrot.slane %v2726_v35, %v3781_v5  ;;  %v2880_v20 = vsel %vm5653_vm14, %v2822_v56, -1e+30  ;;  %v5035_v18 = vsel %vm5654_vm8, %v2875_v38, -inf  ;;  %v2794_v48 = vrot.slane %v2728_v40, %v3781_v5 }
 0x91b   :  { %v2798_v6 = vrot.slane %v2711_v19, %v3781_v5  ;;  %v5040_v15 = vsel %vm5655_vm10, %v2877_v49, -inf  ;;  %v2936_v22 = vsel %vm5656_vm7, %v2876_v0, -inf  ;;  %v2938_v34 = vsel %vm5657_vm12, %v2878_v4, -inf  ;;  %vm5682_vm10 = vmmov %vm5656_vm7  ;;  %v5686_v19 = vld [vmem:[#allocation67_spill] sm:$0xff] }
 0x91c   :  { %v2802_v16 = vrot.slane %v2725_v9, %v3781_v5  ;;  %v2806_v33 = vrot.slane %v2727_v44, %v3781_v5  ;;  %v2859_v47 = vsel %vm5659_vm5, %v2782_v25, -1e+30  ;;  %v2860_v12 = vsel %vm5661_vm1, %v2782_v25, -1e+30  ;;  %vm5683_vm12 = vmmov %vm5656_vm7 }
 0x91d   :  { %v2861_v28 = vsel %vm5663_vm11, %v2786_v31, -1e+30  ;;  %v2810_v46 = vrot.slane %v2729_v30, %v3781_v5  ;;  %v2862_v24 = vsel %vm5664_vm9, %v2786_v31, -1e+30  ;;  %vm5666_vm13 = vcmp.gt.f32.partialorder %v5665_v41, 0.5  ;;  %vm5688_vm11 = vmmov %vm5656_vm7 }
 0x91e   :  { %v2863_v17 = vsel %vm5666_vm13, %v2790_v54, -1e+30  ;;  %vm5668_vm0 = vcmp.gt.f32.partialorder %v5667_v53, 0.5  ;;  %vm5670_vm4 = vcmp.gt.f32.partialorder %v5669_v42, 0.5  ;;  %vm5672_vm2 = vcmp.gt.f32.partialorder %v5671_v11, 0.5  ;;  %vm5689_vm9 = vmmov %vm5656_vm7  ;;  %v5706_v53 = vld [vmem:[#allocation76_spill] sm:$0xff] }
 0x91f   :  { %v2865_v13 = vsel %vm5668_vm0, %v2794_v48, -1e+30  ;;  %v2864_v63 = vsel %vm5670_vm4, %v2790_v54, -1e+30  ;;  %v2866_v37 = vsel %vm5672_vm2, %v2794_v48, -1e+30  ;;  %v2838_v8 = vrot.slane %v2776_v1, %v3781_v5  ;;  %vm5690_vm13 = vmmov %vm5656_vm7 }
 0x920   :  { %vm5674_vm15 = vcmp.gt.f32.partialorder %v5673_v14, 0.5  ;;  %vm5676_vm3 = vcmp.gt.f32.partialorder %v5675_v58, 0.5  ;;  %vm5677_vm6 = vcmp.gt.f32.partialorder %v4287_v51, 0.5  ;;  %vm5679_vm14 = vcmp.gt.f32.partialorder %v5678_v50, 0.5  ;;  %vm5691_vm0 = vmmov %vm5656_vm7  ;;  %v5696_v48 = vld [vmem:[#allocation73_spill] sm:$0xff] }
 0x921   :  { %v2867_v39 = vsel %vm5674_vm15, %v2798_v6, -1e+30  ;;  %v2868_v36 = vsel %vm5676_vm3, %v2798_v6, -1e+30  ;;  %v2869_v45 = vsel %vm5677_vm6, %v2802_v16, -1e+30  ;;  %v2842_v21 = vrot.slane %v2778_v61, %v3781_v5  ;;  %vm5692_vm4 = vmmov %vm5691_vm0 }
 0x922   :  { %v2870_v26 = vsel %vm5679_vm14, %v2802_v16, -1e+30  ;;  %vm5681_vm8 = vcmp.gt.f32.partialorder %v5680_v7, 0.5  ;;  %v2891_v59 = vsel %vm5682_vm10, %v2859_v47, -inf  ;;  %v2893_v38 = vsel %vm5656_vm7, %v2863_v17, -inf  ;;  %vm5693_vm2 = vmmov %vm5691_vm0  ;;  %v5698_v16 = vld [vmem:[#allocation65_spill] sm:$0xff] }
 0x923   :  { %v2871_v56 = vsel %vm5681_vm8, %v2806_v33, -1e+30  ;;  %v2895_v1 = vsel %vm5683_vm12, %v2865_v13, -inf  ;;  %vm5685_vm5 = vcmp.gt.f32.partialorder %v5684_v23, 0.5  ;;  %vm5687_vm1 = vcmp.gt.f32.partialorder %v5686_v19, 0.5  ;;  %vm5694_vm15 = vmmov %vm5691_vm0  ;;  %v5714_v7 = vld [vmem:[#allocation72_spill] sm:$0xff] }
 0x924   :  { %v2872_v0 = vsel %vm5685_vm5, %v2806_v33, -1e+30  ;;  %v2874_v51 = vsel %vm5687_vm1, %v2810_v46, -1e+30  ;;  %v2892_v62 = vsel %vm5688_vm11, %v2861_v28, -inf  ;;  %v2894_v9 = vmax.f32 %v2891_v59, %v2893_v38  ;;  %vm5695_vm3 = vmmov %vm5691_vm0  ;;  %v5703_v28 = vld [vmem:[#allocation77_spill] sm:$0xff] }
 0x925   :  { %v2922_v35 = vsel %vm5689_vm9, %v2860_v12, -inf  ;;  %v2923_v61 = vsel %vm5690_vm13, %v2862_v24, -inf  ;;  %v2924_v49 = vsel %vm5691_vm0, %v2864_v63, -inf  ;;  %v2926_v10 = vsel %vm5692_vm4, %v2866_v37, -inf  ;;  %vm5700_vm8 = vmmov %vm5691_vm0  ;;  %v5708_v63 = vld [vmem:[#allocation82_spill] sm:$0xff]  ;;  %v5710_v37 = vld [vmem:[#allocation81_spill] sm:$0xff] }
 0x926   :  { %v2896_v4 = vmax.f32 %v2892_v62, %v2895_v1  ;;  %v2897_v44 = vsel %vm5693_vm2, %v2867_v39, -inf  ;;  %v2925_v40 = vmax.f32 %v2922_v35, %v2924_v49  ;;  %v2927_v25 = vmax.f32 %v2923_v61, %v2926_v10  ;;  %vm5701_vm10 = vmmov %vm5691_vm0  ;;  %v5716_v59 = vld [vmem:[#allocation75_spill] sm:$0xff] }
 0x927   :  { %v2898_v31 = vmax.f32 %v2894_v9, %v2897_v44  ;;  %v2928_v30 = vsel %vm5694_vm15, %v2868_v36, -inf  ;;  %v2930_v54 = vsel %vm5695_vm3, %v2870_v26, -inf  ;;  %vm5697_vm6 = vcmp.gt.f32.partialorder %v5696_v48, 0.5  ;;  %vm5702_vm7 = vmmov %vm5691_vm0  ;;  %v5725_v49 = vld [vmem:[#allocation79_spill] sm:$0xff]  ;;  %v2970_v48 = vld [vmem:[#allocation2 + $0x80] sm:$0xff] }
 0x928   :  { %v2882_v6 = vsel %vm5697_vm6, %v5016_v32, -1e+30  ;;  %vm5699_vm14 = vcmp.gt.f32.partialorder %v5698_v16, 0.5  ;;  %v2899_v55 = vsel %vm5700_vm8, %v2869_v45, -inf  ;;  %v2929_v47 = vmax.f32 %v2925_v40, %v2928_v30  ;;  %vm5705_vm5 = vmmov %vm5691_vm0  ;;  %3656 = vmatprep.subr.mxu1 %v2970_v48 }
 0x929   :  { %v2873_v33 = vsel %vm5699_vm14, %v2810_v46, -1e+30  ;;  %v2931_v27 = vmax.f32 %v2927_v25, %v2930_v54  ;;  %v2901_v12 = vsel %vm5701_vm10, %v2871_v56, -inf  ;;  %v2932_v60 = vsel %vm5702_vm7, %v2872_v0, -inf  ;;  %vm5712_vm13 = vmmov %vm5691_vm0  ;;  %3657 = vmatpush3.msra.mxu1 %v2970_v48 }
 0x92a   :  { %vm5704_vm12 = vcmp.gt.f32.partialorder %v5703_v28, 0.5  ;;  %v2934_v41 = vsel %vm5705_vm5, %v2874_v51, -inf  ;;  %v2900_v17 = vmax.f32 %v2896_v4, %v2899_v55  ;;  %vm5707_vm1 = vcmp.gt.f32.partialorder %v5706_v53, 0.5  ;;  %vm5713_vm4 = vmmov %vm5691_vm0  ;;  %v5727_v4 = vld [vmem:[#allocation78_spill] sm:$0xff] }
 0x92b   :  { %v2884_v24 = vsel %vm5704_vm12, %v5006_v57, -1e+30  ;;  %v2886_v13 = vsel %vm5707_vm1, %v5025_v2, -1e+30  ;;  %v2933_v46 = vmax.f32 %v2929_v47, %v2932_v60  ;;  %v2935_v42 = vmax.f32 %v2931_v27, %v2934_v41  ;;  %vm5718_vm3 = vmmov %vm5691_vm0 }
 0x92c   :  { %vm5709_vm11 = vcmp.gt.f32.partialorder %v5708_v63, 0.5  ;;  %vm5711_vm9 = vcmp.gt.f32.partialorder %v5710_v37, 0.5  ;;  %v2940_v39 = vsel %vm5712_vm13, %v2880_v20, -inf  ;;  %v2902_v58 = vmax.f32 %v2898_v31, %v2901_v12  ;;  %vm5719_vm6 = vmmov %vm5691_vm0  ;;  %v5733_v12 = vld [vmem:[#allocation83_spill] sm:$0xff]  ;;  %v5738_v63 = vld [vmem:[#allocation54_spill] sm:$0xff]  ;;  %v3665_v37 = vpop.f32.mrf.mxu0 }
 0x92d   :  { %v2888_v11 = vsel %vm5709_vm11, %v2838_v8, -1e+30  ;;  %v2890_v14 = vsel %vm5711_vm9, %v2842_v21, -1e+30  ;;  %v2937_v36 = vmax.f32 %v2933_v46, %v2936_v22  ;;  %v2939_v45 = vmax.f32 %v2935_v42, %v2938_v34  ;;  %vm5720_vm14 = vmmov %vm5691_vm0  ;;  %v5737_v46 = vld [vmem:[#allocation53_spill] sm:$0xff] }
 0x92e   :  { %v2942_v50 = vsel %vm5691_vm0, %v2882_v6, -inf  ;;  %v2944_v26 = vsel %vm5713_vm4, %v2884_v24, -inf  ;;  %vm5715_vm2 = vcmp.gt.f32.partialorder %v5714_v7, 0.5  ;;  %vm5717_vm15 = vcmp.gt.f32.partialorder %v5716_v59, 0.5  ;;  %vm5721_vm8 = vmmov %vm5691_vm0 }
 0x92f   :  { %v2881_v56 = vsel %vm5715_vm2, %v5016_v32, -1e+30  ;;  %v2883_v38 = vsel %vm5717_vm15, %v5006_v57, -1e+30  ;;  %v2903_v1 = vsel %vm5718_vm3, %v2873_v33, -inf  ;;  %v2906_v23 = vmax.f32 %v2902_v58, %v5035_v18  ;;  %vm5722_vm10 = vmmov %vm5691_vm0  ;;  %v5723_v57 = vld [vmem:[#allocation74_spill] sm:$0xff] }
 0x930   :  { %v2941_v20 = vmax.f32 %v2937_v36, %v2940_v39  ;;  %v2943_v0 = vmax.f32 %v2939_v45, %v2942_v50  ;;  %v2904_v22 = vmax.f32 %v2900_v17, %v2903_v1  ;;  %v2909_v34 = vsel %vm5719_vm6, %v5029_v29, -inf  ;;  %vm5729_vm1 = vmmov %vm5691_vm0  ;;  %v5735_v17 = vld [vmem:[#allocation80_spill] sm:$0xff]  ;;  %v3555_v39 = vld [vmem:[#allocation2 + $0x88] ss:$0 sm:$0xff] }
 0x931   :  { %v2946_v19 = vsel %vm5720_vm14, %v2886_v13, -inf  ;;  %v2948_v51 = vsel %vm5721_vm8, %v2888_v11, -inf  ;;  %v2950_v32 = vsel %vm5722_vm10, %v2890_v14, -inf  ;;  %v2910_v62 = vmax.f32 %v2906_v23, %v2909_v34  ;;  %vm5730_vm11 = vmmov %vm5691_vm0 }
 0x932   :  { %v2945_v9 = vmax.f32 %v2941_v20, %v2944_v26  ;;  %v2947_v35 = vmax.f32 %v2943_v0, %v2946_v19  ;;  %vm5724_vm7 = vcmp.gt.f32.partialorder %v5723_v57, 0.5  ;;  %v2908_v18 = vmax.f32 %v2904_v22, %v5040_v15  ;;  %vm5731_vm9 = vmmov %vm5691_vm0 }
 0x933   :  { %v2885_v61 = vsel %vm5724_vm7, %v5025_v2, -1e+30  ;;  %vm5726_vm12 = vcmp.gt.f32.partialorder %v5725_v49, 0.5  ;;  %vm5728_vm5 = vcmp.gt.f32.partialorder %v5727_v4, 0.5  ;;  %v2911_v44 = vsel %vm5729_vm1, %v2881_v56, -inf  ;;  %vm5732_vm13 = vmmov %vm5691_vm0 }
 0x934   :  { %v2887_v10 = vsel %vm5726_vm12, %v2838_v8, -1e+30  ;;  %v2889_v29 = vsel %vm5728_vm5, %v2842_v21, -1e+30  ;;  %v2913_v40 = vsel %vm5730_vm11, %v2883_v38, -inf  ;;  %v2949_v25 = vmax.f32 %v2945_v9, %v2948_v51  ;;  %vm5753_vm5 = vmmov %vm5691_vm0 }
 0x935   :  { %v2951_v31 = vmax.f32 %v2947_v35, %v2950_v32  ;;  %v2912_v30 = vmax.f32 %v2908_v18, %v2911_v44  ;;  %v2914_v54 = vmax.f32 %v2910_v62, %v2913_v40  ;;  %v2915_v6 = vsel %vm5731_vm9, %v2885_v61, -inf  ;;  %v5743_v40 = vld [vmem:[#allocation35_spill] sm:$0xff]  ;;  %vm5754_vm1 = vmmov %vm5691_vm0 }
 0x936   :  { %v2917_v8 = vsel %vm5732_vm13, %v2887_v10, -inf  ;;  %v2919_v16 = vsel %vm5691_vm0, %v2889_v29, -inf  ;;  %vm5734_vm4 = vcmp.gt.f32.partialorder %v5733_v12, 0.5  ;;  %vm5736_vm2 = vcmp.gt.f32.partialorder %v5735_v17, 0.5  ;;  %v5741_v29 = vld [vmem:[#allocation33_spill] sm:$0xff]  ;;  %vm5755_vm11 = vmmov %vm5691_vm0 }
 0x937   :  { %v2952_v2 = vmax.f32 %v2949_v25, %v2951_v31  ;;  %v2916_v15 = vmax.f32 %v2912_v30, %v2915_v6  ;;  %v2918_v21 = vmax.f32 %v2914_v54, %v2917_v8  ;;  %vm5739_vm15 = vcmask 64512   ;;  %vm5756_vm9 = vmmov %vm5691_vm0 }
 0x938   :  { %vm5740_vm3 = vmmov %vm5739_vm15  ;;  %vm5742_vm6 = vcmp.gt.f32.partialorder %v5741_v29, 0.5  ;;  %vm5744_vm14 = vcmp.gt.f32.partialorder %v5743_v40, 0.5 }
 0x939   :  { %2957 = vrot.lane.b32.xlu0 %v2952_v2, %s3739_s0  ;;  %v2920_v33 = vmax.f32 %v2916_v15, %v2919_v16  ;;  %v5745_v15 = vld [vmem:[#allocation32_spill] sm:$0xff]  ;;  %v5747_v16 = vld [vmem:[#allocation34_spill] sm:$0xff] }
 0x93a   :  { %vm5746_vm8 = vcmp.gt.f32.partialorder %v5745_v15, 0.5  ;;  %vm5748_vm10 = vcmp.gt.f32.partialorder %v5747_v16, 0.5 }
 0x93b   :  { %v2921_v55 = vmax.f32 %v2918_v21, %v2920_v33 }
 0x93d   :  { %2955 = vrot.lane.b32.xlu1 %v2921_v55, %s3739_s0 }
 0x9ab   :  { %v2958_v47 = vpop.permute.xlu0 %2957 }
 0x9ac   :  { %v2962_v27 = vadd.f32 %v2958_v47, %v4983_v43  ;;  %v3420_v43 = vld [vmem:[#allocation2 + $0x90] sm:$0xff] }
 0x9ad   :  { %3666 = vmatprep.subr.mxu1 %v3420_v43 }
 0x9ae   :  { %v2964_v60 = vsel %vm5734_vm4, %v2962_v27, 0.0 }
 0x9af   :  { %v2956_v28 = vpop.permute.xlu1 %2955  ;;  %v2966_v24 = vmax.f32 %v2964_v60, 0.0 }
 0x9b0   :  { %v2961_v41 = vadd.f32 %v2956_v28, %v4989_v52  ;;  %v3118_v52 = vpop.f32.mrf.mxu0 }
 0x9b1   :  { %v2968_v42 = vmul.f32 %v2966_v24, %v5737_v46 }
 0x9b2   :  { %v2963_v53 = vsel %vm5736_vm2, %v2961_v41, 0.0  ;;  %v5751_v41 = vld [vmem:[#allocation39_spill] sm:$0xff] }
 0x9b3   :  { %v2965_v13 = vmax.f32 %v2963_v53, 0.0  ;;  %vm5752_vm12 = vcmp.gt.f32.partialorder %v5751_v41, 0.5 }
 0x9b5   :  { %v2967_v11 = vmul.f32 %v2965_v13, %v5738_v63 }
 0x9b7   :  { %3658 = vmatprep.mubr.msk.f32.mxu1 %vm5739_vm15, %v2967_v11 }
 0x9b8   :  { %3659 = vmatmul.mubr.msk.f32.vlgmr.msra.gmra.mxu1 %vm5740_vm3, %v2968_v42 }
 0x9b9   :  { %3667 = vmatpush3.msra.mxu1 %v3420_v43 }
 0xa78   :  { %v3660_v14 = vpop.f32.mrf.mxu1 }
 0xa79   :  { %v3124_v58 = vadd.f32 %v3665_v37, %v3660_v14  ;;  %v5757_v14 = vld [vmem:[#allocation17_spill] sm:$0xff] }
 0xa7a   :  { %v3043_v36 = vpop.f32.mrf.mxu1  ;;  %vm5758_vm13 = vcmp.gt.f32.partialorder %v5757_v14, 0.5 }
 0xa7b   :  { %v5150_v45 = vadd.f32 %v3555_v39, %v3124_v58  ;;  %v3119_v50 = vadd.f32 %v3118_v52, %v3043_v36  ;;  %v5759_v58 = vld [vmem:[#allocation21_spill] sm:$0xff]  ;;  %v5761_v36 = vld [vmem:[#allocation19_spill] sm:$0xff] }
 0xa7c   :  { %vm5760_vm0 = vcmp.gt.f32.partialorder %v5759_v58, 0.5  ;;  %vm5762_vm4 = vcmp.gt.f32.partialorder %v5761_v36, 0.5 }
 0xa7d   :  { %v3185_v26 = vcombine.high %v5150_v45, %v5150_v45  ;;  %v3192_v7 = vrot.slane %v5150_v45, %v5604_v3  ;;  %v5156_v56 = vadd.f32 %v3555_v39, %v3119_v50 }
 0xa7f   :  { %v3199_v59 = vrot.slane %v3185_v26, %v5604_v3  ;;  %v3200_v38 = vcombine.high %v3192_v7, %v3192_v7  ;;  %v3208_v1 = vrot.slane %v3192_v7, %v5604_v3  ;;  %v3136_v23 = vcombine.high %v5156_v56, %v5156_v56  ;;  %v5763_v7 = vld [vmem:[#allocation20_spill] sm:$0xff] }
 0xa80   :  { %v3143_v20 = vrot.slane %v5156_v56, %v5604_v3  ;;  %vm5764_vm2 = vcmp.gt.f32.partialorder %v5763_v7, 0.5 }
 0xa81   :  { %v3201_v0 = vcombine.high %v3199_v59, %v3199_v59  ;;  %v3222_v22 = vrot.slane %v3200_v38, %v5604_v3  ;;  %v3215_v34 = vrot.slane %v3199_v59, %v5604_v3  ;;  %v3150_v19 = vrot.slane %v3136_v23, %v5604_v3  ;;  %v5765_v38 = vld [vmem:[#allocation16_spill] sm:$0xff]  ;;  %v5767_v23 = vld [vmem:[#allocation18_spill] sm:$0xff] }
 0xa82   :  { %v3230_v51 = vcombine.high %v3208_v1, %v3208_v1  ;;  %v3269_v32 = vrot.slane %v3208_v1, %v3781_v5  ;;  %v3151_v62 = vcombine.high %v3143_v20, %v3143_v20  ;;  %v3159_v9 = vrot.slane %v3143_v20, %v5604_v3 }
 0xa83   :  { %v3229_v35 = vrot.slane %v3201_v0, %v5604_v3  ;;  %v3232_v57 = vcombine.high %v3222_v22, %v3222_v22  ;;  %v3273_v61 = vrot.slane %v3222_v22, %v3781_v5  ;;  %v3231_v18 = vcombine.high %v3215_v34, %v3215_v34  ;;  %v5769_v0 = vld [vmem:[#allocation23_spill] sm:$0xff] }
 0xa84   :  { %v3152_v49 = vcombine.high %v3150_v19, %v3150_v19  ;;  %v3277_v10 = vrot.slane %v3230_v51, %v3781_v5  ;;  %v5173_v4 = vrot.slane %v3215_v34, %v3781_v5  ;;  %v3330_v44 = vsel %vm5742_vm6, %v3269_v32, -1e+30  ;;  %v5771_v34 = vld [vmem:[#allocation22_spill] sm:$0xff]  ;;  %v5773_v51 = vld [vmem:[#allocation25_spill] sm:$0xff] }
 0xa85   :  { %v3331_v25 = vsel %vm5744_vm14, %v3269_v32, -1e+30  ;;  %v3166_v31 = vrot.slane %v3150_v19, %v5604_v3  ;;  %v3173_v30 = vrot.slane %v3151_v62, %v5604_v3  ;;  %v3181_v48 = vcombine.high %v3159_v9, %v3159_v9 }
 0xa86   :  { %v3180_v54 = vrot.slane %v3152_v49, %v5604_v3  ;;  %v3233_v6 = vcombine.high %v3229_v35, %v3229_v35  ;;  %v5183_v2 = vrot.slane %v3232_v57, %v3781_v5  ;;  %v3332_v8 = vsel %vm5746_vm8, %v3273_v61, -1e+30  ;;  %v5749_v3 = vld [vmem:[#allocation37_spill] sm:$0xff]  ;;  %v5777_v57 = vld [vmem:[#allocation24_spill] sm:$0xff]  ;;  %v5779_v49 = vld [vmem:[#allocation26_spill] sm:$0xff] }
 0xa87   :  { %v3333_v21 = vsel %vm5748_vm10, %v3273_v61, -1e+30  ;;  %v3182_v33 = vcombine.high %v3166_v31, %v3166_v31  ;;  %v3183_v55 = vcombine.high %v3173_v30, %v3173_v30  ;;  %v3237_v47 = vrot.slane %v3159_v9, %v3781_v5  ;;  %v5775_v9 = vld [vmem:[#allocation27_spill] sm:$0xff] }
 0xa88   :  { %v3241_v27 = vrot.slane %v3173_v30, %v3781_v5  ;;  %v5192_v12 = vrot.slane %v3229_v35, %v3781_v5  ;;  %vm5750_vm7 = vcmp.gt.f32.partialorder %v5749_v3, 0.5  ;;  %v3184_v28 = vcombine.high %v3180_v54, %v3180_v54  ;;  %v5785_v30 = vld [vmem:[#allocation31_spill] sm:$0xff] }
 0xa89   :  { %v5196_v60 = vsel %vm5750_vm7, %v3277_v10, -1e+30  ;;  %v3245_v24 = vrot.slane %v3181_v48, %v3781_v5  ;;  %v3335_v17 = vsel %vm5752_vm12, %v3277_v10, -1e+30  ;;  %v5202_v53 = vsel %vm5753_vm5, %v3330_v44, -inf  ;;  %v5781_v44 = vld [vmem:[#allocation29_spill] sm:$0xff] }
 0xa8a   :  { %v3249_v13 = vrot.slane %v3183_v55, %v3781_v5  ;;  %v3253_v46 = vrot.slane %v3166_v31, %v3781_v5  ;;  %v5207_v42 = vsel %vm5754_vm1, %v3332_v8, -inf  ;;  %v3391_v63 = vsel %vm5755_vm11, %v3331_v25, -inf  ;;  %vm5783_vm11 = vmmov %vm5754_vm1  ;;  %v5787_v48 = vld [vmem:[#allocation30_spill] sm:$0xff] }
 0xa8b   :  { %v3393_v11 = vsel %vm5756_vm9, %v3333_v21, -inf  ;;  %v3257_v43 = vrot.slane %v3180_v54, %v3781_v5  ;;  %v3261_v37 = vrot.slane %v3182_v33, %v3781_v5  ;;  %v3314_v39 = vsel %vm5758_vm13, %v3237_v47, -1e+30  ;;  %vm5784_vm9 = vmmov %vm5754_vm1 }
 0xa8c   :  { %v3315_v52 = vsel %vm5760_vm0, %v3237_v47, -1e+30  ;;  %v3316_v50 = vsel %vm5762_vm4, %v3241_v27, -1e+30  ;;  %v3265_v26 = vrot.slane %v3184_v28, %v3781_v5  ;;  %v3317_v59 = vsel %vm5764_vm2, %v3241_v27, -1e+30  ;;  %vm5789_vm4 = vmmov %vm5754_vm1 }
 0xa8d   :  { %vm5766_vm15 = vcmp.gt.f32.partialorder %v5765_v38, 0.5  ;;  %vm5768_vm3 = vcmp.gt.f32.partialorder %v5767_v23, 0.5  ;;  %vm5770_vm6 = vcmp.gt.f32.partialorder %v5769_v0, 0.5  ;;  %vm5772_vm14 = vcmp.gt.f32.partialorder %v5771_v34, 0.5  ;;  %vm5790_vm2 = vmmov %vm5754_vm1  ;;  %v5808_v0 = vld [vmem:[#allocation48_spill] sm:$0xff]  ;;  %v5810_v34 = vld [vmem:[#allocation47_spill] sm:$0xff] }
 0xa8e   :  { %v3318_v1 = vsel %vm5766_vm15, %v3245_v24, -1e+30  ;;  %v3320_v20 = vsel %vm5768_vm3, %v3249_v13, -1e+30  ;;  %v3319_v22 = vsel %vm5770_vm6, %v3245_v24, -1e+30  ;;  %v3293_v62 = vrot.slane %v3231_v18, %v3781_v5  ;;  %vm5791_vm15 = vmmov %vm5754_vm1 }
 0xa8f   :  { %v3321_v19 = vsel %vm5772_vm14, %v3249_v13, -1e+30  ;;  %vm5774_vm8 = vcmp.gt.f32.partialorder %v5773_v51, 0.5  ;;  %vm5776_vm10 = vcmp.gt.f32.partialorder %v5775_v9, 0.5  ;;  %vm5778_vm7 = vcmp.gt.f32.partialorder %v5777_v57, 0.5  ;;  %vm5792_vm3 = vmmov %vm5754_vm1  ;;  %v5797_v13 = vld [vmem:[#allocation38_spill] sm:$0xff] }
 0xa90   :  { %v3322_v32 = vsel %vm5774_vm8, %v3253_v46, -1e+30  ;;  %v3323_v35 = vsel %vm5776_vm10, %v3253_v46, -1e+30  ;;  %v3324_v61 = vsel %vm5778_vm7, %v3257_v43, -1e+30  ;;  %v3297_v29 = vrot.slane %v3233_v6, %v3781_v5  ;;  %vm5793_vm6 = vmmov %vm5754_vm1 }
 0xa91   :  { %vm5780_vm12 = vcmp.gt.f32.partialorder %v5779_v49, 0.5  ;;  %vm5782_vm5 = vcmp.gt.f32.partialorder %v5781_v44, 0.5  ;;  %v3346_v25 = vsel %vm5754_vm1, %v3314_v39, -inf  ;;  %v3348_v31 = vsel %vm5783_vm11, %v3318_v1, -inf  ;;  %vm5794_vm14 = vmmov %vm5754_vm1  ;;  %v5806_v1 = vld [vmem:[#allocation42_spill] sm:$0xff]  ;;  %v5815_v49 = vld [vmem:[#allocation36_spill] sm:$0xff] }
 0xa92   :  { %v3325_v10 = vsel %vm5780_vm12, %v3257_v43, -1e+30  ;;  %v3326_v40 = vsel %vm5782_vm5, %v3261_v37, -1e+30  ;;  %v3350_v18 = vsel %vm5784_vm9, %v3320_v20, -inf  ;;  %vm5786_vm13 = vcmp.gt.f32.partialorder %v5785_v30, 0.5  ;;  %vm5795_vm8 = vmmov %vm5754_vm1 }
 0xa93   :  { %v3327_v54 = vsel %vm5786_vm13, %v3261_v37, -1e+30  ;;  %vm5788_vm0 = vcmp.gt.f32.partialorder %v5787_v48, 0.5  ;;  %v3347_v8 = vsel %vm5789_vm4, %v3316_v50, -inf  ;;  %v3349_v16 = vmax.f32 %v3346_v25, %v3348_v31  ;;  %vm5796_vm10 = vmmov %vm5754_vm1  ;;  %v5799_v43 = vld [vmem:[#allocation28_spill] sm:$0xff]  ;;  %v5803_v50 = vld [vmem:[#allocation43_spill] sm:$0xff] }
 0xa94   :  { %v3329_v15 = vsel %vm5788_vm0, %v3265_v26, -1e+30  ;;  %v3377_v5 = vsel %vm5790_vm2, %v3315_v52, -inf  ;;  %v3378_v6 = vsel %vm5791_vm15, %v3317_v59, -inf  ;;  %v3379_v21 = vsel %vm5792_vm3, %v3319_v22, -inf  ;;  %vm5801_vm5 = vmmov %vm5754_vm1  ;;  %v5817_v44 = vld [vmem:[#allocation41_spill] sm:$0xff] }
 0xa95   :  { %v3381_v33 = vsel %vm5793_vm6, %v3321_v19, -inf  ;;  %v3351_v55 = vmax.f32 %v3347_v8, %v3350_v18  ;;  %v3352_v47 = vsel %vm5794_vm14, %v3322_v32, -inf  ;;  %v3380_v27 = vmax.f32 %v3377_v5, %v3379_v21  ;;  %vm5802_vm11 = vmmov %vm5754_vm1  ;;  %v5825_v5 = vld [vmem:[#allocation45_spill] sm:$0xff]  ;;  %v5827_v21 = vld [vmem:[#allocation44_spill] sm:$0xff] }
 0xa96   :  { %v3382_v3 = vmax.f32 %v3378_v6, %v3381_v33  ;;  %v3353_v28 = vmax.f32 %v3349_v16, %v3352_v47  ;;  %v3383_v24 = vsel %vm5795_vm8, %v3323_v35, -inf  ;;  %v3385_v41 = vsel %vm5796_vm10, %v3325_v10, -inf  ;;  %vm5805_vm13 = vmmov %vm5754_vm1 }
 0xa97   :  { %vm5798_vm7 = vcmp.gt.f32.partialorder %v5797_v13, 0.5  ;;  %vm5800_vm12 = vcmp.gt.f32.partialorder %v5799_v43, 0.5  ;;  %v3354_v14 = vsel %vm5801_vm5, %v3324_v61, -inf  ;;  %v3384_v39 = vmax.f32 %v3380_v27, %v3383_v24  ;;  %vm5812_vm15 = vmmov %vm5754_vm1 }
 0xa98   :  { %v3337_v46 = vsel %vm5798_vm7, %v5183_v2, -1e+30  ;;  %v3328_v37 = vsel %vm5800_vm12, %v3265_v26, -1e+30  ;;  %v3386_v58 = vmax.f32 %v3382_v3, %v3385_v41  ;;  %v3356_v52 = vsel %vm5754_vm1, %v3326_v40, -inf  ;;  %vm5813_vm3 = vmmov %vm5754_vm1 }
 0xa99   :  { %v3387_v36 = vsel %vm5802_vm11, %v3327_v54, -inf  ;;  %vm5804_vm9 = vcmp.gt.f32.partialorder %v5803_v50, 0.5  ;;  %v3389_v59 = vsel %vm5805_vm13, %v3329_v15, -inf  ;;  %v3355_v38 = vmax.f32 %v3351_v55, %v3354_v14  ;;  %vm5814_vm6 = vmmov %vm5754_vm1 }
 0xa9a   :  { %v3339_v7 = vsel %vm5804_vm9, %v5173_v4, -1e+30  ;;  %vm5807_vm0 = vcmp.gt.f32.partialorder %v5806_v1, 0.5  ;;  %v3388_v26 = vmax.f32 %v3384_v39, %v3387_v36  ;;  %v3390_v20 = vmax.f32 %v3386_v58, %v3389_v59  ;;  %vm5819_vm10 = vmmov %vm5754_vm1  ;;  %v5834_v58 = vld [vmem:[#allocation49_spill] sm:$0xff]  ;;  %v5836_v36 = vld [vmem:[#allocation46_spill] sm:$0xff] }
 0xa9b   :  { %v3341_v23 = vsel %vm5807_vm0, %v5192_v12, -1e+30  ;;  %vm5809_vm4 = vcmp.gt.f32.partialorder %v5808_v0, 0.5  ;;  %vm5811_vm2 = vcmp.gt.f32.partialorder %v5810_v34, 0.5  ;;  %v3395_v51 = vsel %vm5812_vm15, %v3335_v17, -inf  ;;  %vm5820_vm7 = vmmov %vm5754_vm1 }
 0xa9c   :  { %v3343_v22 = vsel %vm5809_vm4, %v3293_v62, -1e+30  ;;  %v3345_v19 = vsel %vm5811_vm2, %v3297_v29, -1e+30  ;;  %v3357_v32 = vmax.f32 %v3353_v28, %v3356_v52  ;;  %v3392_v9 = vmax.f32 %v3388_v26, %v3391_v63  ;;  %vm5821_vm12 = vmmov %vm5754_vm1 }
 0xa9d   :  { %v3394_v35 = vmax.f32 %v3390_v20, %v3393_v11  ;;  %v3397_v57 = vsel %vm5813_vm3, %v3337_v46, -inf  ;;  %v3399_v61 = vsel %vm5814_vm6, %v3339_v7, -inf  ;;  %vm5816_vm14 = vcmp.gt.f32.partialorder %v5815_v49, 0.5  ;;  %vm5822_vm5 = vmmov %vm5754_vm1  ;;  %v3556_v7 = vld [vmem:[#allocation2 + $0x98] ss:$0 sm:$0xff] }
 0xa9e   :  { %v3336_v10 = vsel %vm5816_vm14, %v5183_v2, -1e+30  ;;  %vm5818_vm8 = vcmp.gt.f32.partialorder %v5817_v44, 0.5  ;;  %v3358_v25 = vsel %vm5819_vm10, %v3328_v37, -inf  ;;  %v3361_v31 = vmax.f32 %v3357_v32, %v5202_v53  ;;  %vm5829_vm0 = vmmov %vm5754_vm1 }
 0xa9f   :  { %v3338_v40 = vsel %vm5818_vm8, %v5173_v4, -1e+30  ;;  %v3396_v17 = vmax.f32 %v3392_v9, %v3395_v51  ;;  %v3398_v18 = vmax.f32 %v3394_v35, %v3397_v57  ;;  %v3359_v63 = vmax.f32 %v3355_v38, %v3358_v25  ;;  %v5823_v4 = vld [vmem:[#allocation40_spill] sm:$0xff]  ;;  %vm5830_vm4 = vmmov %vm5829_vm0 }
 0xaa0   :  { %v3364_v11 = vsel %vm5820_vm7, %v5196_v60, -inf  ;;  %v3401_v30 = vsel %vm5821_vm12, %v3341_v23, -inf  ;;  %v3403_v54 = vsel %vm5822_vm5, %v3343_v22, -inf  ;;  %v3405_v2 = vsel %vm5754_vm1, %v3345_v19, -inf  ;;  %vm5831_vm2 = vmmov %vm5829_vm0 }
 0xaa1   :  { %v3365_v48 = vmax.f32 %v3361_v31, %v3364_v11  ;;  %v3400_v15 = vmax.f32 %v3396_v17, %v3399_v61  ;;  %v3402_v8 = vmax.f32 %v3398_v18, %v3401_v30  ;;  %vm5824_vm11 = vcmp.gt.f32.partialorder %v5823_v4, 0.5  ;;  %vm5832_vm15 = vmmov %vm5829_vm0 }
 0xaa2   :  { %v3340_v16 = vsel %vm5824_vm11, %v5192_v12, -1e+30  ;;  %v3363_v53 = vmax.f32 %v3359_v63, %v5207_v42  ;;  %vm5826_vm9 = vcmp.gt.f32.partialorder %v5825_v5, 0.5  ;;  %vm5828_vm13 = vcmp.gt.f32.partialorder %v5827_v21, 0.5  ;;  %vm5833_vm3 = vmmov %vm5829_vm0 }
 0xaa3   :  { %v3342_v6 = vsel %vm5826_vm9, %v3293_v62, -1e+30  ;;  %v3344_v60 = vsel %vm5828_vm13, %v3297_v29, -1e+30  ;;  %v3366_v33 = vsel %vm5829_vm0, %v3336_v10, -inf  ;;  %v3368_v55 = vsel %vm5830_vm4, %v3338_v40, -inf }
 0xaa4   :  { %v3404_v47 = vmax.f32 %v3400_v15, %v3403_v54  ;;  %v3406_v27 = vmax.f32 %v3402_v8, %v3405_v2  ;;  %v3367_v3 = vmax.f32 %v3363_v53, %v3366_v33  ;;  %v3369_v28 = vmax.f32 %v3365_v48, %v3368_v55 }
 0xaa5   :  { %v3370_v24 = vsel %vm5831_vm2, %v3340_v16, -inf  ;;  %v3372_v42 = vsel %vm5832_vm15, %v3342_v6, -inf  ;;  %v3374_v13 = vsel %vm5833_vm3, %v3344_v60, -inf  ;;  %vm5835_vm6 = vcmp.gt.f32.partialorder %v5834_v58, 0.5 }
 0xaa6   :  { %v3407_v41 = vmax.f32 %v3404_v47, %v3406_v27  ;;  %v3371_v12 = vmax.f32 %v3367_v3, %v3370_v24  ;;  %v3373_v62 = vmax.f32 %v3369_v28, %v3372_v42  ;;  %vm5837_vm14 = vcmp.gt.f32.partialorder %v5836_v36, 0.5 }
 0xaa7   :  { %vm5838_vm8 = vcmask 64512  }
 0xaa8   :  { %3412 = vrot.lane.b32.xlu0 %v3407_v41, %s3739_s0  ;;  %v3375_v29 = vmax.f32 %v3371_v12, %v3374_v13  ;;  %vm5839_vm10 = vmmov %vm5838_vm8 }
 0xaaa   :  { %v3376_v46 = vmax.f32 %v3373_v62, %v3375_v29 }
 0xaac   :  { %3410 = vrot.lane.b32.xlu1 %v3376_v46, %s3739_s0 }
 0xb1a   :  { %v3413_v43 = vpop.permute.xlu0 %3412 }
 0xb1b   :  { %v3417_v37 = vadd.f32 %v3413_v43, %v5150_v45 }
 0xb1d   :  { %v3419_v52 = vsel %vm5835_vm6, %v3417_v37, 0.0 }
 0xb1e   :  { %v3411_v14 = vpop.permute.xlu1 %3410 }
 0xb1f   :  { %v3416_v39 = vadd.f32 %v3411_v14, %v5156_v56 }
 0xb21   :  { %v3418_v50 = vsel %vm5837_vm14, %v3416_v39, 0.0 }
 0xb22   :  { %3668 = vmatprep.mubr.msk.f32.mxu1 %vm5838_vm8, %v3418_v50 }
 0xb23   :  { %3669 = vmatmul.mubr.msk.f32.vlgmr.msra.gmra.mxu1 %vm5839_vm10, %v3419_v52 }
 0xbe3   :  { %v3670_v59 = vpop.f32.mrf.mxu1 }
 0xbe4   :  { %v3504_v38 = vadd.f32 %v3670_v59, %v3556_v7 }
 0xbe5   :  { %v3498_v1 = vpop.f32.mrf.mxu1 }
 0xbe6   :  { %3508 = vst [vmem:[#allocation5 + $0x8] sm:$0xff] %v3504_v38  ;;  %v3499_v45 = vadd.f32 %v3556_v7, %v3498_v1 }
 0xbe8   :  { %3507 = vst [vmem:[#allocation5] sm:$0xff] %v3499_v45 }
 0xbe9   :  { %3722 = shalt.err (!%p3719_p9)
}
 0xbea   :  { %3520 = dma.vmem_to_hbm [thread:$0]  %s3515_s25, 256, %s5324_s3, [#allocation4], %s3736_s15, %s3736_s15, %s3737_s16  }
 0xbeb   :  { %3733 = dma.done.wait [#allocation4], 256  }
 0xbec   :  { %3734 = vsyncadd [#allocation4], 4294967040 }
 0xbed   :  { %3524 = vsyncpa [#allocation3], 1 }
 0xbee   :  { %3525 = vsyncpa [#allocation4], 1 }

</bundles_post_ra>
